<compile_context>
chip_gen: v7x
topology: tpu7x:2x2x1
jax: 0.10.0
libtpu: 0.0.40
codegen_flags: <defaults>
</compile_context>

<pallas_src>
import jax
import jax.numpy as jnp
from jax.experimental import pallas as pl
from jax.experimental.pallas import tpu as pltpu


def _round8(n):
    return ((n + 7) // 8) * 8


# ----------------------------------------------------------------------------
# In-kernel building blocks (operate on 2-D f32 values; one shared VMEM scratch
# stages zero-padded inputs so conv taps are plain in-VMEM slices).
# ----------------------------------------------------------------------------
def _conv1d(pad_ref, x, w_ref, b_ref, *, padding, relu):
    """Stride-1 1-D convolution of a (Lin, Cin) value with (K, Cin, Cout) weights."""
    lin, cin = x.shape
    k = w_ref.shape[0]
    cout = w_ref.shape[2]
    if k == 1 and padding == 0:                      # 1x1 conv: single matmul, no staging
        acc = jnp.dot(x, w_ref[0], preferred_element_type=jnp.float32)
    else:
        lp = lin + 2 * padding
        lout = lp - k + 1
        # Stage the zero-padded input in VMEM scratch; taps become static ref slices.
        if padding > 0:
            zeros = jnp.zeros((padding, cin), jnp.float32)
            pad_ref[0:padding, 0:cin] = zeros
            pad_ref[padding + lin:lp, 0:cin] = zeros
        pad_ref[padding:padding + lin, 0:cin] = x
        acc = jnp.zeros((lout, cout), jnp.float32)
        for kk in range(k):                          # K <= 4, static -> unrolled MXU matmuls
            acc = acc + jnp.dot(pad_ref[kk:kk + lout, 0:cin], w_ref[kk],
                                preferred_element_type=jnp.float32)
    if b_ref is not None:
        acc = acc + b_ref[...]
    if relu:
        acc = jnp.maximum(acc, 0.0)
    return acc


def _downsample2(pad_ref, y):
    """Keep rows 0, 2, 4, ... of y (stride-2 conv == stride-1 conv + this selection)."""
    lf, c = y.shape
    lds = (lf + 1) // 2
    ls = _round8(lf)                                 # 8-aligned staging, zeroed tail
    pad_ref[0:lf, 0:c] = y
    if ls > lf:
        pad_ref[lf:ls, 0:c] = jnp.zeros((ls - lf, c), jnp.float32)
    y_s = pad_ref[0:ls, 0:c]
    rows = jax.lax.broadcasted_iota(jnp.int32, (lds, ls), 0)
    cols = jax.lax.broadcasted_iota(jnp.int32, (lds, ls), 1)
    sel = (cols == 2 * rows).astype(jnp.float32)
    return jnp.dot(sel, y_s, preferred_element_type=jnp.float32)


def _upsample2(pad_ref, y):
    """Nearest-neighbour x2 upsample along rows (selection matmul)."""
    t, c = y.shape
    ts = _round8(t)
    pad_ref[0:t, 0:c] = y
    if ts > t:
        pad_ref[t:ts, 0:c] = jnp.zeros((ts - t, c), jnp.float32)
    y_s = pad_ref[0:ts, 0:c]
    rows = jax.lax.broadcasted_iota(jnp.int32, (2 * t, ts), 0)
    cols = jax.lax.broadcasted_iota(jnp.int32, (2 * t, ts), 1)
    sel = jnp.logical_or(rows == 2 * cols, rows == 2 * cols + 1).astype(jnp.float32)
    return jnp.dot(sel, y_s, preferred_element_type=jnp.float32)


def _residual_stack(pad_ref, x, layers):
    # block(x) = conv1x1(relu(conv3(relu(x)))); x += block(x); final ReLU over the stack.
    for w1_ref, w2_ref in layers:
        h = _conv1d(pad_ref, jnp.maximum(x, 0.0), w1_ref, None, padding=1, relu=True)
        h = _conv1d(pad_ref, h, w2_ref, None, padding=0, relu=False)
        x = x + h
    return jnp.maximum(x, 0.0)


def _vq(z, emb_ref, emb_t_ref, emb_sq_ref):
    """Nearest-codebook quantization of z (T, D). Returns (quantized, one_hot)."""
    t, _ = z.shape
    num_e = emb_ref.shape[0]
    # ||z - e||^2 up to the per-row constant ||z||^2 (dropped: argmin-invariant).
    # ||e||^2 is precomputed in the wrapper and passed as a (1, E) constant input.
    cross = jnp.dot(z, emb_t_ref[...],
                    preferred_element_type=jnp.float32)           # (T, E)
    dist = emb_sq_ref[...] - 2.0 * cross
    col = jax.lax.broadcasted_iota(jnp.int32, (t, num_e), 1)
    dmin = jnp.min(dist, axis=1, keepdims=True)
    idx = jnp.min(jnp.where(dist <= dmin, col, num_e), axis=1, keepdims=True)  # first argmin
    enc = (col == idx).astype(jnp.float32)                        # one-hot (T, E)
    q = jnp.dot(enc, emb_ref[...], preferred_element_type=jnp.float32)   # (T, D)
    return q, enc


# ----------------------------------------------------------------------------
# Fused whole-model kernel (one grid step == one batch element)
# ----------------------------------------------------------------------------
def _make_fused_kernel(n_res):
    def kernel(*refs):
        it = iter(refs)
        x_ref = next(it)
        e1w, e1b = next(it), next(it)
        e2w, e2b = next(it), next(it)
        e3w, e3b = next(it), next(it)
        e4w, e4b = next(it), next(it)
        e5w, e5b = next(it), next(it)
        enc_res = [(next(it), next(it)) for _ in range(n_res)]
        pvw, pvb = next(it), next(it)
        emb, emb_t, emb_sq = next(it), next(it), next(it)
        d1w, d1b = next(it), next(it)
        dec_res = [(next(it), next(it)) for _ in range(n_res)]
        ct1w, ct1b = next(it), next(it)
        ct2w, ct2b = next(it), next(it)
        ct3w, ct3b = next(it), next(it)
        recon_ref = next(it)
        z_ref = next(it)
        q_ref = next(it)
        enc_ref = next(it)
        pad_ref = next(it)                          # shared VMEM staging scratch

        xb = x_ref[0]                               # (L, Fin) — this grid step's batch element

        # ---------------- encoder ----------------
        x1 = _conv1d(pad_ref, xb, e1w, e1b, padding=1, relu=True)
        x2 = _conv1d(pad_ref, x1, e2w, e2b, padding=1, relu=True) + x1
        # conv_3: kernel 4, stride 2, padding 2 == stride-1 conv then keep even rows
        y3 = _conv1d(pad_ref, x2, e3w, e3b, padding=2, relu=False)
        x3 = jnp.maximum(_downsample2(pad_ref, y3), 0.0)
        x4 = _conv1d(pad_ref, x3, e4w, e4b, padding=1, relu=True) + x3
        x5 = _conv1d(pad_ref, x4, e5w, e5b, padding=1, relu=True) + x4
        henc = _residual_stack(pad_ref, x5, enc_res) + x5

        # ---------------- pre-VQ conv + vector quantizer ----------------
        z = _conv1d(pad_ref, henc, pvw, pvb, padding=1, relu=False)   # (T, D)
        q, enc = _vq(z, emb, emb_t, emb_sq)
        z_ref[0] = z
        q_ref[0] = q
        enc_ref[0] = enc

        # ---------------- decoder ----------------
        # Forward value of the straight-through estimator equals `q` itself.
        y = _conv1d(pad_ref, q, d1w, d1b, padding=1, relu=False)
        # TODO(synk): Jitter is a training-only stochastic op; inference path skips it.
        y = _upsample2(pad_ref, y)                        # nn.Upsample(x2, 'nearest')
        y = _residual_stack(pad_ref, y, dec_res)
        y = _conv1d(pad_ref, y, ct1w, ct1b, padding=1, relu=True)   # ConvT k3 p1
        y = _conv1d(pad_ref, y, ct2w, ct2b, padding=2, relu=True)   # ConvT k3 p0
        y = _conv1d(pad_ref, y, ct3w, ct3b, padding=1, relu=False)  # ConvT k2 p0
        recon_ref[0] = y

    return kernel


# ----------------------------------------------------------------------------
# Parameter init (matches PyTorch default Conv1d / ConvTranspose1d / Embedding init)
# ----------------------------------------------------------------------------
def init_params(key, *, fin, h, d, e, fout, n_res, enc_res_h, dec_res_h):
    keys = iter(jax.random.split(key, 128))

    def u(shape, bound):
        return jax.random.uniform(next(keys), shape, jnp.float32, -bound, bound)

    def conv(cin, cout, k, bias=True):
        bound = 1.0 / float(cin * k) ** 0.5
        w = u((k, cin, cout), bound)
        b = u((cout,), bound) if bias else None
        return w, b

    def conv_t(cin, cout, k):
        # PyTorch ConvTranspose1d weight is (cin, cout, k); stride-1 transpose conv
        # == regular conv with kernel flipped along k and padding (k-1-p).
        bound = 1.0 / float(cout * k) ** 0.5
        wt = u((cin, cout, k), bound)
        b = u((cout,), bound)
        w = jnp.transpose(jnp.flip(wt, axis=2), (2, 0, 1))  # (k, cin, cout)
        return w, b

    p = {}
    # encoder
    p["enc_conv1_w"], p["enc_conv1_b"] = conv(fin, h, 3)
    p["enc_conv2_w"], p["enc_conv2_b"] = conv(h, h, 3)
    p["enc_conv3_w"], p["enc_conv3_b"] = conv(h, h, 4)   # stride-2 downsampler
    p["enc_conv4_w"], p["enc_conv4_b"] = conv(h, h, 3)
    p["enc_conv5_w"], p["enc_conv5_b"] = conv(h, h, 3)
    p["enc_res"] = [(conv(h, enc_res_h, 3, bias=False)[0],
                     conv(enc_res_h, h, 1, bias=False)[0]) for _ in range(n_res)]
    # pre-VQ conv
    p["pre_vq_w"], p["pre_vq_b"] = conv(h, d, 3)
    # VQ codebook (nn.Embedding uniform(-1/E, 1/E))
    p["embedding"] = u((e, d), 1.0 / e)
    # decoder
    p["dec_conv1_w"], p["dec_conv1_b"] = conv(d, h, 3)
    p["dec_res"] = [(conv(h, dec_res_h, 3, bias=False)[0],
                     conv(dec_res_h, h, 1, bias=False)[0]) for _ in range(n_res)]
    p["dec_ct1_w"], p["dec_ct1_b"] = conv_t(h, h, 3)     # ConvTranspose1d k3 p1
    p["dec_ct2_w"], p["dec_ct2_b"] = conv_t(h, h, 3)     # ConvTranspose1d k3 p0
    p["dec_ct3_w"], p["dec_ct3_b"] = conv_t(h, fout, 2)  # ConvTranspose1d k2 p0
    return p


# ----------------------------------------------------------------------------
# Forward wrapper (single fused pallas_call + tiny XLA glue for losses / stats)
# ----------------------------------------------------------------------------
def convolutional_vqvae_forward(params, x_ncl, commitment_cost=0.25):
    """x_ncl: (B, Cin, L) float — same axis convention as the PyTorch module."""
    p = params
    bsz, fin, l_in = x_ncl.shape
    x_tm = jnp.transpose(x_ncl.astype(jnp.float32), (0, 2, 1))   # (B, L, Fin) time-major

    h = p["enc_conv1_w"].shape[2]
    d = p["pre_vq_w"].shape[2]
    e = p["embedding"].shape[0]
    fout = p["dec_ct3_w"].shape[2]
    n_res = len(p["enc_res"])
    t = l_in // 2 + 1                 # length after the stride-2 encoder conv
    l_dec = 2 * t + 3                 # decoder output length before trimming

    rh_enc = p["enc_res"][0][0].shape[2] if n_res else h
    rh_dec = p["dec_res"][0][0].shape[2] if n_res else h
    cmax = max(fin, h, d, rh_enc, rh_dec)
    lpad_max = _round8(max(l_in + 4, 2 * t + 4, _round8(l_in + 1), _round8(t)))

    def w32(a):
        return jnp.asarray(a, jnp.float32)

    def b2(a):
        return jnp.asarray(a, jnp.float32).reshape(1, -1)

    emb = w32(p["embedding"])
    emb_sq = jnp.sum(emb * emb, axis=1).reshape(1, -1)   # (1, E): argmin-constant ||e||^2

    weights = [w32(p["enc_conv1_w"]), b2(p["enc_conv1_b"]),
               w32(p["enc_conv2_w"]), b2(p["enc_conv2_b"]),
               w32(p["enc_conv3_w"]), b2(p["enc_conv3_b"]),
               w32(p["enc_conv4_w"]), b2(p["enc_conv4_b"]),
               w32(p["enc_conv5_w"]), b2(p["enc_conv5_b"])]
    for w1, w2 in p["enc_res"]:
        weights += [w32(w1), w32(w2)]
    weights += [w32(p["pre_vq_w"]), b2(p["pre_vq_b"]),
                emb, jnp.transpose(emb), emb_sq,
                w32(p["dec_conv1_w"]), b2(p["dec_conv1_b"])]
    for w1, w2 in p["dec_res"]:
        weights += [w32(w1), w32(w2)]
    weights += [w32(p["dec_ct1_w"]), b2(p["dec_ct1_b"]),
                w32(p["dec_ct2_w"]), b2(p["dec_ct2_b"]),
                w32(p["dec_ct3_w"]), b2(p["dec_ct3_b"])]

    # BlockSpecs: batch axis on the grid (parallel -> megacore split on v7x);
    # all weights are whole-array VMEM blocks (constant index_map).
    def batched_spec(shape):
        nd = len(shape)
        return pl.BlockSpec((1,) + tuple(shape[1:]),
                            lambda b: (b,) + (0,) * (nd - 1))

    def full_spec(arr):
        nd = arr.ndim
        return pl.BlockSpec(arr.shape, lambda b: (0,) * nd)

    in_specs = [batched_spec(x_tm.shape)] + [full_spec(a) for a in weights]
    out_specs = (
        pl.BlockSpec((1, l_dec, fout), lambda b: (b, 0, 0)),
        pl.BlockSpec((1, t, d), lambda b: (b, 0, 0)),
        pl.BlockSpec((1, t, d), lambda b: (b, 0, 0)),
        pl.BlockSpec((1, t, e), lambda b: (b, 0, 0)),
    )

    recon_tm, z, q, enc = pl.pallas_call(
        _make_fused_kernel(n_res),
        out_shape=(
            jax.ShapeDtypeStruct((bsz, l_dec, fout), jnp.float32),   # reconstruction
            jax.ShapeDtypeStruct((bsz, t, d), jnp.float32),          # encoder output z
            jax.ShapeDtypeStruct((bsz, t, d), jnp.float32),          # quantized
            jax.ShapeDtypeStruct((bsz, t, e), jnp.float32),          # one-hot encodings
        ),
        grid_spec=pltpu.PrefetchScalarGridSpec(
            num_scalar_prefetch=0,
            grid=(bsz,),
            in_specs=in_specs,
            out_specs=out_specs,
            scratch_shapes=[pltpu.VMEM((lpad_max, cmax), jnp.float32)],
        ),
        compiler_params=pltpu.CompilerParams(
            dimension_semantics=("parallel",)),
    )(x_tm, *weights)

    # ---------------- losses / stats (tiny reductions; plain XLA glue) ----------------
    e_latent_loss = jnp.mean((q - z) ** 2)
    q_latent_loss = e_latent_loss       # identical forward value (grad semantics differ in bwd)
    commitment_loss = commitment_cost * e_latent_loss
    vq_loss = q_latent_loss + commitment_loss
    losses = {
        "e_latent_loss": e_latent_loss,
        "q_latent_loss": q_latent_loss,
        "commitment_loss": commitment_loss,
        "vq_loss": vq_loss,
    }
    enc_flat = enc.reshape(bsz * t, e)
    avg_probs = jnp.mean(enc_flat, axis=0)
    perplexity = jnp.exp(-jnp.sum(avg_probs * jnp.log(avg_probs + 1e-10)))
    encoding_indices = jnp.argmax(enc_flat, axis=1).astype(jnp.int32)[:, None]
    concatenated_quantized = None       # record_codebook_stats = False

    recon = jnp.transpose(recon_tm, (0, 2, 1))             # back to PyTorch NCL (B, Fout, Ldec)
    recon = recon.reshape(-1, fout, recon.shape[2])
    recon = recon[:, :, :l_in]                             # robust trim to the input length
    return recon, vq_loss, losses, perplexity, encoding_indices, concatenated_quantized


# ----------------------------------------------------------------------------
if __name__ == "__main__":
    key = jax.random.PRNGKey(0)
    pkey, xkey = jax.random.split(key)

    # configuration: input_features_filters=8, num_hiddens=32, embedding_dim=16,
    # num_embeddings=32, num_residual_layers=2, residual_channels=32,
    # output_features_filters=8, commitment_cost=0.25, decay=0.0, no augmentation.
    B, FIN, L = 2, 8, 16
    H, D, E, FOUT, NRES = 32, 16, 32, 8, 2

    params = init_params(pkey, fin=FIN, h=H, d=D, e=E, fout=FOUT,
                         n_res=NRES, enc_res_h=H, dec_res_h=32)
    x = jax.random.normal(xkey, (B, FIN, L), jnp.float32)

    fwd = jax.jit(convolutional_vqvae_forward)
    recon, vq_loss, losses, perplexity, enc_idx, concat_q = fwd(params, x)
    jax.block_until_ready((recon, vq_loss, perplexity, enc_idx))

    assert recon.shape == (B, FOUT, L), recon.shape
    assert enc_idx.shape == (B * (L // 2 + 1), 1), enc_idx.shape
    assert jnp.isfinite(recon).all() and jnp.isfinite(vq_loss) and jnp.isfinite(perplexity)
    print("KERNEL_OK")
</pallas_src>

<mosaic_0001>
module attributes {stable_mosaic.version = 11 : i64} {
  func.func @kernel(%arg0: i32, %arg1: memref<1x16x8xf32, #tpu.memory_space<vmem>>, %arg2: memref<3x8x32xf32, #tpu.memory_space<vmem>>, %arg3: memref<1x32xf32, #tpu.memory_space<vmem>>, %arg4: memref<3x32x32xf32, #tpu.memory_space<vmem>>, %arg5: memref<1x32xf32, #tpu.memory_space<vmem>>, %arg6: memref<4x32x32xf32, #tpu.memory_space<vmem>>, %arg7: memref<1x32xf32, #tpu.memory_space<vmem>>, %arg8: memref<3x32x32xf32, #tpu.memory_space<vmem>>, %arg9: memref<1x32xf32, #tpu.memory_space<vmem>>, %arg10: memref<3x32x32xf32, #tpu.memory_space<vmem>>, %arg11: memref<1x32xf32, #tpu.memory_space<vmem>>, %arg12: memref<3x32x32xf32, #tpu.memory_space<vmem>>, %arg13: memref<1x32x32xf32, #tpu.memory_space<vmem>>, %arg14: memref<3x32x32xf32, #tpu.memory_space<vmem>>, %arg15: memref<1x32x32xf32, #tpu.memory_space<vmem>>, %arg16: memref<3x32x16xf32, #tpu.memory_space<vmem>>, %arg17: memref<1x16xf32, #tpu.memory_space<vmem>>, %arg18: memref<32x16xf32, #tpu.memory_space<vmem>>, %arg19: memref<16x32xf32, #tpu.memory_space<vmem>>, %arg20: memref<1x32xf32, #tpu.memory_space<vmem>>, %arg21: memref<3x16x32xf32, #tpu.memory_space<vmem>>, %arg22: memref<1x32xf32, #tpu.memory_space<vmem>>, %arg23: memref<3x32x32xf32, #tpu.memory_space<vmem>>, %arg24: memref<1x32x32xf32, #tpu.memory_space<vmem>>, %arg25: memref<3x32x32xf32, #tpu.memory_space<vmem>>, %arg26: memref<1x32x32xf32, #tpu.memory_space<vmem>>, %arg27: memref<3x32x32xf32, #tpu.memory_space<vmem>>, %arg28: memref<1x32xf32, #tpu.memory_space<vmem>>, %arg29: memref<3x32x32xf32, #tpu.memory_space<vmem>>, %arg30: memref<1x32xf32, #tpu.memory_space<vmem>>, %arg31: memref<2x32x8xf32, #tpu.memory_space<vmem>>, %arg32: memref<1x8xf32, #tpu.memory_space<vmem>>, %arg33: memref<1x21x8xf32, #tpu.memory_space<vmem>>, %arg34: memref<1x9x16xf32, #tpu.memory_space<vmem>>, %arg35: memref<1x9x16xf32, #tpu.memory_space<vmem>>, %arg36: memref<1x9x32xf32, #tpu.memory_space<vmem>>, %arg37: memref<24x32xf32, #tpu.memory_space<vmem>>) attributes {dimension_semantics = [#tpu.dimension_semantics<parallel>], iteration_bounds = array<i64: 2>, scalar_prefetch = 0 : i64, scratch_operands = 1 : i64, tpu.core_type = #tpu.core_type<tc>, window_params = [{transform_indices = @transform_0, window_bounds = array<i64: 1, 16, 8>}, {pipeline_mode = #tpu.pipeline_mode<synchronous>, transform_indices = @transform_1, window_bounds = array<i64: 3, 8, 32>}, {pipeline_mode = #tpu.pipeline_mode<synchronous>, transform_indices = @transform_2, window_bounds = array<i64: 1, 32>}, {pipeline_mode = #tpu.pipeline_mode<synchronous>, transform_indices = @transform_3, window_bounds = array<i64: 3, 32, 32>}, {pipeline_mode = #tpu.pipeline_mode<synchronous>, transform_indices = @transform_4, window_bounds = array<i64: 1, 32>}, {pipeline_mode = #tpu.pipeline_mode<synchronous>, transform_indices = @transform_5, window_bounds = array<i64: 4, 32, 32>}, {pipeline_mode = #tpu.pipeline_mode<synchronous>, transform_indices = @transform_6, window_bounds = array<i64: 1, 32>}, {pipeline_mode = #tpu.pipeline_mode<synchronous>, transform_indices = @transform_7, window_bounds = array<i64: 3, 32, 32>}, {pipeline_mode = #tpu.pipeline_mode<synchronous>, transform_indices = @transform_8, window_bounds = array<i64: 1, 32>}, {pipeline_mode = #tpu.pipeline_mode<synchronous>, transform_indices = @transform_9, window_bounds = array<i64: 3, 32, 32>}, {pipeline_mode = #tpu.pipeline_mode<synchronous>, transform_indices = @transform_10, window_bounds = array<i64: 1, 32>}, {pipeline_mode = #tpu.pipeline_mode<synchronous>, transform_indices = @transform_11, window_bounds = array<i64: 3, 32, 32>}, {pipeline_mode = #tpu.pipeline_mode<synchronous>, transform_indices = @transform_12, window_bounds = array<i64: 1, 32, 32>}, {pipeline_mode = #tpu.pipeline_mode<synchronous>, transform_indices = @transform_13, window_bounds = array<i64: 3, 32, 32>}, {pipeline_mode = #tpu.pipeline_mode<synchronous>, transform_indices = @transform_14, window_bounds = array<i64: 1, 32, 32>}, {pipeline_mode = #tpu.pipeline_mode<synchronous>, transform_indices = @transform_15, window_bounds = array<i64: 3, 32, 16>}, {pipeline_mode = #tpu.pipeline_mode<synchronous>, transform_indices = @transform_16, window_bounds = array<i64: 1, 16>}, {pipeline_mode = #tpu.pipeline_mode<synchronous>, transform_indices = @transform_17, window_bounds = array<i64: 32, 16>}, {pipeline_mode = #tpu.pipeline_mode<synchronous>, transform_indices = @transform_18, window_bounds = array<i64: 16, 32>}, {pipeline_mode = #tpu.pipeline_mode<synchronous>, transform_indices = @transform_19, window_bounds = array<i64: 1, 32>}, {pipeline_mode = #tpu.pipeline_mode<synchronous>, transform_indices = @transform_20, window_bounds = array<i64: 3, 16, 32>}, {pipeline_mode = #tpu.pipeline_mode<synchronous>, transform_indices = @transform_21, window_bounds = array<i64: 1, 32>}, {pipeline_mode = #tpu.pipeline_mode<synchronous>, transform_indices = @transform_22, window_bounds = array<i64: 3, 32, 32>}, {pipeline_mode = #tpu.pipeline_mode<synchronous>, transform_indices = @transform_23, window_bounds = array<i64: 1, 32, 32>}, {pipeline_mode = #tpu.pipeline_mode<synchronous>, transform_indices = @transform_24, window_bounds = array<i64: 3, 32, 32>}, {pipeline_mode = #tpu.pipeline_mode<synchronous>, transform_indices = @transform_25, window_bounds = array<i64: 1, 32, 32>}, {pipeline_mode = #tpu.pipeline_mode<synchronous>, transform_indices = @transform_26, window_bounds = array<i64: 3, 32, 32>}, {pipeline_mode = #tpu.pipeline_mode<synchronous>, transform_indices = @transform_27, window_bounds = array<i64: 1, 32>}, {pipeline_mode = #tpu.pipeline_mode<synchronous>, transform_indices = @transform_28, window_bounds = array<i64: 3, 32, 32>}, {pipeline_mode = #tpu.pipeline_mode<synchronous>, transform_indices = @transform_29, window_bounds = array<i64: 1, 32>}, {pipeline_mode = #tpu.pipeline_mode<synchronous>, transform_indices = @transform_30, window_bounds = array<i64: 2, 32, 8>}, {pipeline_mode = #tpu.pipeline_mode<synchronous>, transform_indices = @transform_31, window_bounds = array<i64: 1, 8>}, {transform_indices = @transform_32, window_bounds = array<i64: 1, 21, 8>}, {transform_indices = @transform_33, window_bounds = array<i64: 1, 9, 16>}, {transform_indices = @transform_34, window_bounds = array<i64: 1, 9, 16>}, {transform_indices = @transform_35, window_bounds = array<i64: 1, 9, 32>}]} {
    %c0 = arith.constant 0 : index
    %c0_0 = arith.constant 0 : index
    %c0_1 = arith.constant 0 : index
    %0 = vector.load %arg1[%c0, %c0_0, %c0_1] : memref<1x16x8xf32, #tpu.memory_space<vmem>>, vector<1x16x8xf32>
    %1 = vector.shape_cast %0 : vector<1x16x8xf32> to vector<16x8xf32>
    %cst = arith.constant 0.000000e+00 : f32
    %2 = vector.broadcast %cst : f32 to vector<1x8xf32>
    %c0_2 = arith.constant 0 : index
    %c0_3 = arith.constant 0 : index
    %3 = vector.load %arg37[%c0_2, %c0_3] : memref<24x32xf32, #tpu.memory_space<vmem>>, vector<1x8xf32>
    tpu.vector_store %arg37[%c0_2, %c0_3], %2 {strides = array<i32>} : memref<24x32xf32, #tpu.memory_space<vmem>>, vector<1x8xf32>,
    %c17 = arith.constant 17 : index
    %c0_4 = arith.constant 0 : index
    %4 = vector.load %arg37[%c17, %c0_4] : memref<24x32xf32, #tpu.memory_space<vmem>>, vector<1x8xf32>
    tpu.vector_store %arg37[%c17, %c0_4], %2 {strides = array<i32>} : memref<24x32xf32, #tpu.memory_space<vmem>>, vector<1x8xf32>,
    %c1 = arith.constant 1 : index
    %c0_5 = arith.constant 0 : index
    %5 = vector.load %arg37[%c1, %c0_5] : memref<24x32xf32, #tpu.memory_space<vmem>>, vector<16x8xf32>
    tpu.vector_store %arg37[%c1, %c0_5], %1 {strides = array<i32>} : memref<24x32xf32, #tpu.memory_space<vmem>>, vector<16x8xf32>,
    %cst_6 = arith.constant 0.000000e+00 : f32
    %6 = vector.broadcast %cst_6 : f32 to vector<16x32xf32>
    %c0_7 = arith.constant 0 : index
    %c0_8 = arith.constant 0 : index
    %7 = vector.load %arg37[%c0_7, %c0_8] : memref<24x32xf32, #tpu.memory_space<vmem>>, vector<16x8xf32>
    %c0_9 = arith.constant 0 : index
    %c0_10 = arith.constant 0 : index
    %c0_11 = arith.constant 0 : index
    %8 = vector.load %arg2[%c0_9, %c0_10, %c0_11] : memref<3x8x32xf32, #tpu.memory_space<vmem>>, vector<1x8x32xf32>
    %9 = vector.shape_cast %8 : vector<1x8x32xf32> to vector<8x32xf32>
    %cst_12 = arith.constant dense<0.000000e+00> : vector<16x32xf32>
    %10 = tpu.matmul %7, %9, %cst_12 {dimension_numbers = #tpu.dot_dimension_numbers<[1], [0], [0], [1], [0, 0, 1, 1], [], []>} : vector<16x8xf32>, vector<8x32xf32>, vector<16x32xf32> -> vector<16x32xf32>
    %11 = arith.addf %6, %10 : vector<16x32xf32>
    %c1_13 = arith.constant 1 : index
    %c0_14 = arith.constant 0 : index
    %12 = vector.load %arg37[%c1_13, %c0_14] : memref<24x32xf32, #tpu.memory_space<vmem>>, vector<16x8xf32>
    %c1_15 = arith.constant 1 : index
    %c0_16 = arith.constant 0 : index
    %c0_17 = arith.constant 0 : index
    %13 = vector.load %arg2[%c1_15, %c0_16, %c0_17] : memref<3x8x32xf32, #tpu.memory_space<vmem>>, vector<1x8x32xf32>
    %14 = vector.shape_cast %13 : vector<1x8x32xf32> to vector<8x32xf32>
    %cst_18 = arith.constant dense<0.000000e+00> : vector<16x32xf32>
    %15 = tpu.matmul %12, %14, %cst_18 {dimension_numbers = #tpu.dot_dimension_numbers<[1], [0], [0], [1], [0, 0, 1, 1], [], []>} : vector<16x8xf32>, vector<8x32xf32>, vector<16x32xf32> -> vector<16x32xf32>
    %16 = arith.addf %11, %15 : vector<16x32xf32>
    %c2 = arith.constant 2 : index
    %c0_19 = arith.constant 0 : index
    %17 = vector.load %arg37[%c2, %c0_19] : memref<24x32xf32, #tpu.memory_space<vmem>>, vector<16x8xf32>
    %c2_20 = arith.constant 2 : index
    %c0_21 = arith.constant 0 : index
    %c0_22 = arith.constant 0 : index
    %18 = vector.load %arg2[%c2_20, %c0_21, %c0_22] : memref<3x8x32xf32, #tpu.memory_space<vmem>>, vector<1x8x32xf32>
    %19 = vector.shape_cast %18 : vector<1x8x32xf32> to vector<8x32xf32>
    %cst_23 = arith.constant dense<0.000000e+00> : vector<16x32xf32>
    %20 = tpu.matmul %17, %19, %cst_23 {dimension_numbers = #tpu.dot_dimension_numbers<[1], [0], [0], [1], [0, 0, 1, 1], [], []>} : vector<16x8xf32>, vector<8x32xf32>, vector<16x32xf32> -> vector<16x32xf32>
    %21 = arith.addf %16, %20 : vector<16x32xf32>
    %c0_24 = arith.constant 0 : index
    %c0_25 = arith.constant 0 : index
    %22 = vector.load %arg3[%c0_24, %c0_25] : memref<1x32xf32, #tpu.memory_space<vmem>>, vector<1x32xf32>
    %23 = vector.broadcast %22 : vector<1x32xf32> to vector<16x32xf32>
    %24 = arith.addf %21, %23 : vector<16x32xf32>
    %cst_26 = arith.constant 0.000000e+00 : f32
    %25 = vector.broadcast %cst_26 : f32 to vector<16x32xf32>
    %26 = arith.maximumf %24, %25 : vector<16x32xf32>
    %cst_27 = arith.constant 0.000000e+00 : f32
    %27 = vector.broadcast %cst_27 : f32 to vector<1x32xf32>
    %c0_28 = arith.constant 0 : index
    %c0_29 = arith.constant 0 : index
    %28 = vector.load %arg37[%c0_28, %c0_29] : memref<24x32xf32, #tpu.memory_space<vmem>>, vector<1x32xf32>
    tpu.vector_store %arg37[%c0_28, %c0_29], %27 {strides = array<i32>} : memref<24x32xf32, #tpu.memory_space<vmem>>, vector<1x32xf32>,
    %c17_30 = arith.constant 17 : index
    %c0_31 = arith.constant 0 : index
    %29 = vector.load %arg37[%c17_30, %c0_31] : memref<24x32xf32, #tpu.memory_space<vmem>>, vector<1x32xf32>
    tpu.vector_store %arg37[%c17_30, %c0_31], %27 {strides = array<i32>} : memref<24x32xf32, #tpu.memory_space<vmem>>, vector<1x32xf32>,
    %c1_32 = arith.constant 1 : index
    %c0_33 = arith.constant 0 : index
    %30 = vector.load %arg37[%c1_32, %c0_33] : memref<24x32xf32, #tpu.memory_space<vmem>>, vector<16x32xf32>
    tpu.vector_store %arg37[%c1_32, %c0_33], %26 {strides = array<i32>} : memref<24x32xf32, #tpu.memory_space<vmem>>, vector<16x32xf32>,
    %cst_34 = arith.constant 0.000000e+00 : f32
    %31 = vector.broadcast %cst_34 : f32 to vector<16x32xf32>
    %c0_35 = arith.constant 0 : index
    %c0_36 = arith.constant 0 : index
    %32 = vector.load %arg37[%c0_35, %c0_36] : memref<24x32xf32, #tpu.memory_space<vmem>>, vector<16x32xf32>
    %c0_37 = arith.constant 0 : index
    %c0_38 = arith.constant 0 : index
    %c0_39 = arith.constant 0 : index
    %33 = vector.load %arg4[%c0_37, %c0_38, %c0_39] : memref<3x32x32xf32, #tpu.memory_space<vmem>>, vector<1x32x32xf32>
    %34 = vector.shape_cast %33 : vector<1x32x32xf32> to vector<32x32xf32>
    %cst_40 = arith.constant dense<0.000000e+00> : vector<16x32xf32>
    %35 = tpu.matmul %32, %34, %cst_40 {dimension_numbers = #tpu.dot_dimension_numbers<[1], [0], [0], [1], [0, 0, 1, 1], [], []>} : vector<16x32xf32>, vector<32x32xf32>, vector<16x32xf32> -> vector<16x32xf32>
    %36 = arith.addf %31, %35 : vector<16x32xf32>
    %c1_41 = arith.constant 1 : index
    %c0_42 = arith.constant 0 : index
    %37 = vector.load %arg37[%c1_41, %c0_42] : memref<24x32xf32, #tpu.memory_space<vmem>>, vector<16x32xf32>
    %c1_43 = arith.constant 1 : index
    %c0_44 = arith.constant 0 : index
    %c0_45 = arith.constant 0 : index
    %38 = vector.load %arg4[%c1_43, %c0_44, %c0_45] : memref<3x32x32xf32, #tpu.memory_space<vmem>>, vector<1x32x32xf32>
    %39 = vector.shape_cast %38 : vector<1x32x32xf32> to vector<32x32xf32>
    %cst_46 = arith.constant dense<0.000000e+00> : vector<16x32xf32>
    %40 = tpu.matmul %37, %39, %cst_46 {dimension_numbers = #tpu.dot_dimension_numbers<[1], [0], [0], [1], [0, 0, 1, 1], [], []>} : vector<16x32xf32>, vector<32x32xf32>, vector<16x32xf32> -> vector<16x32xf32>
    %41 = arith.addf %36, %40 : vector<16x32xf32>
    %c2_47 = arith.constant 2 : index
    %c0_48 = arith.constant 0 : index
    %42 = vector.load %arg37[%c2_47, %c0_48] : memref<24x32xf32, #tpu.memory_space<vmem>>, vector<16x32xf32>
    %c2_49 = arith.constant 2 : index
    %c0_50 = arith.constant 0 : index
    %c0_51 = arith.constant 0 : index
    %43 = vector.load %arg4[%c2_49, %c0_50, %c0_51] : memref<3x32x32xf32, #tpu.memory_space<vmem>>, vector<1x32x32xf32>
    %44 = vector.shape_cast %43 : vector<1x32x32xf32> to vector<32x32xf32>
    %cst_52 = arith.constant dense<0.000000e+00> : vector<16x32xf32>
    %45 = tpu.matmul %42, %44, %cst_52 {dimension_numbers = #tpu.dot_dimension_numbers<[1], [0], [0], [1], [0, 0, 1, 1], [], []>} : vector<16x32xf32>, vector<32x32xf32>, vector<16x32xf32> -> vector<16x32xf32>
    %46 = arith.addf %41, %45 : vector<16x32xf32>
    %c0_53 = arith.constant 0 : index
    %c0_54 = arith.constant 0 : index
    %47 = vector.load %arg5[%c0_53, %c0_54] : memref<1x32xf32, #tpu.memory_space<vmem>>, vector<1x32xf32>
    %48 = vector.broadcast %47 : vector<1x32xf32> to vector<16x32xf32>
    %49 = arith.addf %46, %48 : vector<16x32xf32>
    %cst_55 = arith.constant 0.000000e+00 : f32
    %50 = vector.broadcast %cst_55 : f32 to vector<16x32xf32>
    %51 = arith.maximumf %49, %50 : vector<16x32xf32>
    %52 = arith.addf %51, %26 : vector<16x32xf32>
    %cst_56 = arith.constant 0.000000e+00 : f32
    %53 = vector.broadcast %cst_56 : f32 to vector<2x32xf32>
    %c0_57 = arith.constant 0 : index
    %c0_58 = arith.constant 0 : index
    %54 = vector.load %arg37[%c0_57, %c0_58] : memref<24x32xf32, #tpu.memory_space<vmem>>, vector<2x32xf32>
    tpu.vector_store %arg37[%c0_57, %c0_58], %53 {strides = array<i32>} : memref<24x32xf32, #tpu.memory_space<vmem>>, vector<2x32xf32>,
    %c18 = arith.constant 18 : index
    %c0_59 = arith.constant 0 : index
    %55 = vector.load %arg37[%c18, %c0_59] : memref<24x32xf32, #tpu.memory_space<vmem>>, vector<2x32xf32>
    tpu.vector_store %arg37[%c18, %c0_59], %53 {strides = array<i32>} : memref<24x32xf32, #tpu.memory_space<vmem>>, vector<2x32xf32>,
    %c2_60 = arith.constant 2 : index
    %c0_61 = arith.constant 0 : index
    %56 = vector.load %arg37[%c2_60, %c0_61] : memref<24x32xf32, #tpu.memory_space<vmem>>, vector<16x32xf32>
    tpu.vector_store %arg37[%c2_60, %c0_61], %52 {strides = array<i32>} : memref<24x32xf32, #tpu.memory_space<vmem>>, vector<16x32xf32>,
    %cst_62 = arith.constant 0.000000e+00 : f32
    %57 = vector.broadcast %cst_62 : f32 to vector<17x32xf32>
    %c0_63 = arith.constant 0 : index
    %c0_64 = arith.constant 0 : index
    %58 = vector.load %arg37[%c0_63, %c0_64] : memref<24x32xf32, #tpu.memory_space<vmem>>, vector<17x32xf32>
    %c0_65 = arith.constant 0 : index
    %c0_66 = arith.constant 0 : index
    %c0_67 = arith.constant 0 : index
    %59 = vector.load %arg6[%c0_65, %c0_66, %c0_67] : memref<4x32x32xf32, #tpu.memory_space<vmem>>, vector<1x32x32xf32>
    %60 = vector.shape_cast %59 : vector<1x32x32xf32> to vector<32x32xf32>
    %cst_68 = arith.constant dense<0.000000e+00> : vector<17x32xf32>
    %61 = tpu.matmul %58, %60, %cst_68 {dimension_numbers = #tpu.dot_dimension_numbers<[1], [0], [0], [1], [0, 0, 1, 1], [], []>} : vector<17x32xf32>, vector<32x32xf32>, vector<17x32xf32> -> vector<17x32xf32>
    %62 = arith.addf %57, %61 : vector<17x32xf32>
    %c1_69 = arith.constant 1 : index
    %c0_70 = arith.constant 0 : index
    %63 = vector.load %arg37[%c1_69, %c0_70] : memref<24x32xf32, #tpu.memory_space<vmem>>, vector<17x32xf32>
    %c1_71 = arith.constant 1 : index
    %c0_72 = arith.constant 0 : index
    %c0_73 = arith.constant 0 : index
    %64 = vector.load %arg6[%c1_71, %c0_72, %c0_73] : memref<4x32x32xf32, #tpu.memory_space<vmem>>, vector<1x32x32xf32>
    %65 = vector.shape_cast %64 : vector<1x32x32xf32> to vector<32x32xf32>
    %cst_74 = arith.constant dense<0.000000e+00> : vector<17x32xf32>
    %66 = tpu.matmul %63, %65, %cst_74 {dimension_numbers = #tpu.dot_dimension_numbers<[1], [0], [0], [1], [0, 0, 1, 1], [], []>} : vector<17x32xf32>, vector<32x32xf32>, vector<17x32xf32> -> vector<17x32xf32>
    %67 = arith.addf %62, %66 : vector<17x32xf32>
    %c2_75 = arith.constant 2 : index
    %c0_76 = arith.constant 0 : index
    %68 = vector.load %arg37[%c2_75, %c0_76] : memref<24x32xf32, #tpu.memory_space<vmem>>, vector<17x32xf32>
    %c2_77 = arith.constant 2 : index
    %c0_78 = arith.constant 0 : index
    %c0_79 = arith.constant 0 : index
    %69 = vector.load %arg6[%c2_77, %c0_78, %c0_79] : memref<4x32x32xf32, #tpu.memory_space<vmem>>, vector<1x32x32xf32>
    %70 = vector.shape_cast %69 : vector<1x32x32xf32> to vector<32x32xf32>
    %cst_80 = arith.constant dense<0.000000e+00> : vector<17x32xf32>
    %71 = tpu.matmul %68, %70, %cst_80 {dimension_numbers = #tpu.dot_dimension_numbers<[1], [0], [0], [1], [0, 0, 1, 1], [], []>} : vector<17x32xf32>, vector<32x32xf32>, vector<17x32xf32> -> vector<17x32xf32>
    %72 = arith.addf %67, %71 : vector<17x32xf32>
    %c3 = arith.constant 3 : index
    %c0_81 = arith.constant 0 : index
    %73 = vector.load %arg37[%c3, %c0_81] : memref<24x32xf32, #tpu.memory_space<vmem>>, vector<17x32xf32>
    %c3_82 = arith.constant 3 : index
    %c0_83 = arith.constant 0 : index
    %c0_84 = arith.constant 0 : index
    %74 = vector.load %arg6[%c3_82, %c0_83, %c0_84] : memref<4x32x32xf32, #tpu.memory_space<vmem>>, vector<1x32x32xf32>
    %75 = vector.shape_cast %74 : vector<1x32x32xf32> to vector<32x32xf32>
    %cst_85 = arith.constant dense<0.000000e+00> : vector<17x32xf32>
    %76 = tpu.matmul %73, %75, %cst_85 {dimension_numbers = #tpu.dot_dimension_numbers<[1], [0], [0], [1], [0, 0, 1, 1], [], []>} : vector<17x32xf32>, vector<32x32xf32>, vector<17x32xf32> -> vector<17x32xf32>
    %77 = arith.addf %72, %76 : vector<17x32xf32>
    %c0_86 = arith.constant 0 : index
    %c0_87 = arith.constant 0 : index
    %78 = vector.load %arg7[%c0_86, %c0_87] : memref<1x32xf32, #tpu.memory_space<vmem>>, vector<1x32xf32>
    %79 = vector.broadcast %78 : vector<1x32xf32> to vector<17x32xf32>
    %80 = arith.addf %77, %79 : vector<17x32xf32>
    %c0_88 = arith.constant 0 : index
    %c0_89 = arith.constant 0 : index
    %81 = vector.load %arg37[%c0_88, %c0_89] : memref<24x32xf32, #tpu.memory_space<vmem>>, vector<17x32xf32>
    tpu.vector_store %arg37[%c0_88, %c0_89], %80 {strides = array<i32>} : memref<24x32xf32, #tpu.memory_space<vmem>>, vector<17x32xf32>,
    %cst_90 = arith.constant 0.000000e+00 : f32
    %82 = vector.broadcast %cst_90 : f32 to vector<7x32xf32>
    %c17_91 = arith.constant 17 : index
    %c0_92 = arith.constant 0 : index
    %83 = vector.load %arg37[%c17_91, %c0_92] : memref<24x32xf32, #tpu.memory_space<vmem>>, vector<7x32xf32>
    tpu.vector_store %arg37[%c17_91, %c0_92], %82 {strides = array<i32>} : memref<24x32xf32, #tpu.memory_space<vmem>>, vector<7x32xf32>,
    %c0_93 = arith.constant 0 : index
    %c0_94 = arith.constant 0 : index
    %84 = vector.load %arg37[%c0_93, %c0_94] : memref<24x32xf32, #tpu.memory_space<vmem>>, vector<24x32xf32>
    %85 = tpu.iota {dimensions = array<i32: 0>} : vector<9x24xi32>
    %86 = tpu.iota {dimensions = array<i32: 1>} : vector<9x24xi32>
    %c2_i32 = arith.constant 2 : i32
    %87 = vector.broadcast %c2_i32 : i32 to vector<9x24xi32>
    %88 = arith.muli %87, %85 : vector<9x24xi32>
    %89 = arith.cmpi eq, %86, %88 : vector<9x24xi32>
    %90 = arith.extui %89 : vector<9x24xi1> to vector<9x24xi32>
    %91 = arith.sitofp %90 : vector<9x24xi32> to vector<9x24xf32>
    %cst_95 = arith.constant dense<0.000000e+00> : vector<9x32xf32>
    %92 = tpu.matmul %91, %84, %cst_95 {dimension_numbers = #tpu.dot_dimension_numbers<[1], [0], [0], [1], [0, 0, 1, 1], [], []>} : vector<9x24xf32>, vector<24x32xf32>, vector<9x32xf32> -> vector<9x32xf32>
    %cst_96 = arith.constant 0.000000e+00 : f32
    %93 = vector.broadcast %cst_96 : f32 to vector<9x32xf32>
    %94 = arith.maximumf %92, %93 : vector<9x32xf32>
    %cst_97 = arith.constant 0.000000e+00 : f32
    %95 = vector.broadcast %cst_97 : f32 to vector<1x32xf32>
    %c0_98 = arith.constant 0 : index
    %c0_99 = arith.constant 0 : index
    %96 = vector.load %arg37[%c0_98, %c0_99] : memref<24x32xf32, #tpu.memory_space<vmem>>, vector<1x32xf32>
    tpu.vector_store %arg37[%c0_98, %c0_99], %95 {strides = array<i32>} : memref<24x32xf32, #tpu.memory_space<vmem>>, vector<1x32xf32>,
    %c10 = arith.constant 10 : index
    %c0_100 = arith.constant 0 : index
    %97 = vector.load %arg37[%c10, %c0_100] : memref<24x32xf32, #tpu.memory_space<vmem>>, vector<1x32xf32>
    tpu.vector_store %arg37[%c10, %c0_100], %95 {strides = array<i32>} : memref<24x32xf32, #tpu.memory_space<vmem>>, vector<1x32xf32>,
    %c1_101 = arith.constant 1 : index
    %c0_102 = arith.constant 0 : index
    %98 = vector.load %arg37[%c1_101, %c0_102] : memref<24x32xf32, #tpu.memory_space<vmem>>, vector<9x32xf32>
    tpu.vector_store %arg37[%c1_101, %c0_102], %94 {strides = array<i32>} : memref<24x32xf32, #tpu.memory_space<vmem>>, vector<9x32xf32>,
    %cst_103 = arith.constant 0.000000e+00 : f32
    %99 = vector.broadcast %cst_103 : f32 to vector<9x32xf32>
    %c0_104 = arith.constant 0 : index
    %c0_105 = arith.constant 0 : index
    %100 = vector.load %arg37[%c0_104, %c0_105] : memref<24x32xf32, #tpu.memory_space<vmem>>, vector<9x32xf32>
    %c0_106 = arith.constant 0 : index
    %c0_107 = arith.constant 0 : index
    %c0_108 = arith.constant 0 : index
    %101 = vector.load %arg8[%c0_106, %c0_107, %c0_108] : memref<3x32x32xf32, #tpu.memory_space<vmem>>, vector<1x32x32xf32>
    %102 = vector.shape_cast %101 : vector<1x32x32xf32> to vector<32x32xf32>
    %cst_109 = arith.constant dense<0.000000e+00> : vector<9x32xf32>
    %103 = tpu.matmul %100, %102, %cst_109 {dimension_numbers = #tpu.dot_dimension_numbers<[1], [0], [0], [1], [0, 0, 1, 1], [], []>} : vector<9x32xf32>, vector<32x32xf32>, vector<9x32xf32> -> vector<9x32xf32>
    %104 = arith.addf %99, %103 : vector<9x32xf32>
    %c1_110 = arith.constant 1 : index
    %c0_111 = arith.constant 0 : index
    %105 = vector.load %arg37[%c1_110, %c0_111] : memref<24x32xf32, #tpu.memory_space<vmem>>, vector<9x32xf32>
    %c1_112 = arith.constant 1 : index
    %c0_113 = arith.constant 0 : index
    %c0_114 = arith.constant 0 : index
    %106 = vector.load %arg8[%c1_112, %c0_113, %c0_114] : memref<3x32x32xf32, #tpu.memory_space<vmem>>, vector<1x32x32xf32>
    %107 = vector.shape_cast %106 : vector<1x32x32xf32> to vector<32x32xf32>
    %cst_115 = arith.constant dense<0.000000e+00> : vector<9x32xf32>
    %108 = tpu.matmul %105, %107, %cst_115 {dimension_numbers = #tpu.dot_dimension_numbers<[1], [0], [0], [1], [0, 0, 1, 1], [], []>} : vector<9x32xf32>, vector<32x32xf32>, vector<9x32xf32> -> vector<9x32xf32>
    %109 = arith.addf %104, %108 : vector<9x32xf32>
    %c2_116 = arith.constant 2 : index
    %c0_117 = arith.constant 0 : index
    %110 = vector.load %arg37[%c2_116, %c0_117] : memref<24x32xf32, #tpu.memory_space<vmem>>, vector<9x32xf32>
    %c2_118 = arith.constant 2 : index
    %c0_119 = arith.constant 0 : index
    %c0_120 = arith.constant 0 : index
    %111 = vector.load %arg8[%c2_118, %c0_119, %c0_120] : memref<3x32x32xf32, #tpu.memory_space<vmem>>, vector<1x32x32xf32>
    %112 = vector.shape_cast %111 : vector<1x32x32xf32> to vector<32x32xf32>
    %cst_121 = arith.constant dense<0.000000e+00> : vector<9x32xf32>
    %113 = tpu.matmul %110, %112, %cst_121 {dimension_numbers = #tpu.dot_dimension_numbers<[1], [0], [0], [1], [0, 0, 1, 1], [], []>} : vector<9x32xf32>, vector<32x32xf32>, vector<9x32xf32> -> vector<9x32xf32>
    %114 = arith.addf %109, %113 : vector<9x32xf32>
    %c0_122 = arith.constant 0 : index
    %c0_123 = arith.constant 0 : index
    %115 = vector.load %arg9[%c0_122, %c0_123] : memref<1x32xf32, #tpu.memory_space<vmem>>, vector<1x32xf32>
    %116 = vector.broadcast %115 : vector<1x32xf32> to vector<9x32xf32>
    %117 = arith.addf %114, %116 : vector<9x32xf32>
    %cst_124 = arith.constant 0.000000e+00 : f32
    %118 = vector.broadcast %cst_124 : f32 to vector<9x32xf32>
    %119 = arith.maximumf %117, %118 : vector<9x32xf32>
    %120 = arith.addf %119, %94 : vector<9x32xf32>
    %cst_125 = arith.constant 0.000000e+00 : f32
    %121 = vector.broadcast %cst_125 : f32 to vector<1x32xf32>
    %c0_126 = arith.constant 0 : index
    %c0_127 = arith.constant 0 : index
    %122 = vector.load %arg37[%c0_126, %c0_127] : memref<24x32xf32, #tpu.memory_space<vmem>>, vector<1x32xf32>
    tpu.vector_store %arg37[%c0_126, %c0_127], %121 {strides = array<i32>} : memref<24x32xf32, #tpu.memory_space<vmem>>, vector<1x32xf32>,
    %c10_128 = arith.constant 10 : index
    %c0_129 = arith.constant 0 : index
    %123 = vector.load %arg37[%c10_128, %c0_129] : memref<24x32xf32, #tpu.memory_space<vmem>>, vector<1x32xf32>
    tpu.vector_store %arg37[%c10_128, %c0_129], %121 {strides = array<i32>} : memref<24x32xf32, #tpu.memory_space<vmem>>, vector<1x32xf32>,
    %c1_130 = arith.constant 1 : index
    %c0_131 = arith.constant 0 : index
    %124 = vector.load %arg37[%c1_130, %c0_131] : memref<24x32xf32, #tpu.memory_space<vmem>>, vector<9x32xf32>
    tpu.vector_store %arg37[%c1_130, %c0_131], %120 {strides = array<i32>} : memref<24x32xf32, #tpu.memory_space<vmem>>, vector<9x32xf32>,
    %cst_132 = arith.constant 0.000000e+00 : f32
    %125 = vector.broadcast %cst_132 : f32 to vector<9x32xf32>
    %c0_133 = arith.constant 0 : index
    %c0_134 = arith.constant 0 : index
    %126 = vector.load %arg37[%c0_133, %c0_134] : memref<24x32xf32, #tpu.memory_space<vmem>>, vector<9x32xf32>
    %c0_135 = arith.constant 0 : index
    %c0_136 = arith.constant 0 : index
    %c0_137 = arith.constant 0 : index
    %127 = vector.load %arg10[%c0_135, %c0_136, %c0_137] : memref<3x32x32xf32, #tpu.memory_space<vmem>>, vector<1x32x32xf32>
    %128 = vector.shape_cast %127 : vector<1x32x32xf32> to vector<32x32xf32>
    %cst_138 = arith.constant dense<0.000000e+00> : vector<9x32xf32>
    %129 = tpu.matmul %126, %128, %cst_138 {dimension_numbers = #tpu.dot_dimension_numbers<[1], [0], [0], [1], [0, 0, 1, 1], [], []>} : vector<9x32xf32>, vector<32x32xf32>, vector<9x32xf32> -> vector<9x32xf32>
    %130 = arith.addf %125, %129 : vector<9x32xf32>
    %c1_139 = arith.constant 1 : index
    %c0_140 = arith.constant 0 : index
    %131 = vector.load %arg37[%c1_139, %c0_140] : memref<24x32xf32, #tpu.memory_space<vmem>>, vector<9x32xf32>
    %c1_141 = arith.constant 1 : index
    %c0_142 = arith.constant 0 : index
    %c0_143 = arith.constant 0 : index
    %132 = vector.load %arg10[%c1_141, %c0_142, %c0_143] : memref<3x32x32xf32, #tpu.memory_space<vmem>>, vector<1x32x32xf32>
    %133 = vector.shape_cast %132 : vector<1x32x32xf32> to vector<32x32xf32>
    %cst_144 = arith.constant dense<0.000000e+00> : vector<9x32xf32>
    %134 = tpu.matmul %131, %133, %cst_144 {dimension_numbers = #tpu.dot_dimension_numbers<[1], [0], [0], [1], [0, 0, 1, 1], [], []>} : vector<9x32xf32>, vector<32x32xf32>, vector<9x32xf32> -> vector<9x32xf32>
    %135 = arith.addf %130, %134 : vector<9x32xf32>
    %c2_145 = arith.constant 2 : index
    %c0_146 = arith.constant 0 : index
    %136 = vector.load %arg37[%c2_145, %c0_146] : memref<24x32xf32, #tpu.memory_space<vmem>>, vector<9x32xf32>
    %c2_147 = arith.constant 2 : index
    %c0_148 = arith.constant 0 : index
    %c0_149 = arith.constant 0 : index
    %137 = vector.load %arg10[%c2_147, %c0_148, %c0_149] : memref<3x32x32xf32, #tpu.memory_space<vmem>>, vector<1x32x32xf32>
    %138 = vector.shape_cast %137 : vector<1x32x32xf32> to vector<32x32xf32>
    %cst_150 = arith.constant dense<0.000000e+00> : vector<9x32xf32>
    %139 = tpu.matmul %136, %138, %cst_150 {dimension_numbers = #tpu.dot_dimension_numbers<[1], [0], [0], [1], [0, 0, 1, 1], [], []>} : vector<9x32xf32>, vector<32x32xf32>, vector<9x32xf32> -> vector<9x32xf32>
    %140 = arith.addf %135, %139 : vector<9x32xf32>
    %c0_151 = arith.constant 0 : index
    %c0_152 = arith.constant 0 : index
    %141 = vector.load %arg11[%c0_151, %c0_152] : memref<1x32xf32, #tpu.memory_space<vmem>>, vector<1x32xf32>
    %142 = vector.broadcast %141 : vector<1x32xf32> to vector<9x32xf32>
    %143 = arith.addf %140, %142 : vector<9x32xf32>
    %cst_153 = arith.constant 0.000000e+00 : f32
    %144 = vector.broadcast %cst_153 : f32 to vector<9x32xf32>
    %145 = arith.maximumf %143, %144 : vector<9x32xf32>
    %146 = arith.addf %145, %120 : vector<9x32xf32>
    %cst_154 = arith.constant 0.000000e+00 : f32
    %147 = vector.broadcast %cst_154 : f32 to vector<9x32xf32>
    %148 = arith.maximumf %146, %147 : vector<9x32xf32>
    %cst_155 = arith.constant 0.000000e+00 : f32
    %149 = vector.broadcast %cst_155 : f32 to vector<1x32xf32>
    %c0_156 = arith.constant 0 : index
    %c0_157 = arith.constant 0 : index
    %150 = vector.load %arg37[%c0_156, %c0_157] : memref<24x32xf32, #tpu.memory_space<vmem>>, vector<1x32xf32>
    tpu.vector_store %arg37[%c0_156, %c0_157], %149 {strides = array<i32>} : memref<24x32xf32, #tpu.memory_space<vmem>>, vector<1x32xf32>,
    %c10_158 = arith.constant 10 : index
    %c0_159 = arith.constant 0 : index
    %151 = vector.load %arg37[%c10_158, %c0_159] : memref<24x32xf32, #tpu.memory_space<vmem>>, vector<1x32xf32>
    tpu.vector_store %arg37[%c10_158, %c0_159], %149 {strides = array<i32>} : memref<24x32xf32, #tpu.memory_space<vmem>>, vector<1x32xf32>,
    %c1_160 = arith.constant 1 : index
    %c0_161 = arith.constant 0 : index
    %152 = vector.load %arg37[%c1_160, %c0_161] : memref<24x32xf32, #tpu.memory_space<vmem>>, vector<9x32xf32>
    tpu.vector_store %arg37[%c1_160, %c0_161], %148 {strides = array<i32>} : memref<24x32xf32, #tpu.memory_space<vmem>>, vector<9x32xf32>,
    %cst_162 = arith.constant 0.000000e+00 : f32
    %153 = vector.broadcast %cst_162 : f32 to vector<9x32xf32>
    %c0_163 = arith.constant 0 : index
    %c0_164 = arith.constant 0 : index
    %154 = vector.load %arg37[%c0_163, %c0_164] : memref<24x32xf32, #tpu.memory_space<vmem>>, vector<9x32xf32>
    %c0_165 = arith.constant 0 : index
    %c0_166 = arith.constant 0 : index
    %c0_167 = arith.constant 0 : index
    %155 = vector.load %arg12[%c0_165, %c0_166, %c0_167] : memref<3x32x32xf32, #tpu.memory_space<vmem>>, vector<1x32x32xf32>
    %156 = vector.shape_cast %155 : vector<1x32x32xf32> to vector<32x32xf32>
    %cst_168 = arith.constant dense<0.000000e+00> : vector<9x32xf32>
    %157 = tpu.matmul %154, %156, %cst_168 {dimension_numbers = #tpu.dot_dimension_numbers<[1], [0], [0], [1], [0, 0, 1, 1], [], []>} : vector<9x32xf32>, vector<32x32xf32>, vector<9x32xf32> -> vector<9x32xf32>
    %158 = arith.addf %153, %157 : vector<9x32xf32>
    %c1_169 = arith.constant 1 : index
    %c0_170 = arith.constant 0 : index
    %159 = vector.load %arg37[%c1_169, %c0_170] : memref<24x32xf32, #tpu.memory_space<vmem>>, vector<9x32xf32>
    %c1_171 = arith.constant 1 : index
    %c0_172 = arith.constant 0 : index
    %c0_173 = arith.constant 0 : index
    %160 = vector.load %arg12[%c1_171, %c0_172, %c0_173] : memref<3x32x32xf32, #tpu.memory_space<vmem>>, vector<1x32x32xf32>
    %161 = vector.shape_cast %160 : vector<1x32x32xf32> to vector<32x32xf32>
    %cst_174 = arith.constant dense<0.000000e+00> : vector<9x32xf32>
    %162 = tpu.matmul %159, %161, %cst_174 {dimension_numbers = #tpu.dot_dimension_numbers<[1], [0], [0], [1], [0, 0, 1, 1], [], []>} : vector<9x32xf32>, vector<32x32xf32>, vector<9x32xf32> -> vector<9x32xf32>
    %163 = arith.addf %158, %162 : vector<9x32xf32>
    %c2_175 = arith.constant 2 : index
    %c0_176 = arith.constant 0 : index
    %164 = vector.load %arg37[%c2_175, %c0_176] : memref<24x32xf32, #tpu.memory_space<vmem>>, vector<9x32xf32>
    %c2_177 = arith.constant 2 : index
    %c0_178 = arith.constant 0 : index
    %c0_179 = arith.constant 0 : index
    %165 = vector.load %arg12[%c2_177, %c0_178, %c0_179] : memref<3x32x32xf32, #tpu.memory_space<vmem>>, vector<1x32x32xf32>
    %166 = vector.shape_cast %165 : vector<1x32x32xf32> to vector<32x32xf32>
    %cst_180 = arith.constant dense<0.000000e+00> : vector<9x32xf32>
    %167 = tpu.matmul %164, %166, %cst_180 {dimension_numbers = #tpu.dot_dimension_numbers<[1], [0], [0], [1], [0, 0, 1, 1], [], []>} : vector<9x32xf32>, vector<32x32xf32>, vector<9x32xf32> -> vector<9x32xf32>
    %168 = arith.addf %163, %167 : vector<9x32xf32>
    %cst_181 = arith.constant 0.000000e+00 : f32
    %169 = vector.broadcast %cst_181 : f32 to vector<9x32xf32>
    %170 = arith.maximumf %168, %169 : vector<9x32xf32>
    %c0_182 = arith.constant 0 : index
    %c0_183 = arith.constant 0 : index
    %c0_184 = arith.constant 0 : index
    %171 = vector.load %arg13[%c0_182, %c0_183, %c0_184] : memref<1x32x32xf32, #tpu.memory_space<vmem>>, vector<1x32x32xf32>
    %172 = vector.shape_cast %171 : vector<1x32x32xf32> to vector<32x32xf32>
    %cst_185 = arith.constant dense<0.000000e+00> : vector<9x32xf32>
    %173 = tpu.matmul %170, %172, %cst_185 {dimension_numbers = #tpu.dot_dimension_numbers<[1], [0], [0], [1], [0, 0, 1, 1], [], []>} : vector<9x32xf32>, vector<32x32xf32>, vector<9x32xf32> -> vector<9x32xf32>
    %174 = arith.addf %146, %173 : vector<9x32xf32>
    %cst_186 = arith.constant 0.000000e+00 : f32
    %175 = vector.broadcast %cst_186 : f32 to vector<9x32xf32>
    %176 = arith.maximumf %174, %175 : vector<9x32xf32>
    %cst_187 = arith.constant 0.000000e+00 : f32
    %177 = vector.broadcast %cst_187 : f32 to vector<1x32xf32>
    %c0_188 = arith.constant 0 : index
    %c0_189 = arith.constant 0 : index
    %178 = vector.load %arg37[%c0_188, %c0_189] : memref<24x32xf32, #tpu.memory_space<vmem>>, vector<1x32xf32>
    tpu.vector_store %arg37[%c0_188, %c0_189], %177 {strides = array<i32>} : memref<24x32xf32, #tpu.memory_space<vmem>>, vector<1x32xf32>,
    %c10_190 = arith.constant 10 : index
    %c0_191 = arith.constant 0 : index
    %179 = vector.load %arg37[%c10_190, %c0_191] : memref<24x32xf32, #tpu.memory_space<vmem>>, vector<1x32xf32>
    tpu.vector_store %arg37[%c10_190, %c0_191], %177 {strides = array<i32>} : memref<24x32xf32, #tpu.memory_space<vmem>>, vector<1x32xf32>,
    %c1_192 = arith.constant 1 : index
    %c0_193 = arith.constant 0 : index
    %180 = vector.load %arg37[%c1_192, %c0_193] : memref<24x32xf32, #tpu.memory_space<vmem>>, vector<9x32xf32>
    tpu.vector_store %arg37[%c1_192, %c0_193], %176 {strides = array<i32>} : memref<24x32xf32, #tpu.memory_space<vmem>>, vector<9x32xf32>,
    %cst_194 = arith.constant 0.000000e+00 : f32
    %181 = vector.broadcast %cst_194 : f32 to vector<9x32xf32>
    %c0_195 = arith.constant 0 : index
    %c0_196 = arith.constant 0 : index
    %182 = vector.load %arg37[%c0_195, %c0_196] : memref<24x32xf32, #tpu.memory_space<vmem>>, vector<9x32xf32>
    %c0_197 = arith.constant 0 : index
    %c0_198 = arith.constant 0 : index
    %c0_199 = arith.constant 0 : index
    %183 = vector.load %arg14[%c0_197, %c0_198, %c0_199] : memref<3x32x32xf32, #tpu.memory_space<vmem>>, vector<1x32x32xf32>
    %184 = vector.shape_cast %183 : vector<1x32x32xf32> to vector<32x32xf32>
    %cst_200 = arith.constant dense<0.000000e+00> : vector<9x32xf32>
    %185 = tpu.matmul %182, %184, %cst_200 {dimension_numbers = #tpu.dot_dimension_numbers<[1], [0], [0], [1], [0, 0, 1, 1], [], []>} : vector<9x32xf32>, vector<32x32xf32>, vector<9x32xf32> -> vector<9x32xf32>
    %186 = arith.addf %181, %185 : vector<9x32xf32>
    %c1_201 = arith.constant 1 : index
    %c0_202 = arith.constant 0 : index
    %187 = vector.load %arg37[%c1_201, %c0_202] : memref<24x32xf32, #tpu.memory_space<vmem>>, vector<9x32xf32>
    %c1_203 = arith.constant 1 : index
    %c0_204 = arith.constant 0 : index
    %c0_205 = arith.constant 0 : index
    %188 = vector.load %arg14[%c1_203, %c0_204, %c0_205] : memref<3x32x32xf32, #tpu.memory_space<vmem>>, vector<1x32x32xf32>
    %189 = vector.shape_cast %188 : vector<1x32x32xf32> to vector<32x32xf32>
    %cst_206 = arith.constant dense<0.000000e+00> : vector<9x32xf32>
    %190 = tpu.matmul %187, %189, %cst_206 {dimension_numbers = #tpu.dot_dimension_numbers<[1], [0], [0], [1], [0, 0, 1, 1], [], []>} : vector<9x32xf32>, vector<32x32xf32>, vector<9x32xf32> -> vector<9x32xf32>
    %191 = arith.addf %186, %190 : vector<9x32xf32>
    %c2_207 = arith.constant 2 : index
    %c0_208 = arith.constant 0 : index
    %192 = vector.load %arg37[%c2_207, %c0_208] : memref<24x32xf32, #tpu.memory_space<vmem>>, vector<9x32xf32>
    %c2_209 = arith.constant 2 : index
    %c0_210 = arith.constant 0 : index
    %c0_211 = arith.constant 0 : index
    %193 = vector.load %arg14[%c2_209, %c0_210, %c0_211] : memref<3x32x32xf32, #tpu.memory_space<vmem>>, vector<1x32x32xf32>
    %194 = vector.shape_cast %193 : vector<1x32x32xf32> to vector<32x32xf32>
    %cst_212 = arith.constant dense<0.000000e+00> : vector<9x32xf32>
    %195 = tpu.matmul %192, %194, %cst_212 {dimension_numbers = #tpu.dot_dimension_numbers<[1], [0], [0], [1], [0, 0, 1, 1], [], []>} : vector<9x32xf32>, vector<32x32xf32>, vector<9x32xf32> -> vector<9x32xf32>
    %196 = arith.addf %191, %195 : vector<9x32xf32>
    %cst_213 = arith.constant 0.000000e+00 : f32
    %197 = vector.broadcast %cst_213 : f32 to vector<9x32xf32>
    %198 = arith.maximumf %196, %197 : vector<9x32xf32>
    %c0_214 = arith.constant 0 : index
    %c0_215 = arith.constant 0 : index
    %c0_216 = arith.constant 0 : index
    %199 = vector.load %arg15[%c0_214, %c0_215, %c0_216] : memref<1x32x32xf32, #tpu.memory_space<vmem>>, vector<1x32x32xf32>
    %200 = vector.shape_cast %199 : vector<1x32x32xf32> to vector<32x32xf32>
    %cst_217 = arith.constant dense<0.000000e+00> : vector<9x32xf32>
    %201 = tpu.matmul %198, %200, %cst_217 {dimension_numbers = #tpu.dot_dimension_numbers<[1], [0], [0], [1], [0, 0, 1, 1], [], []>} : vector<9x32xf32>, vector<32x32xf32>, vector<9x32xf32> -> vector<9x32xf32>
    %202 = arith.addf %174, %201 : vector<9x32xf32>
    %cst_218 = arith.constant 0.000000e+00 : f32
    %203 = vector.broadcast %cst_218 : f32 to vector<9x32xf32>
    %204 = arith.maximumf %202, %203 : vector<9x32xf32>
    %205 = arith.addf %204, %146 : vector<9x32xf32>
    %cst_219 = arith.constant 0.000000e+00 : f32
    %206 = vector.broadcast %cst_219 : f32 to vector<1x32xf32>
    %c0_220 = arith.constant 0 : index
    %c0_221 = arith.constant 0 : index
    %207 = vector.load %arg37[%c0_220, %c0_221] : memref<24x32xf32, #tpu.memory_space<vmem>>, vector<1x32xf32>
    tpu.vector_store %arg37[%c0_220, %c0_221], %206 {strides = array<i32>} : memref<24x32xf32, #tpu.memory_space<vmem>>, vector<1x32xf32>,
    %c10_222 = arith.constant 10 : index
    %c0_223 = arith.constant 0 : index
    %208 = vector.load %arg37[%c10_222, %c0_223] : memref<24x32xf32, #tpu.memory_space<vmem>>, vector<1x32xf32>
    tpu.vector_store %arg37[%c10_222, %c0_223], %206 {strides = array<i32>} : memref<24x32xf32, #tpu.memory_space<vmem>>, vector<1x32xf32>,
    %c1_224 = arith.constant 1 : index
    %c0_225 = arith.constant 0 : index
    %209 = vector.load %arg37[%c1_224, %c0_225] : memref<24x32xf32, #tpu.memory_space<vmem>>, vector<9x32xf32>
    tpu.vector_store %arg37[%c1_224, %c0_225], %205 {strides = array<i32>} : memref<24x32xf32, #tpu.memory_space<vmem>>, vector<9x32xf32>,
    %cst_226 = arith.constant 0.000000e+00 : f32
    %210 = vector.broadcast %cst_226 : f32 to vector<9x16xf32>
    %c0_227 = arith.constant 0 : index
    %c0_228 = arith.constant 0 : index
    %211 = vector.load %arg37[%c0_227, %c0_228] : memref<24x32xf32, #tpu.memory_space<vmem>>, vector<9x32xf32>
    %c0_229 = arith.constant 0 : index
    %c0_230 = arith.constant 0 : index
    %c0_231 = arith.constant 0 : index
    %212 = vector.load %arg16[%c0_229, %c0_230, %c0_231] : memref<3x32x16xf32, #tpu.memory_space<vmem>>, vector<1x32x16xf32>
    %213 = vector.shape_cast %212 : vector<1x32x16xf32> to vector<32x16xf32>
    %cst_232 = arith.constant dense<0.000000e+00> : vector<9x16xf32>
    %214 = tpu.matmul %211, %213, %cst_232 {dimension_numbers = #tpu.dot_dimension_numbers<[1], [0], [0], [1], [0, 0, 1, 1], [], []>} : vector<9x32xf32>, vector<32x16xf32>, vector<9x16xf32> -> vector<9x16xf32>
    %215 = arith.addf %210, %214 : vector<9x16xf32>
    %c1_233 = arith.constant 1 : index
    %c0_234 = arith.constant 0 : index
    %216 = vector.load %arg37[%c1_233, %c0_234] : memref<24x32xf32, #tpu.memory_space<vmem>>, vector<9x32xf32>
    %c1_235 = arith.constant 1 : index
    %c0_236 = arith.constant 0 : index
    %c0_237 = arith.constant 0 : index
    %217 = vector.load %arg16[%c1_235, %c0_236, %c0_237] : memref<3x32x16xf32, #tpu.memory_space<vmem>>, vector<1x32x16xf32>
    %218 = vector.shape_cast %217 : vector<1x32x16xf32> to vector<32x16xf32>
    %cst_238 = arith.constant dense<0.000000e+00> : vector<9x16xf32>
    %219 = tpu.matmul %216, %218, %cst_238 {dimension_numbers = #tpu.dot_dimension_numbers<[1], [0], [0], [1], [0, 0, 1, 1], [], []>} : vector<9x32xf32>, vector<32x16xf32>, vector<9x16xf32> -> vector<9x16xf32>
    %220 = arith.addf %215, %219 : vector<9x16xf32>
    %c2_239 = arith.constant 2 : index
    %c0_240 = arith.constant 0 : index
    %221 = vector.load %arg37[%c2_239, %c0_240] : memref<24x32xf32, #tpu.memory_space<vmem>>, vector<9x32xf32>
    %c2_241 = arith.constant 2 : index
    %c0_242 = arith.constant 0 : index
    %c0_243 = arith.constant 0 : index
    %222 = vector.load %arg16[%c2_241, %c0_242, %c0_243] : memref<3x32x16xf32, #tpu.memory_space<vmem>>, vector<1x32x16xf32>
    %223 = vector.shape_cast %222 : vector<1x32x16xf32> to vector<32x16xf32>
    %cst_244 = arith.constant dense<0.000000e+00> : vector<9x16xf32>
    %224 = tpu.matmul %221, %223, %cst_244 {dimension_numbers = #tpu.dot_dimension_numbers<[1], [0], [0], [1], [0, 0, 1, 1], [], []>} : vector<9x32xf32>, vector<32x16xf32>, vector<9x16xf32> -> vector<9x16xf32>
    %225 = arith.addf %220, %224 : vector<9x16xf32>
    %c0_245 = arith.constant 0 : index
    %c0_246 = arith.constant 0 : index
    %226 = vector.load %arg17[%c0_245, %c0_246] : memref<1x16xf32, #tpu.memory_space<vmem>>, vector<1x16xf32>
    %227 = vector.broadcast %226 : vector<1x16xf32> to vector<9x16xf32>
    %228 = arith.addf %225, %227 : vector<9x16xf32>
    %c0_247 = arith.constant 0 : index
    %c0_248 = arith.constant 0 : index
    %229 = vector.load %arg19[%c0_247, %c0_248] : memref<16x32xf32, #tpu.memory_space<vmem>>, vector<16x32xf32>
    %cst_249 = arith.constant dense<0.000000e+00> : vector<9x32xf32>
    %230 = tpu.matmul %228, %229, %cst_249 {dimension_numbers = #tpu.dot_dimension_numbers<[1], [0], [0], [1], [0, 0, 1, 1], [], []>} : vector<9x16xf32>, vector<16x32xf32>, vector<9x32xf32> -> vector<9x32xf32>
    %c0_250 = arith.constant 0 : index
    %c0_251 = arith.constant 0 : index
    %231 = vector.load %arg20[%c0_250, %c0_251] : memref<1x32xf32, #tpu.memory_space<vmem>>, vector<1x32xf32>
    %cst_252 = arith.constant 2.000000e+00 : f32
    %232 = vector.broadcast %cst_252 : f32 to vector<9x32xf32>
    %233 = arith.mulf %232, %230 : vector<9x32xf32>
    %234 = vector.broadcast %231 : vector<1x32xf32> to vector<9x32xf32>
    %235 = arith.subf %234, %233 : vector<9x32xf32>
    %236 = tpu.iota {dimensions = array<i32: 1>} : vector<9x32xi32>
    %cst_253 = arith.constant dense<0x7F800000> : vector<9xf32>
    %237 = vector.multi_reduction <minimumf>, %235, %cst_253 [1] : vector<9x32xf32> to vector<9xf32>
    %238 = vector.shape_cast %237 : vector<9xf32> to vector<9x1xf32>
    %239 = vector.broadcast %238 : vector<9x1xf32> to vector<9x32xf32>
    %240 = arith.cmpf ole, %235, %239 : vector<9x32xf32>
    %c32_i32 = arith.constant 32 : i32
    %241 = vector.broadcast %c32_i32 : i32 to vector<9x32xi32>
    %242 = arith.select %240, %236, %241 : vector<9x32xi1>, vector<9x32xi32>
    %cst_254 = arith.constant dense<2147483647> : vector<9xi32>
    %243 = vector.multi_reduction <minsi>, %242, %cst_254 [1] : vector<9x32xi32> to vector<9xi32>
    %244 = vector.shape_cast %243 : vector<9xi32> to vector<9x1xi32>
    %245 = vector.broadcast %244 : vector<9x1xi32> to vector<9x32xi32>
    %246 = arith.cmpi eq, %236, %245 : vector<9x32xi32>
    %247 = arith.extui %246 : vector<9x32xi1> to vector<9x32xi32>
    %248 = arith.sitofp %247 : vector<9x32xi32> to vector<9x32xf32>
    %c0_255 = arith.constant 0 : index
    %c0_256 = arith.constant 0 : index
    %249 = vector.load %arg18[%c0_255, %c0_256] : memref<32x16xf32, #tpu.memory_space<vmem>>, vector<32x16xf32>
    %cst_257 = arith.constant dense<0.000000e+00> : vector<9x16xf32>
    %250 = tpu.matmul %248, %249, %cst_257 {dimension_numbers = #tpu.dot_dimension_numbers<[1], [0], [0], [1], [0, 0, 1, 1], [], []>} : vector<9x32xf32>, vector<32x16xf32>, vector<9x16xf32> -> vector<9x16xf32>
    %c0_258 = arith.constant 0 : index
    %c0_259 = arith.constant 0 : index
    %c0_260 = arith.constant 0 : index
    %251 = vector.load %arg34[%c0_258, %c0_259, %c0_260] : memref<1x9x16xf32, #tpu.memory_space<vmem>>, vector<1x9x16xf32>
    %252 = vector.shape_cast %251 : vector<1x9x16xf32> to vector<9x16xf32>
    %253 = vector.shape_cast %228 : vector<9x16xf32> to vector<1x9x16xf32>
    tpu.vector_store %arg34[%c0_258, %c0_259, %c0_260], %253 {strides = array<i32>} : memref<1x9x16xf32, #tpu.memory_space<vmem>>, vector<1x9x16xf32>,
    %c0_261 = arith.constant 0 : index
    %c0_262 = arith.constant 0 : index
    %c0_263 = arith.constant 0 : index
    %254 = vector.load %arg35[%c0_261, %c0_262, %c0_263] : memref<1x9x16xf32, #tpu.memory_space<vmem>>, vector<1x9x16xf32>
    %255 = vector.shape_cast %254 : vector<1x9x16xf32> to vector<9x16xf32>
    %256 = vector.shape_cast %250 : vector<9x16xf32> to vector<1x9x16xf32>
    tpu.vector_store %arg35[%c0_261, %c0_262, %c0_263], %256 {strides = array<i32>} : memref<1x9x16xf32, #tpu.memory_space<vmem>>, vector<1x9x16xf32>,
    %c0_264 = arith.constant 0 : index
    %c0_265 = arith.constant 0 : index
    %c0_266 = arith.constant 0 : index
    %257 = vector.load %arg36[%c0_264, %c0_265, %c0_266] : memref<1x9x32xf32, #tpu.memory_space<vmem>>, vector<1x9x32xf32>
    %258 = vector.shape_cast %257 : vector<1x9x32xf32> to vector<9x32xf32>
    %259 = vector.shape_cast %248 : vector<9x32xf32> to vector<1x9x32xf32>
    tpu.vector_store %arg36[%c0_264, %c0_265, %c0_266], %259 {strides = array<i32>} : memref<1x9x32xf32, #tpu.memory_space<vmem>>, vector<1x9x32xf32>,
    %cst_267 = arith.constant 0.000000e+00 : f32
    %260 = vector.broadcast %cst_267 : f32 to vector<1x16xf32>
    %c0_268 = arith.constant 0 : index
    %c0_269 = arith.constant 0 : index
    %261 = vector.load %arg37[%c0_268, %c0_269] : memref<24x32xf32, #tpu.memory_space<vmem>>, vector<1x16xf32>
    tpu.vector_store %arg37[%c0_268, %c0_269], %260 {strides = array<i32>} : memref<24x32xf32, #tpu.memory_space<vmem>>, vector<1x16xf32>,
    %c10_270 = arith.constant 10 : index
    %c0_271 = arith.constant 0 : index
    %262 = vector.load %arg37[%c10_270, %c0_271] : memref<24x32xf32, #tpu.memory_space<vmem>>, vector<1x16xf32>
    tpu.vector_store %arg37[%c10_270, %c0_271], %260 {strides = array<i32>} : memref<24x32xf32, #tpu.memory_space<vmem>>, vector<1x16xf32>,
    %c1_272 = arith.constant 1 : index
    %c0_273 = arith.constant 0 : index
    %263 = vector.load %arg37[%c1_272, %c0_273] : memref<24x32xf32, #tpu.memory_space<vmem>>, vector<9x16xf32>
    tpu.vector_store %arg37[%c1_272, %c0_273], %250 {strides = array<i32>} : memref<24x32xf32, #tpu.memory_space<vmem>>, vector<9x16xf32>,
    %cst_274 = arith.constant 0.000000e+00 : f32
    %264 = vector.broadcast %cst_274 : f32 to vector<9x32xf32>
    %c0_275 = arith.constant 0 : index
    %c0_276 = arith.constant 0 : index
    %265 = vector.load %arg37[%c0_275, %c0_276] : memref<24x32xf32, #tpu.memory_space<vmem>>, vector<9x16xf32>
    %c0_277 = arith.constant 0 : index
    %c0_278 = arith.constant 0 : index
    %c0_279 = arith.constant 0 : index
    %266 = vector.load %arg21[%c0_277, %c0_278, %c0_279] : memref<3x16x32xf32, #tpu.memory_space<vmem>>, vector<1x16x32xf32>
    %267 = vector.shape_cast %266 : vector<1x16x32xf32> to vector<16x32xf32>
    %cst_280 = arith.constant dense<0.000000e+00> : vector<9x32xf32>
    %268 = tpu.matmul %265, %267, %cst_280 {dimension_numbers = #tpu.dot_dimension_numbers<[1], [0], [0], [1], [0, 0, 1, 1], [], []>} : vector<9x16xf32>, vector<16x32xf32>, vector<9x32xf32> -> vector<9x32xf32>
    %269 = arith.addf %264, %268 : vector<9x32xf32>
    %c1_281 = arith.constant 1 : index
    %c0_282 = arith.constant 0 : index
    %270 = vector.load %arg37[%c1_281, %c0_282] : memref<24x32xf32, #tpu.memory_space<vmem>>, vector<9x16xf32>
    %c1_283 = arith.constant 1 : index
    %c0_284 = arith.constant 0 : index
    %c0_285 = arith.constant 0 : index
    %271 = vector.load %arg21[%c1_283, %c0_284, %c0_285] : memref<3x16x32xf32, #tpu.memory_space<vmem>>, vector<1x16x32xf32>
    %272 = vector.shape_cast %271 : vector<1x16x32xf32> to vector<16x32xf32>
    %cst_286 = arith.constant dense<0.000000e+00> : vector<9x32xf32>
    %273 = tpu.matmul %270, %272, %cst_286 {dimension_numbers = #tpu.dot_dimension_numbers<[1], [0], [0], [1], [0, 0, 1, 1], [], []>} : vector<9x16xf32>, vector<16x32xf32>, vector<9x32xf32> -> vector<9x32xf32>
    %274 = arith.addf %269, %273 : vector<9x32xf32>
    %c2_287 = arith.constant 2 : index
    %c0_288 = arith.constant 0 : index
    %275 = vector.load %arg37[%c2_287, %c0_288] : memref<24x32xf32, #tpu.memory_space<vmem>>, vector<9x16xf32>
    %c2_289 = arith.constant 2 : index
    %c0_290 = arith.constant 0 : index
    %c0_291 = arith.constant 0 : index
    %276 = vector.load %arg21[%c2_289, %c0_290, %c0_291] : memref<3x16x32xf32, #tpu.memory_space<vmem>>, vector<1x16x32xf32>
    %277 = vector.shape_cast %276 : vector<1x16x32xf32> to vector<16x32xf32>
    %cst_292 = arith.constant dense<0.000000e+00> : vector<9x32xf32>
    %278 = tpu.matmul %275, %277, %cst_292 {dimension_numbers = #tpu.dot_dimension_numbers<[1], [0], [0], [1], [0, 0, 1, 1], [], []>} : vector<9x16xf32>, vector<16x32xf32>, vector<9x32xf32> -> vector<9x32xf32>
    %279 = arith.addf %274, %278 : vector<9x32xf32>
    %c0_293 = arith.constant 0 : index
    %c0_294 = arith.constant 0 : index
    %280 = vector.load %arg22[%c0_293, %c0_294] : memref<1x32xf32, #tpu.memory_space<vmem>>, vector<1x32xf32>
    %281 = vector.broadcast %280 : vector<1x32xf32> to vector<9x32xf32>
    %282 = arith.addf %279, %281 : vector<9x32xf32>
    %c0_295 = arith.constant 0 : index
    %c0_296 = arith.constant 0 : index
    %283 = vector.load %arg37[%c0_295, %c0_296] : memref<24x32xf32, #tpu.memory_space<vmem>>, vector<9x32xf32>
    tpu.vector_store %arg37[%c0_295, %c0_296], %282 {strides = array<i32>} : memref<24x32xf32, #tpu.memory_space<vmem>>, vector<9x32xf32>,
    %cst_297 = arith.constant 0.000000e+00 : f32
    %284 = vector.broadcast %cst_297 : f32 to vector<7x32xf32>
    %c9 = arith.constant 9 : index
    %c0_298 = arith.constant 0 : index
    %285 = vector.load %arg37[%c9, %c0_298] : memref<24x32xf32, #tpu.memory_space<vmem>>, vector<7x32xf32>
    tpu.vector_store %arg37[%c9, %c0_298], %284 {strides = array<i32>} : memref<24x32xf32, #tpu.memory_space<vmem>>, vector<7x32xf32>,
    %c0_299 = arith.constant 0 : index
    %c0_300 = arith.constant 0 : index
    %286 = vector.load %arg37[%c0_299, %c0_300] : memref<24x32xf32, #tpu.memory_space<vmem>>, vector<16x32xf32>
    %287 = tpu.iota {dimensions = array<i32: 0>} : vector<18x16xi32>
    %288 = tpu.iota {dimensions = array<i32: 1>} : vector<18x16xi32>
    %c2_i32_301 = arith.constant 2 : i32
    %289 = vector.broadcast %c2_i32_301 : i32 to vector<18x16xi32>
    %290 = arith.muli %289, %288 : vector<18x16xi32>
    %291 = arith.cmpi eq, %287, %290 : vector<18x16xi32>
    %c2_i32_302 = arith.constant 2 : i32
    %292 = vector.broadcast %c2_i32_302 : i32 to vector<18x16xi32>
    %293 = arith.muli %292, %288 : vector<18x16xi32>
    %c1_i32 = arith.constant 1 : i32
    %294 = vector.broadcast %c1_i32 : i32 to vector<18x16xi32>
    %295 = arith.addi %293, %294 : vector<18x16xi32>
    %296 = arith.cmpi eq, %287, %295 : vector<18x16xi32>
    %297 = arith.ori %291, %296 : vector<18x16xi1>
    %298 = arith.extui %297 : vector<18x16xi1> to vector<18x16xi32>
    %299 = arith.sitofp %298 : vector<18x16xi32> to vector<18x16xf32>
    %cst_303 = arith.constant dense<0.000000e+00> : vector<18x32xf32>
    %300 = tpu.matmul %299, %286, %cst_303 {dimension_numbers = #tpu.dot_dimension_numbers<[1], [0], [0], [1], [0, 0, 1, 1], [], []>} : vector<18x16xf32>, vector<16x32xf32>, vector<18x32xf32> -> vector<18x32xf32>
    %cst_304 = arith.constant 0.000000e+00 : f32
    %301 = vector.broadcast %cst_304 : f32 to vector<18x32xf32>
    %302 = arith.maximumf %300, %301 : vector<18x32xf32>
    %cst_305 = arith.constant 0.000000e+00 : f32
    %303 = vector.broadcast %cst_305 : f32 to vector<1x32xf32>
    %c0_306 = arith.constant 0 : index
    %c0_307 = arith.constant 0 : index
    %304 = vector.load %arg37[%c0_306, %c0_307] : memref<24x32xf32, #tpu.memory_space<vmem>>, vector<1x32xf32>
    tpu.vector_store %arg37[%c0_306, %c0_307], %303 {strides = array<i32>} : memref<24x32xf32, #tpu.memory_space<vmem>>, vector<1x32xf32>,
    %c19 = arith.constant 19 : index
    %c0_308 = arith.constant 0 : index
    %305 = vector.load %arg37[%c19, %c0_308] : memref<24x32xf32, #tpu.memory_space<vmem>>, vector<1x32xf32>
    tpu.vector_store %arg37[%c19, %c0_308], %303 {strides = array<i32>} : memref<24x32xf32, #tpu.memory_space<vmem>>, vector<1x32xf32>,
    %c1_309 = arith.constant 1 : index
    %c0_310 = arith.constant 0 : index
    %306 = vector.load %arg37[%c1_309, %c0_310] : memref<24x32xf32, #tpu.memory_space<vmem>>, vector<18x32xf32>
    tpu.vector_store %arg37[%c1_309, %c0_310], %302 {strides = array<i32>} : memref<24x32xf32, #tpu.memory_space<vmem>>, vector<18x32xf32>,
    %cst_311 = arith.constant 0.000000e+00 : f32
    %307 = vector.broadcast %cst_311 : f32 to vector<18x32xf32>
    %c0_312 = arith.constant 0 : index
    %c0_313 = arith.constant 0 : index
    %308 = vector.load %arg37[%c0_312, %c0_313] : memref<24x32xf32, #tpu.memory_space<vmem>>, vector<18x32xf32>
    %c0_314 = arith.constant 0 : index
    %c0_315 = arith.constant 0 : index
    %c0_316 = arith.constant 0 : index
    %309 = vector.load %arg23[%c0_314, %c0_315, %c0_316] : memref<3x32x32xf32, #tpu.memory_space<vmem>>, vector<1x32x32xf32>
    %310 = vector.shape_cast %309 : vector<1x32x32xf32> to vector<32x32xf32>
    %cst_317 = arith.constant dense<0.000000e+00> : vector<18x32xf32>
    %311 = tpu.matmul %308, %310, %cst_317 {dimension_numbers = #tpu.dot_dimension_numbers<[1], [0], [0], [1], [0, 0, 1, 1], [], []>} : vector<18x32xf32>, vector<32x32xf32>, vector<18x32xf32> -> vector<18x32xf32>
    %312 = arith.addf %307, %311 : vector<18x32xf32>
    %c1_318 = arith.constant 1 : index
    %c0_319 = arith.constant 0 : index
    %313 = vector.load %arg37[%c1_318, %c0_319] : memref<24x32xf32, #tpu.memory_space<vmem>>, vector<18x32xf32>
    %c1_320 = arith.constant 1 : index
    %c0_321 = arith.constant 0 : index
    %c0_322 = arith.constant 0 : index
    %314 = vector.load %arg23[%c1_320, %c0_321, %c0_322] : memref<3x32x32xf32, #tpu.memory_space<vmem>>, vector<1x32x32xf32>
    %315 = vector.shape_cast %314 : vector<1x32x32xf32> to vector<32x32xf32>
    %cst_323 = arith.constant dense<0.000000e+00> : vector<18x32xf32>
    %316 = tpu.matmul %313, %315, %cst_323 {dimension_numbers = #tpu.dot_dimension_numbers<[1], [0], [0], [1], [0, 0, 1, 1], [], []>} : vector<18x32xf32>, vector<32x32xf32>, vector<18x32xf32> -> vector<18x32xf32>
    %317 = arith.addf %312, %316 : vector<18x32xf32>
    %c2_324 = arith.constant 2 : index
    %c0_325 = arith.constant 0 : index
    %318 = vector.load %arg37[%c2_324, %c0_325] : memref<24x32xf32, #tpu.memory_space<vmem>>, vector<18x32xf32>
    %c2_326 = arith.constant 2 : index
    %c0_327 = arith.constant 0 : index
    %c0_328 = arith.constant 0 : index
    %319 = vector.load %arg23[%c2_326, %c0_327, %c0_328] : memref<3x32x32xf32, #tpu.memory_space<vmem>>, vector<1x32x32xf32>
    %320 = vector.shape_cast %319 : vector<1x32x32xf32> to vector<32x32xf32>
    %cst_329 = arith.constant dense<0.000000e+00> : vector<18x32xf32>
    %321 = tpu.matmul %318, %320, %cst_329 {dimension_numbers = #tpu.dot_dimension_numbers<[1], [0], [0], [1], [0, 0, 1, 1], [], []>} : vector<18x32xf32>, vector<32x32xf32>, vector<18x32xf32> -> vector<18x32xf32>
    %322 = arith.addf %317, %321 : vector<18x32xf32>
    %cst_330 = arith.constant 0.000000e+00 : f32
    %323 = vector.broadcast %cst_330 : f32 to vector<18x32xf32>
    %324 = arith.maximumf %322, %323 : vector<18x32xf32>
    %c0_331 = arith.constant 0 : index
    %c0_332 = arith.constant 0 : index
    %c0_333 = arith.constant 0 : index
    %325 = vector.load %arg24[%c0_331, %c0_332, %c0_333] : memref<1x32x32xf32, #tpu.memory_space<vmem>>, vector<1x32x32xf32>
    %326 = vector.shape_cast %325 : vector<1x32x32xf32> to vector<32x32xf32>
    %cst_334 = arith.constant dense<0.000000e+00> : vector<18x32xf32>
    %327 = tpu.matmul %324, %326, %cst_334 {dimension_numbers = #tpu.dot_dimension_numbers<[1], [0], [0], [1], [0, 0, 1, 1], [], []>} : vector<18x32xf32>, vector<32x32xf32>, vector<18x32xf32> -> vector<18x32xf32>
    %328 = arith.addf %300, %327 : vector<18x32xf32>
    %cst_335 = arith.constant 0.000000e+00 : f32
    %329 = vector.broadcast %cst_335 : f32 to vector<18x32xf32>
    %330 = arith.maximumf %328, %329 : vector<18x32xf32>
    %cst_336 = arith.constant 0.000000e+00 : f32
    %331 = vector.broadcast %cst_336 : f32 to vector<1x32xf32>
    %c0_337 = arith.constant 0 : index
    %c0_338 = arith.constant 0 : index
    %332 = vector.load %arg37[%c0_337, %c0_338] : memref<24x32xf32, #tpu.memory_space<vmem>>, vector<1x32xf32>
    tpu.vector_store %arg37[%c0_337, %c0_338], %331 {strides = array<i32>} : memref<24x32xf32, #tpu.memory_space<vmem>>, vector<1x32xf32>,
    %c19_339 = arith.constant 19 : index
    %c0_340 = arith.constant 0 : index
    %333 = vector.load %arg37[%c19_339, %c0_340] : memref<24x32xf32, #tpu.memory_space<vmem>>, vector<1x32xf32>
    tpu.vector_store %arg37[%c19_339, %c0_340], %331 {strides = array<i32>} : memref<24x32xf32, #tpu.memory_space<vmem>>, vector<1x32xf32>,
    %c1_341 = arith.constant 1 : index
    %c0_342 = arith.constant 0 : index
    %334 = vector.load %arg37[%c1_341, %c0_342] : memref<24x32xf32, #tpu.memory_space<vmem>>, vector<18x32xf32>
    tpu.vector_store %arg37[%c1_341, %c0_342], %330 {strides = array<i32>} : memref<24x32xf32, #tpu.memory_space<vmem>>, vector<18x32xf32>,
    %cst_343 = arith.constant 0.000000e+00 : f32
    %335 = vector.broadcast %cst_343 : f32 to vector<18x32xf32>
    %c0_344 = arith.constant 0 : index
    %c0_345 = arith.constant 0 : index
    %336 = vector.load %arg37[%c0_344, %c0_345] : memref<24x32xf32, #tpu.memory_space<vmem>>, vector<18x32xf32>
    %c0_346 = arith.constant 0 : index
    %c0_347 = arith.constant 0 : index
    %c0_348 = arith.constant 0 : index
    %337 = vector.load %arg25[%c0_346, %c0_347, %c0_348] : memref<3x32x32xf32, #tpu.memory_space<vmem>>, vector<1x32x32xf32>
    %338 = vector.shape_cast %337 : vector<1x32x32xf32> to vector<32x32xf32>
    %cst_349 = arith.constant dense<0.000000e+00> : vector<18x32xf32>
    %339 = tpu.matmul %336, %338, %cst_349 {dimension_numbers = #tpu.dot_dimension_numbers<[1], [0], [0], [1], [0, 0, 1, 1], [], []>} : vector<18x32xf32>, vector<32x32xf32>, vector<18x32xf32> -> vector<18x32xf32>
    %340 = arith.addf %335, %339 : vector<18x32xf32>
    %c1_350 = arith.constant 1 : index
    %c0_351 = arith.constant 0 : index
    %341 = vector.load %arg37[%c1_350, %c0_351] : memref<24x32xf32, #tpu.memory_space<vmem>>, vector<18x32xf32>
    %c1_352 = arith.constant 1 : index
    %c0_353 = arith.constant 0 : index
    %c0_354 = arith.constant 0 : index
    %342 = vector.load %arg25[%c1_352, %c0_353, %c0_354] : memref<3x32x32xf32, #tpu.memory_space<vmem>>, vector<1x32x32xf32>
    %343 = vector.shape_cast %342 : vector<1x32x32xf32> to vector<32x32xf32>
    %cst_355 = arith.constant dense<0.000000e+00> : vector<18x32xf32>
    %344 = tpu.matmul %341, %343, %cst_355 {dimension_numbers = #tpu.dot_dimension_numbers<[1], [0], [0], [1], [0, 0, 1, 1], [], []>} : vector<18x32xf32>, vector<32x32xf32>, vector<18x32xf32> -> vector<18x32xf32>
    %345 = arith.addf %340, %344 : vector<18x32xf32>
    %c2_356 = arith.constant 2 : index
    %c0_357 = arith.constant 0 : index
    %346 = vector.load %arg37[%c2_356, %c0_357] : memref<24x32xf32, #tpu.memory_space<vmem>>, vector<18x32xf32>
    %c2_358 = arith.constant 2 : index
    %c0_359 = arith.constant 0 : index
    %c0_360 = arith.constant 0 : index
    %347 = vector.load %arg25[%c2_358, %c0_359, %c0_360] : memref<3x32x32xf32, #tpu.memory_space<vmem>>, vector<1x32x32xf32>
    %348 = vector.shape_cast %347 : vector<1x32x32xf32> to vector<32x32xf32>
    %cst_361 = arith.constant dense<0.000000e+00> : vector<18x32xf32>
    %349 = tpu.matmul %346, %348, %cst_361 {dimension_numbers = #tpu.dot_dimension_numbers<[1], [0], [0], [1], [0, 0, 1, 1], [], []>} : vector<18x32xf32>, vector<32x32xf32>, vector<18x32xf32> -> vector<18x32xf32>
    %350 = arith.addf %345, %349 : vector<18x32xf32>
    %cst_362 = arith.constant 0.000000e+00 : f32
    %351 = vector.broadcast %cst_362 : f32 to vector<18x32xf32>
    %352 = arith.maximumf %350, %351 : vector<18x32xf32>
    %c0_363 = arith.constant 0 : index
    %c0_364 = arith.constant 0 : index
    %c0_365 = arith.constant 0 : index
    %353 = vector.load %arg26[%c0_363, %c0_364, %c0_365] : memref<1x32x32xf32, #tpu.memory_space<vmem>>, vector<1x32x32xf32>
    %354 = vector.shape_cast %353 : vector<1x32x32xf32> to vector<32x32xf32>
    %cst_366 = arith.constant dense<0.000000e+00> : vector<18x32xf32>
    %355 = tpu.matmul %352, %354, %cst_366 {dimension_numbers = #tpu.dot_dimension_numbers<[1], [0], [0], [1], [0, 0, 1, 1], [], []>} : vector<18x32xf32>, vector<32x32xf32>, vector<18x32xf32> -> vector<18x32xf32>
    %356 = arith.addf %328, %355 : vector<18x32xf32>
    %cst_367 = arith.constant 0.000000e+00 : f32
    %357 = vector.broadcast %cst_367 : f32 to vector<18x32xf32>
    %358 = arith.maximumf %356, %357 : vector<18x32xf32>
    %cst_368 = arith.constant 0.000000e+00 : f32
    %359 = vector.broadcast %cst_368 : f32 to vector<1x32xf32>
    %c0_369 = arith.constant 0 : index
    %c0_370 = arith.constant 0 : index
    %360 = vector.load %arg37[%c0_369, %c0_370] : memref<24x32xf32, #tpu.memory_space<vmem>>, vector<1x32xf32>
    tpu.vector_store %arg37[%c0_369, %c0_370], %359 {strides = array<i32>} : memref<24x32xf32, #tpu.memory_space<vmem>>, vector<1x32xf32>,
    %c19_371 = arith.constant 19 : index
    %c0_372 = arith.constant 0 : index
    %361 = vector.load %arg37[%c19_371, %c0_372] : memref<24x32xf32, #tpu.memory_space<vmem>>, vector<1x32xf32>
    tpu.vector_store %arg37[%c19_371, %c0_372], %359 {strides = array<i32>} : memref<24x32xf32, #tpu.memory_space<vmem>>, vector<1x32xf32>,
    %c1_373 = arith.constant 1 : index
    %c0_374 = arith.constant 0 : index
    %362 = vector.load %arg37[%c1_373, %c0_374] : memref<24x32xf32, #tpu.memory_space<vmem>>, vector<18x32xf32>
    tpu.vector_store %arg37[%c1_373, %c0_374], %358 {strides = array<i32>} : memref<24x32xf32, #tpu.memory_space<vmem>>, vector<18x32xf32>,
    %cst_375 = arith.constant 0.000000e+00 : f32
    %363 = vector.broadcast %cst_375 : f32 to vector<18x32xf32>
    %c0_376 = arith.constant 0 : index
    %c0_377 = arith.constant 0 : index
    %364 = vector.load %arg37[%c0_376, %c0_377] : memref<24x32xf32, #tpu.memory_space<vmem>>, vector<18x32xf32>
    %c0_378 = arith.constant 0 : index
    %c0_379 = arith.constant 0 : index
    %c0_380 = arith.constant 0 : index
    %365 = vector.load %arg27[%c0_378, %c0_379, %c0_380] : memref<3x32x32xf32, #tpu.memory_space<vmem>>, vector<1x32x32xf32>
    %366 = vector.shape_cast %365 : vector<1x32x32xf32> to vector<32x32xf32>
    %cst_381 = arith.constant dense<0.000000e+00> : vector<18x32xf32>
    %367 = tpu.matmul %364, %366, %cst_381 {dimension_numbers = #tpu.dot_dimension_numbers<[1], [0], [0], [1], [0, 0, 1, 1], [], []>} : vector<18x32xf32>, vector<32x32xf32>, vector<18x32xf32> -> vector<18x32xf32>
    %368 = arith.addf %363, %367 : vector<18x32xf32>
    %c1_382 = arith.constant 1 : index
    %c0_383 = arith.constant 0 : index
    %369 = vector.load %arg37[%c1_382, %c0_383] : memref<24x32xf32, #tpu.memory_space<vmem>>, vector<18x32xf32>
    %c1_384 = arith.constant 1 : index
    %c0_385 = arith.constant 0 : index
    %c0_386 = arith.constant 0 : index
    %370 = vector.load %arg27[%c1_384, %c0_385, %c0_386] : memref<3x32x32xf32, #tpu.memory_space<vmem>>, vector<1x32x32xf32>
    %371 = vector.shape_cast %370 : vector<1x32x32xf32> to vector<32x32xf32>
    %cst_387 = arith.constant dense<0.000000e+00> : vector<18x32xf32>
    %372 = tpu.matmul %369, %371, %cst_387 {dimension_numbers = #tpu.dot_dimension_numbers<[1], [0], [0], [1], [0, 0, 1, 1], [], []>} : vector<18x32xf32>, vector<32x32xf32>, vector<18x32xf32> -> vector<18x32xf32>
    %373 = arith.addf %368, %372 : vector<18x32xf32>
    %c2_388 = arith.constant 2 : index
    %c0_389 = arith.constant 0 : index
    %374 = vector.load %arg37[%c2_388, %c0_389] : memref<24x32xf32, #tpu.memory_space<vmem>>, vector<18x32xf32>
    %c2_390 = arith.constant 2 : index
    %c0_391 = arith.constant 0 : index
    %c0_392 = arith.constant 0 : index
    %375 = vector.load %arg27[%c2_390, %c0_391, %c0_392] : memref<3x32x32xf32, #tpu.memory_space<vmem>>, vector<1x32x32xf32>
    %376 = vector.shape_cast %375 : vector<1x32x32xf32> to vector<32x32xf32>
    %cst_393 = arith.constant dense<0.000000e+00> : vector<18x32xf32>
    %377 = tpu.matmul %374, %376, %cst_393 {dimension_numbers = #tpu.dot_dimension_numbers<[1], [0], [0], [1], [0, 0, 1, 1], [], []>} : vector<18x32xf32>, vector<32x32xf32>, vector<18x32xf32> -> vector<18x32xf32>
    %378 = arith.addf %373, %377 : vector<18x32xf32>
    %c0_394 = arith.constant 0 : index
    %c0_395 = arith.constant 0 : index
    %379 = vector.load %arg28[%c0_394, %c0_395] : memref<1x32xf32, #tpu.memory_space<vmem>>, vector<1x32xf32>
    %380 = vector.broadcast %379 : vector<1x32xf32> to vector<18x32xf32>
    %381 = arith.addf %378, %380 : vector<18x32xf32>
    %cst_396 = arith.constant 0.000000e+00 : f32
    %382 = vector.broadcast %cst_396 : f32 to vector<18x32xf32>
    %383 = arith.maximumf %381, %382 : vector<18x32xf32>
    %cst_397 = arith.constant 0.000000e+00 : f32
    %384 = vector.broadcast %cst_397 : f32 to vector<2x32xf32>
    %c0_398 = arith.constant 0 : index
    %c0_399 = arith.constant 0 : index
    %385 = vector.load %arg37[%c0_398, %c0_399] : memref<24x32xf32, #tpu.memory_space<vmem>>, vector<2x32xf32>
    tpu.vector_store %arg37[%c0_398, %c0_399], %384 {strides = array<i32>} : memref<24x32xf32, #tpu.memory_space<vmem>>, vector<2x32xf32>,
    %c20 = arith.constant 20 : index
    %c0_400 = arith.constant 0 : index
    %386 = vector.load %arg37[%c20, %c0_400] : memref<24x32xf32, #tpu.memory_space<vmem>>, vector<2x32xf32>
    tpu.vector_store %arg37[%c20, %c0_400], %384 {strides = array<i32>} : memref<24x32xf32, #tpu.memory_space<vmem>>, vector<2x32xf32>,
    %c2_401 = arith.constant 2 : index
    %c0_402 = arith.constant 0 : index
    %387 = vector.load %arg37[%c2_401, %c0_402] : memref<24x32xf32, #tpu.memory_space<vmem>>, vector<18x32xf32>
    tpu.vector_store %arg37[%c2_401, %c0_402], %383 {strides = array<i32>} : memref<24x32xf32, #tpu.memory_space<vmem>>, vector<18x32xf32>,
    %cst_403 = arith.constant 0.000000e+00 : f32
    %388 = vector.broadcast %cst_403 : f32 to vector<20x32xf32>
    %c0_404 = arith.constant 0 : index
    %c0_405 = arith.constant 0 : index
    %389 = vector.load %arg37[%c0_404, %c0_405] : memref<24x32xf32, #tpu.memory_space<vmem>>, vector<20x32xf32>
    %c0_406 = arith.constant 0 : index
    %c0_407 = arith.constant 0 : index
    %c0_408 = arith.constant 0 : index
    %390 = vector.load %arg29[%c0_406, %c0_407, %c0_408] : memref<3x32x32xf32, #tpu.memory_space<vmem>>, vector<1x32x32xf32>
    %391 = vector.shape_cast %390 : vector<1x32x32xf32> to vector<32x32xf32>
    %cst_409 = arith.constant dense<0.000000e+00> : vector<20x32xf32>
    %392 = tpu.matmul %389, %391, %cst_409 {dimension_numbers = #tpu.dot_dimension_numbers<[1], [0], [0], [1], [0, 0, 1, 1], [], []>} : vector<20x32xf32>, vector<32x32xf32>, vector<20x32xf32> -> vector<20x32xf32>
    %393 = arith.addf %388, %392 : vector<20x32xf32>
    %c1_410 = arith.constant 1 : index
    %c0_411 = arith.constant 0 : index
    %394 = vector.load %arg37[%c1_410, %c0_411] : memref<24x32xf32, #tpu.memory_space<vmem>>, vector<20x32xf32>
    %c1_412 = arith.constant 1 : index
    %c0_413 = arith.constant 0 : index
    %c0_414 = arith.constant 0 : index
    %395 = vector.load %arg29[%c1_412, %c0_413, %c0_414] : memref<3x32x32xf32, #tpu.memory_space<vmem>>, vector<1x32x32xf32>
    %396 = vector.shape_cast %395 : vector<1x32x32xf32> to vector<32x32xf32>
    %cst_415 = arith.constant dense<0.000000e+00> : vector<20x32xf32>
    %397 = tpu.matmul %394, %396, %cst_415 {dimension_numbers = #tpu.dot_dimension_numbers<[1], [0], [0], [1], [0, 0, 1, 1], [], []>} : vector<20x32xf32>, vector<32x32xf32>, vector<20x32xf32> -> vector<20x32xf32>
    %398 = arith.addf %393, %397 : vector<20x32xf32>
    %c2_416 = arith.constant 2 : index
    %c0_417 = arith.constant 0 : index
    %399 = vector.load %arg37[%c2_416, %c0_417] : memref<24x32xf32, #tpu.memory_space<vmem>>, vector<20x32xf32>
    %c2_418 = arith.constant 2 : index
    %c0_419 = arith.constant 0 : index
    %c0_420 = arith.constant 0 : index
    %400 = vector.load %arg29[%c2_418, %c0_419, %c0_420] : memref<3x32x32xf32, #tpu.memory_space<vmem>>, vector<1x32x32xf32>
    %401 = vector.shape_cast %400 : vector<1x32x32xf32> to vector<32x32xf32>
    %cst_421 = arith.constant dense<0.000000e+00> : vector<20x32xf32>
    %402 = tpu.matmul %399, %401, %cst_421 {dimension_numbers = #tpu.dot_dimension_numbers<[1], [0], [0], [1], [0, 0, 1, 1], [], []>} : vector<20x32xf32>, vector<32x32xf32>, vector<20x32xf32> -> vector<20x32xf32>
    %403 = arith.addf %398, %402 : vector<20x32xf32>
    %c0_422 = arith.constant 0 : index
    %c0_423 = arith.constant 0 : index
    %404 = vector.load %arg30[%c0_422, %c0_423] : memref<1x32xf32, #tpu.memory_space<vmem>>, vector<1x32xf32>
    %405 = vector.broadcast %404 : vector<1x32xf32> to vector<20x32xf32>
    %406 = arith.addf %403, %405 : vector<20x32xf32>
    %cst_424 = arith.constant 0.000000e+00 : f32
    %407 = vector.broadcast %cst_424 : f32 to vector<20x32xf32>
    %408 = arith.maximumf %406, %407 : vector<20x32xf32>
    %cst_425 = arith.constant 0.000000e+00 : f32
    %409 = vector.broadcast %cst_425 : f32 to vector<1x32xf32>
    %c0_426 = arith.constant 0 : index
    %c0_427 = arith.constant 0 : index
    %410 = vector.load %arg37[%c0_426, %c0_427] : memref<24x32xf32, #tpu.memory_space<vmem>>, vector<1x32xf32>
    tpu.vector_store %arg37[%c0_426, %c0_427], %409 {strides = array<i32>} : memref<24x32xf32, #tpu.memory_space<vmem>>, vector<1x32xf32>,
    %c21 = arith.constant 21 : index
    %c0_428 = arith.constant 0 : index
    %411 = vector.load %arg37[%c21, %c0_428] : memref<24x32xf32, #tpu.memory_space<vmem>>, vector<1x32xf32>
    tpu.vector_store %arg37[%c21, %c0_428], %409 {strides = array<i32>} : memref<24x32xf32, #tpu.memory_space<vmem>>, vector<1x32xf32>,
    %c1_429 = arith.constant 1 : index
    %c0_430 = arith.constant 0 : index
    %412 = vector.load %arg37[%c1_429, %c0_430] : memref<24x32xf32, #tpu.memory_space<vmem>>, vector<20x32xf32>
    tpu.vector_store %arg37[%c1_429, %c0_430], %408 {strides = array<i32>} : memref<24x32xf32, #tpu.memory_space<vmem>>, vector<20x32xf32>,
    %cst_431 = arith.constant 0.000000e+00 : f32
    %413 = vector.broadcast %cst_431 : f32 to vector<21x8xf32>
    %c0_432 = arith.constant 0 : index
    %c0_433 = arith.constant 0 : index
    %414 = vector.load %arg37[%c0_432, %c0_433] : memref<24x32xf32, #tpu.memory_space<vmem>>, vector<21x32xf32>
    %c0_434 = arith.constant 0 : index
    %c0_435 = arith.constant 0 : index
    %c0_436 = arith.constant 0 : index
    %415 = vector.load %arg31[%c0_434, %c0_435, %c0_436] : memref<2x32x8xf32, #tpu.memory_space<vmem>>, vector<1x32x8xf32>
    %416 = vector.shape_cast %415 : vector<1x32x8xf32> to vector<32x8xf32>
    %cst_437 = arith.constant dense<0.000000e+00> : vector<21x8xf32>
    %417 = tpu.matmul %414, %416, %cst_437 {dimension_numbers = #tpu.dot_dimension_numbers<[1], [0], [0], [1], [0, 0, 1, 1], [], []>} : vector<21x32xf32>, vector<32x8xf32>, vector<21x8xf32> -> vector<21x8xf32>
    %418 = arith.addf %413, %417 : vector<21x8xf32>
    %c1_438 = arith.constant 1 : index
    %c0_439 = arith.constant 0 : index
    %419 = vector.load %arg37[%c1_438, %c0_439] : memref<24x32xf32, #tpu.memory_space<vmem>>, vector<21x32xf32>
    %c1_440 = arith.constant 1 : index
    %c0_441 = arith.constant 0 : index
    %c0_442 = arith.constant 0 : index
    %420 = vector.load %arg31[%c1_440, %c0_441, %c0_442] : memref<2x32x8xf32, #tpu.memory_space<vmem>>, vector<1x32x8xf32>
    %421 = vector.shape_cast %420 : vector<1x32x8xf32> to vector<32x8xf32>
    %cst_443 = arith.constant dense<0.000000e+00> : vector<21x8xf32>
    %422 = tpu.matmul %419, %421, %cst_443 {dimension_numbers = #tpu.dot_dimension_numbers<[1], [0], [0], [1], [0, 0, 1, 1], [], []>} : vector<21x32xf32>, vector<32x8xf32>, vector<21x8xf32> -> vector<21x8xf32>
    %423 = arith.addf %418, %422 : vector<21x8xf32>
    %c0_444 = arith.constant 0 : index
    %c0_445 = arith.constant 0 : index
    %424 = vector.load %arg32[%c0_444, %c0_445] : memref<1x8xf32, #tpu.memory_space<vmem>>, vector<1x8xf32>
    %425 = vector.broadcast %424 : vector<1x8xf32> to vector<21x8xf32>
    %426 = arith.addf %423, %425 : vector<21x8xf32>
    %c0_446 = arith.constant 0 : index
    %c0_447 = arith.constant 0 : index
    %c0_448 = arith.constant 0 : index
    %427 = vector.load %arg33[%c0_446, %c0_447, %c0_448] : memref<1x21x8xf32, #tpu.memory_space<vmem>>, vector<1x21x8xf32>
    %428 = vector.shape_cast %427 : vector<1x21x8xf32> to vector<21x8xf32>
    %429 = vector.shape_cast %426 : vector<21x8xf32> to vector<1x21x8xf32>
    tpu.vector_store %arg33[%c0_446, %c0_447, %c0_448], %429 {strides = array<i32>} : memref<1x21x8xf32, #tpu.memory_space<vmem>>, vector<1x21x8xf32>,
    return
  }
  func.func @transform_0(%arg0: i32) -> (i32, i32, i32) {
    %c0_i32 = arith.constant 0 : i32
    %c0_i32_0 = arith.constant 0 : i32
    %c0_i32_1 = arith.constant 0 : i32
    return %arg0, %c0_i32, %c0_i32_0 : i32, i32, i32
  }
  func.func @transform_1(%arg0: i32) -> (i32, i32, i32) {
    %c0_i32 = arith.constant 0 : i32
    %c0_i32_0 = arith.constant 0 : i32
    %c0_i32_1 = arith.constant 0 : i32
    %c0_i32_2 = arith.constant 0 : i32
    return %c0_i32, %c0_i32_0, %c0_i32_1 : i32, i32, i32
  }
  func.func @transform_2(%arg0: i32) -> (i32, i32) {
    %c0_i32 = arith.constant 0 : i32
    %c0_i32_0 = arith.constant 0 : i32
    %c0_i32_1 = arith.constant 0 : i32
    return %c0_i32, %c0_i32_0 : i32, i32
  }
  func.func @transform_3(%arg0: i32) -> (i32, i32, i32) {
    %c0_i32 = arith.constant 0 : i32
    %c0_i32_0 = arith.constant 0 : i32
    %c0_i32_1 = arith.constant 0 : i32
    %c0_i32_2 = arith.constant 0 : i32
    return %c0_i32, %c0_i32_0, %c0_i32_1 : i32, i32, i32
  }
  func.func @transform_4(%arg0: i32) -> (i32, i32) {
    %c0_i32 = arith.constant 0 : i32
    %c0_i32_0 = arith.constant 0 : i32
    %c0_i32_1 = arith.constant 0 : i32
    return %c0_i32, %c0_i32_0 : i32, i32
  }
  func.func @transform_5(%arg0: i32) -> (i32, i32, i32) {
    %c0_i32 = arith.constant 0 : i32
    %c0_i32_0 = arith.constant 0 : i32
    %c0_i32_1 = arith.constant 0 : i32
    %c0_i32_2 = arith.constant 0 : i32
    return %c0_i32, %c0_i32_0, %c0_i32_1 : i32, i32, i32
  }
  func.func @transform_6(%arg0: i32) -> (i32, i32) {
    %c0_i32 = arith.constant 0 : i32
    %c0_i32_0 = arith.constant 0 : i32
    %c0_i32_1 = arith.constant 0 : i32
    return %c0_i32, %c0_i32_0 : i32, i32
  }
  func.func @transform_7(%arg0: i32) -> (i32, i32, i32) {
    %c0_i32 = arith.constant 0 : i32
    %c0_i32_0 = arith.constant 0 : i32
    %c0_i32_1 = arith.constant 0 : i32
    %c0_i32_2 = arith.constant 0 : i32
    return %c0_i32, %c0_i32_0, %c0_i32_1 : i32, i32, i32
  }
  func.func @transform_8(%arg0: i32) -> (i32, i32) {
    %c0_i32 = arith.constant 0 : i32
    %c0_i32_0 = arith.constant 0 : i32
    %c0_i32_1 = arith.constant 0 : i32
    return %c0_i32, %c0_i32_0 : i32, i32
  }
  func.func @transform_9(%arg0: i32) -> (i32, i32, i32) {
    %c0_i32 = arith.constant 0 : i32
    %c0_i32_0 = arith.constant 0 : i32
    %c0_i32_1 = arith.constant 0 : i32
    %c0_i32_2 = arith.constant 0 : i32
    return %c0_i32, %c0_i32_0, %c0_i32_1 : i32, i32, i32
  }
  func.func @transform_10(%arg0: i32) -> (i32, i32) {
    %c0_i32 = arith.constant 0 : i32
    %c0_i32_0 = arith.constant 0 : i32
    %c0_i32_1 = arith.constant 0 : i32
    return %c0_i32, %c0_i32_0 : i32, i32
  }
  func.func @transform_11(%arg0: i32) -> (i32, i32, i32) {
    %c0_i32 = arith.constant 0 : i32
    %c0_i32_0 = arith.constant 0 : i32
    %c0_i32_1 = arith.constant 0 : i32
    %c0_i32_2 = arith.constant 0 : i32
    return %c0_i32, %c0_i32_0, %c0_i32_1 : i32, i32, i32
  }
  func.func @transform_12(%arg0: i32) -> (i32, i32, i32) {
    %c0_i32 = arith.constant 0 : i32
    %c0_i32_0 = arith.constant 0 : i32
    %c0_i32_1 = arith.constant 0 : i32
    %c0_i32_2 = arith.constant 0 : i32
    return %c0_i32, %c0_i32_0, %c0_i32_1 : i32, i32, i32
  }
  func.func @transform_13(%arg0: i32) -> (i32, i32, i32) {
    %c0_i32 = arith.constant 0 : i32
    %c0_i32_0 = arith.constant 0 : i32
    %c0_i32_1 = arith.constant 0 : i32
    %c0_i32_2 = arith.constant 0 : i32
    return %c0_i32, %c0_i32_0, %c0_i32_1 : i32, i32, i32
  }
  func.func @transform_14(%arg0: i32) -> (i32, i32, i32) {
    %c0_i32 = arith.constant 0 : i32
    %c0_i32_0 = arith.constant 0 : i32
    %c0_i32_1 = arith.constant 0 : i32
    %c0_i32_2 = arith.constant 0 : i32
    return %c0_i32, %c0_i32_0, %c0_i32_1 : i32, i32, i32
  }
  func.func @transform_15(%arg0: i32) -> (i32, i32, i32) {
    %c0_i32 = arith.constant 0 : i32
    %c0_i32_0 = arith.constant 0 : i32
    %c0_i32_1 = arith.constant 0 : i32
    %c0_i32_2 = arith.constant 0 : i32
    return %c0_i32, %c0_i32_0, %c0_i32_1 : i32, i32, i32
  }
  func.func @transform_16(%arg0: i32) -> (i32, i32) {
    %c0_i32 = arith.constant 0 : i32
    %c0_i32_0 = arith.constant 0 : i32
    %c0_i32_1 = arith.constant 0 : i32
    return %c0_i32, %c0_i32_0 : i32, i32
  }
  func.func @transform_17(%arg0: i32) -> (i32, i32) {
    %c0_i32 = arith.constant 0 : i32
    %c0_i32_0 = arith.constant 0 : i32
    %c0_i32_1 = arith.constant 0 : i32
    return %c0_i32, %c0_i32_0 : i32, i32
  }
  func.func @transform_18(%arg0: i32) -> (i32, i32) {
    %c0_i32 = arith.constant 0 : i32
    %c0_i32_0 = arith.constant 0 : i32
    %c0_i32_1 = arith.constant 0 : i32
    return %c0_i32, %c0_i32_0 : i32, i32
  }
  func.func @transform_19(%arg0: i32) -> (i32, i32) {
    %c0_i32 = arith.constant 0 : i32
    %c0_i32_0 = arith.constant 0 : i32
    %c0_i32_1 = arith.constant 0 : i32
    return %c0_i32, %c0_i32_0 : i32, i32
  }
  func.func @transform_20(%arg0: i32) -> (i32, i32, i32) {
    %c0_i32 = arith.constant 0 : i32
    %c0_i32_0 = arith.constant 0 : i32
    %c0_i32_1 = arith.constant 0 : i32
    %c0_i32_2 = arith.constant 0 : i32
    return %c0_i32, %c0_i32_0, %c0_i32_1 : i32, i32, i32
  }
  func.func @transform_21(%arg0: i32) -> (i32, i32) {
    %c0_i32 = arith.constant 0 : i32
    %c0_i32_0 = arith.constant 0 : i32
    %c0_i32_1 = arith.constant 0 : i32
    return %c0_i32, %c0_i32_0 : i32, i32
  }
  func.func @transform_22(%arg0: i32) -> (i32, i32, i32) {
    %c0_i32 = arith.constant 0 : i32
    %c0_i32_0 = arith.constant 0 : i32
    %c0_i32_1 = arith.constant 0 : i32
    %c0_i32_2 = arith.constant 0 : i32
    return %c0_i32, %c0_i32_0, %c0_i32_1 : i32, i32, i32
  }
  func.func @transform_23(%arg0: i32) -> (i32, i32, i32) {
    %c0_i32 = arith.constant 0 : i32
    %c0_i32_0 = arith.constant 0 : i32
    %c0_i32_1 = arith.constant 0 : i32
    %c0_i32_2 = arith.constant 0 : i32
    return %c0_i32, %c0_i32_0, %c0_i32_1 : i32, i32, i32
  }
  func.func @transform_24(%arg0: i32) -> (i32, i32, i32) {
    %c0_i32 = arith.constant 0 : i32
    %c0_i32_0 = arith.constant 0 : i32
    %c0_i32_1 = arith.constant 0 : i32
    %c0_i32_2 = arith.constant 0 : i32
    return %c0_i32, %c0_i32_0, %c0_i32_1 : i32, i32, i32
  }
  func.func @transform_25(%arg0: i32) -> (i32, i32, i32) {
    %c0_i32 = arith.constant 0 : i32
    %c0_i32_0 = arith.constant 0 : i32
    %c0_i32_1 = arith.constant 0 : i32
    %c0_i32_2 = arith.constant 0 : i32
    return %c0_i32, %c0_i32_0, %c0_i32_1 : i32, i32, i32
  }
  func.func @transform_26(%arg0: i32) -> (i32, i32, i32) {
    %c0_i32 = arith.constant 0 : i32
    %c0_i32_0 = arith.constant 0 : i32
    %c0_i32_1 = arith.constant 0 : i32
    %c0_i32_2 = arith.constant 0 : i32
    return %c0_i32, %c0_i32_0, %c0_i32_1 : i32, i32, i32
  }
  func.func @transform_27(%arg0: i32) -> (i32, i32) {
    %c0_i32 = arith.constant 0 : i32
    %c0_i32_0 = arith.constant 0 : i32
    %c0_i32_1 = arith.constant 0 : i32
    return %c0_i32, %c0_i32_0 : i32, i32
  }
  func.func @transform_28(%arg0: i32) -> (i32, i32, i32) {
    %c0_i32 = arith.constant 0 : i32
    %c0_i32_0 = arith.constant 0 : i32
    %c0_i32_1 = arith.constant 0 : i32
    %c0_i32_2 = arith.constant 0 : i32
    return %c0_i32, %c0_i32_0, %c0_i32_1 : i32, i32, i32
  }
  func.func @transform_29(%arg0: i32) -> (i32, i32) {
    %c0_i32 = arith.constant 0 : i32
    %c0_i32_0 = arith.constant 0 : i32
    %c0_i32_1 = arith.constant 0 : i32
    return %c0_i32, %c0_i32_0 : i32, i32
  }
  func.func @transform_30(%arg0: i32) -> (i32, i32, i32) {
    %c0_i32 = arith.constant 0 : i32
    %c0_i32_0 = arith.constant 0 : i32
    %c0_i32_1 = arith.constant 0 : i32
    %c0_i32_2 = arith.constant 0 : i32
    return %c0_i32, %c0_i32_0, %c0_i32_1 : i32, i32, i32
  }
  func.func @transform_31(%arg0: i32) -> (i32, i32) {
    %c0_i32 = arith.constant 0 : i32
    %c0_i32_0 = arith.constant 0 : i32
    %c0_i32_1 = arith.constant 0 : i32
    return %c0_i32, %c0_i32_0 : i32, i32
  }
  func.func @transform_32(%arg0: i32) -> (i32, i32, i32) {
    %c0_i32 = arith.constant 0 : i32
    %c0_i32_0 = arith.constant 0 : i32
    %c0_i32_1 = arith.constant 0 : i32
    return %arg0, %c0_i32, %c0_i32_0 : i32, i32, i32
  }
  func.func @transform_33(%arg0: i32) -> (i32, i32, i32) {
    %c0_i32 = arith.constant 0 : i32
    %c0_i32_0 = arith.constant 0 : i32
    %c0_i32_1 = arith.constant 0 : i32
    return %arg0, %c0_i32, %c0_i32_0 : i32, i32, i32
  }
  func.func @transform_34(%arg0: i32) -> (i32, i32, i32) {
    %c0_i32 = arith.constant 0 : i32
    %c0_i32_0 = arith.constant 0 : i32
    %c0_i32_1 = arith.constant 0 : i32
    return %arg0, %c0_i32, %c0_i32_0 : i32, i32, i32
  }
  func.func @transform_35(%arg0: i32) -> (i32, i32, i32) {
    %c0_i32 = arith.constant 0 : i32
    %c0_i32_0 = arith.constant 0 : i32
    %c0_i32_1 = arith.constant 0 : i32
    return %arg0, %c0_i32, %c0_i32_0 : i32, i32, i32
  }
}

</mosaic_0001>

<bundles_post_ra>
// kernel: convolutional_vqvae_forward.1
= control target key start
LH: loop header
LB: loop body
LE: loop exit
PB: predicated region body
PF: predicated region fallthrough
CT: control target
= control target key end

     0   :  { %s9006_s6 = smov 1   ;;  %s9007_s10 = smov 2   ;;  %s10146_s0 = inlined_call_operand.smem [shape: u32[36], index: -1, kind: input, shape index: {}] }
   0x1   :  { %s9073_s5 = sld [smem:[%s10146_s0]]   ;;  %s9008_s14 = smov 3  }
   0x2   :  { %s9078_s9 = sld [smem:[%s10146_s0 + %s9006_s6]]   ;;  %s9009_s18 = smov 4  }
   0x3   :  { %s9083_s13 = sld [smem:[%s10146_s0 + %s9007_s10]]   ;;  %s9010_s22 = smov 5  }
   0x4   :  { %s9088_s17 = sld [smem:[%s10146_s0 + %s9008_s14]]   ;;  %s9011_s26 = smov 6  }
   0x5   :  { %s9093_s21 = sld [smem:[%s10146_s0 + %s9009_s18]]   ;;  %s9012_s30 = smov 7  }
   0x6   :  { %s9098_s25 = sld [smem:[%s10146_s0 + %s9010_s22]]   ;;  %s9013_s4 = smov 8  }
   0x7   :  { %10170 = sst [smem:[#allocation42_spill]] %s9073_s5  ;;  %s9014_s10 = smov 9  }
   0x8   :  { %10171 = sst [smem:[#allocation43_spill]] %s9078_s9  ;;  %s9015_s15 = smov 10  }
   0x9   :  { %10172 = sst [smem:[#allocation44_spill]] %s9083_s13  ;;  %s9016_s20 = smov 11  }
   0xa   :  { %10173 = sst [smem:[#allocation45_spill]] %s9088_s17  ;;  %s9018_s1 = smov 13  }
   0xb   :  { %s9103_s29 = sld [smem:[%s10146_s0 + %s9011_s26]]   ;;  %s9017_s26 = smov 12  }
   0xc   :  { %10174 = sst [smem:[#allocation46_spill]] %s9098_s25  ;;  %s9019_s7 = smov 14  }
   0xd   :  { %s9108_s3 = sld [smem:[%s10146_s0 + %s9012_s30]]   ;;  %s9021_s22 = smov 16  }
   0xe   :  { %s9113_s8 = sld [smem:[%s10146_s0 + %s9013_s4]]   ;;  %s9022_s28 = smov 17  }
   0xf   :  { %s9118_s14 = sld [smem:[%s10146_s0 + %s9014_s10]]  }
  0x10   :  { %s9123_s19 = sld [smem:[%s10146_s0 + %s9015_s15]]   ;;  %s9020_s15 = smov 15  }
  0x11   :  { %s9128_s24 = sld [smem:[%s10146_s0 + %s9016_s20]]  }
  0x12   :  { %s9133_s30 = sld [smem:[%s10146_s0 + %s9017_s26]]  }
  0x13   :  { %10175 = sst [smem:[#allocation47_spill]] %s9108_s3 }
  0x14   :  { %s9138_s6 = sld [smem:[%s10146_s0 + %s9018_s1]]  }
  0x15   :  { %10176 = sst [smem:[#allocation48_spill]] %s9118_s14 }
  0x16   :  { %10177 = sst [smem:[#allocation49_spill]] %s9123_s19 }
  0x17   :  { %s9143_s12 = sld [smem:[%s10146_s0 + %s9019_s7]]   ;;  %s9023_s7 = smov 18  }
  0x18   :  { %s9148_s20 = sld [smem:[%s10146_s0 + %s9020_s15]]   ;;  %s9024_s15 = smov 19  }
  0x19   :  { %s9153_s27 = sld [smem:[%s10146_s0 + %s9021_s22]]   ;;  %s9025_s22 = smov 20  }
  0x1a   :  { %10178 = sst [smem:[#allocation50_spill]] %s9138_s6 }
  0x1b   :  { %s9158_s4 = sld [smem:[%s10146_s0 + %s9022_s28]]   ;;  %s9026_s28 = smov 21  }
  0x1c   :  { %s9163_s14 = sld [smem:[%s10146_s0 + %s9023_s7]]   ;;  %s9027_s7 = smov 22  }
  0x1e   :  { %10179 = sst [smem:[#allocation51_spill]] %s9148_s20 }
  0x1f   :  { %10180 = sst [smem:[#allocation52_spill]] %s9153_s27 }
  0x20   :  { %s9168_s20 = sld [smem:[%s10146_s0 + %s9024_s15]]   ;;  %s9028_s15 = smov 23  }
  0x21   :  { %10181 = sst [smem:[#allocation53_spill]] %s9158_s4 }
  0x22   :  { %10182 = sst [smem:[#allocation54_spill]] %s9163_s14 }
  0x23   :  { %s9173_s27 = sld [smem:[%s10146_s0 + %s9025_s22]]   ;;  %s9029_s22 = smov 24  }
  0x24   :  { %s9178_s4 = sld [smem:[%s10146_s0 + %s9026_s28]]   ;;  %s9030_s28 = smov 25  }
  0x25   :  { %s9183_s14 = sld [smem:[%s10146_s0 + %s9027_s7]]   ;;  %s9031_s7 = smov 26  }
  0x26   :  { %10183 = sst [smem:[#allocation55_spill]] %s9168_s20 }
  0x27   :  { %s9188_s20 = sld [smem:[%s10146_s0 + %s9028_s15]]   ;;  %s9032_s15 = smov 27  }
  0x28   :  { %s9193_s3 = sld [smem:[%s10146_s0 + %s9029_s22]]   ;;  %s9033_s22 = smov 28  }
  0x29   :  { %s9198_s25 = sld [smem:[%s10146_s0 + %s9030_s28]]   ;;  %s9034_s28 = smov 29  }
  0x2a   :  { %10184 = sst [smem:[#allocation56_spill]] %s9178_s4 }
  0x2b   :  { %10185 = sst [smem:[#allocation57_spill]] %s9183_s14 }
  0x2c   :  { %s9203_s13 = sld [smem:[%s10146_s0 + %s9031_s7]]   ;;  %s9035_s7 = smov 30  }
  0x2d   :  { %s9208_s17 = sld [smem:[%s10146_s0 + %s9032_s15]]   ;;  %s9036_s15 = smov 31  }
  0x2e   :  { %10186 = sst [smem:[#allocation58_spill]] %s9193_s3 }
  0x2f   :  { %s9213_s9 = sld [smem:[%s10146_s0 + %s9033_s22]]   ;;  %s9037_s22 = smov 32  }
  0x30   :  { %s9218_s5 = sld [smem:[%s10146_s0 + %s9034_s28]]   ;;  %s9038_s28 = smov 33  }
  0x31   :  { %s9228_s3 = sld [smem:[%s10146_s0 + %s9036_s15]]   ;;  %s9040_s15 = smov 35  }
  0x32   :  { %10187 = sst [smem:[#allocation59_spill]] %s9203_s13 }
  0x33   :  { %s9223_s13 = sld [smem:[%s10146_s0 + %s9035_s7]]   ;;  %s9039_s7 = smov 34  }
  0x34   :  { %s9238_s14 = sld [smem:[%s10146_s0 + %s9038_s28]]  }
  0x35   :  { %10188 = sst [smem:[#allocation60_spill]] %s9213_s9 }
  0x36   :  { %10189 = sst [smem:[#allocation61_spill]] %s9218_s5 }
  0x37   :  { %10191 = sst [smem:[#allocation63_spill]] %s9228_s3 }
  0x38   :  { %s9233_s9 = sld [smem:[%s10146_s0 + %s9037_s22]]  }
  0x39   :  { %10190 = sst [smem:[#allocation62_spill]] %s9223_s13 }
  0x3a   :  { %s9243_s13 = sld [smem:[%s10146_s0 + %s9039_s7]]  }
  0x3b   :  { %s9248_s3 = sld [smem:[%s10146_s0 + %s9040_s15]]  }
  0x3c   :  { %77 = vsyncpa [#allocation4], 0 }
  0x3d   :  { %78 = vsyncpa [#allocation6], 0 }
  0x3e   :  { %79 = vsyncpa [#allocation9], 0 }
  0x3f   :  { %80 = vsyncpa [#allocation12], 0 }
  0x40   :  { %81 = vsyncpa [#allocation15], 0 }
  0x41   :  { %82 = vsyncpa [#allocation18], 0 }
  0x42   :  { %83 = vsyncpa [#allocation21], 0 }
  0x43   :  { %84 = vsyncpa [#allocation24], 0 }
  0x44   :  { %85 = vsyncpa [#allocation27], 0 }
  0x45   :  { %86 = vsyncpa [#allocation30], 0  ;;  %s9250_s22 = smov 0  }
  0x46 LB: > { %s10192_s6 = sld [smem:[#allocation50_spill]]  ;;  %s10193_s5 = sld [smem:[#allocation61_spill]]  ;;  %s9004_s22 = sphi %s9250_s22, %s92_s22  }
  0x47   : > { %s10194_s4 = sld [smem:[#allocation56_spill]]  ;;  %s10195_s19 = sld [smem:[#allocation49_spill]] }
  0x48   : > { %s9041_s0 = smov [#allocation5]   ;;  %s9256_s26 = sadd.s32 4294967295, %s9004_s22  }
  0x49   : > { %s914_s23 = sshll.u32 %s9041_s0, 4  ;;  %p6635_p0 = scmp.ge.s32.totalorder %s9004_s22, 1  ;;  %s9261_s23 = int_to_ptr.vmem [resolvable:$true] %s914_s23 }
  0x4a   : > { %p878_p1 = scmp.lt.s32.totalorder %s9004_s22, 3  ;;  %p10161_p2 = scmp.eq.s32.totalorder %s9256_s26, 0 }
  0x4b   : > { %s9042_s1 = smov [#allocation8]   ;;  %s9043_s10 = smov [#allocation11]  }
  0x4c   : > { %p9263_p3 = pnand %p6635_p0, %p878_p1  ;;  %s942_s2 = sshll.u32 %s9042_s1, 4  ;;  %s9269_s2 = int_to_ptr.vmem [resolvable:$true] %s942_s2 }
  0x4d   : > { %s965_s11 = sshll.u32 %s9043_s10, 4  ;;  %s9044_s15 = smov [#allocation14]   ;;  %s9277_s11 = int_to_ptr.vmem [resolvable:$true] %s965_s11 }
  0x4e   : > { %s10196_s28 = scalar_select %p9263_p3, 1, 0 }
  0x4f   : > { %p8263_p4 = pneg %p9263_p3  ;;  %s9279_s16 = sshll.u32 %s9044_s15, 4  ;;  %s992_s16 = int_to_ptr.vmem [resolvable:$true] %s9279_s16 }
  0x50   : > { %s8426_s18 = scalar_lea.hbm %s9103_s29, 16 }
  0x51   : > { %p9273_p5 = pnand %p10161_p2, %p8263_p4  ;;  %p8427_p6 = scmp.ne.s32.totalorder %s9103_s29, %s8426_s18 }
  0x52   : > { %p8433_p10 = scmp.lt.u32.totalorder %s8426_s18, %s9103_s29 }
  0x53   : > { %p9285_p7 = pneg %p9273_p5 }
  0x55   : > { %p8429_p8 = pnand %p9285_p7, %p8427_p6 }
  0x57   : > { %p8430_p9 = pneg %p8429_p8 }
  0x59   : > { %p8435_p11 = pnand %p8433_p10, %p8430_p9 }
  0x5b   : > { %8438 = shalt.err (!%p8435_p11)
}
  0x5c   : > { %s8439_s1 = scalar_lea.vmem %s9261_s23, 16  ;;  %s8446_s10 = scalar_lea.vmem %s9261_s23, 32 }
  0x5d   : > { %p8440_p12 = scmp.ne.s32.totalorder %s9261_s23, %s8439_s1  ;;  %p8447_p1 = scmp.lt.s32.totalorder %s9261_s23, %s9261_s23 }
  0x5e   : > { %p8448_p4 = scmp.lt.s32.totalorder %s8446_s10, %s8439_s1 }
  0x5f   : > { %p8442_p13 = pnand %p8440_p12, %p9285_p7 }
  0x60   : > { %p8449_p2 = por %p8448_p4, %p8447_p1 }
  0x61   : > { %p8443_p0 = pneg %p8442_p13 }
  0x63   : > { %p8450_p6 = pnand %p8449_p2, %p8443_p0 }
  0x65   : > { %8453 = shalt.err (!%p8450_p6)
}
  0x66   : > { %8269 = dma.hbm_to_vmem [thread:$0]  (!%p9273_p5), %s9103_s29, 16, %s9261_s23, [#allocation6]  }
  0x67   : > { %s8454_s15 = scalar_lea.hbm %s10195_s19, 16 }
  0x68   : > { %p8455_p8 = scmp.ne.s32.totalorder %s10195_s19, %s8454_s15  ;;  %p8461_p11 = scmp.lt.u32.totalorder %s8454_s15, %s10195_s19 }
  0x6a   : > { %p8457_p9 = pnand %p8455_p8, %p9285_p7 }
  0x6c   : > { %p8458_p10 = pneg %p8457_p9 }
  0x6e   : > { %p8463_p12 = pnand %p8461_p11, %p8458_p10 }
  0x70   : > { %8466 = shalt.err (!%p8463_p12)
}
  0x71   : > { %s8467_s18 = scalar_lea.vmem %s9269_s2, 16  ;;  %s8474_s1 = scalar_lea.vmem %s9269_s2, 32 }
  0x72   : > { %p8468_p2 = scmp.ne.s32.totalorder %s9269_s2, %s8467_s18  ;;  %p8475_p1 = scmp.lt.s32.totalorder %s9269_s2, %s9269_s2 }
  0x73   : > { %p8476_p4 = scmp.lt.s32.totalorder %s8474_s1, %s8467_s18 }
  0x74   : > { %p8470_p13 = pnand %p8468_p2, %p9285_p7 }
  0x75   : > { %p8477_p6 = por %p8476_p4, %p8475_p1 }
  0x76   : > { %p8471_p0 = pneg %p8470_p13 }
  0x78   : > { %p8478_p8 = pnand %p8477_p6, %p8471_p0 }
  0x7a   : > { %8481 = shalt.err (!%p8478_p8)
}
  0x7b   : > { %8275 = dma.hbm_to_vmem [thread:$0]  (!%p9273_p5), %s10195_s19, 16, %s9269_s2, [#allocation9]  }
  0x7c   : > { %s8482_s23 = scalar_lea.hbm %s9133_s30, 512 }
  0x7d   : > { %p8483_p9 = scmp.ne.s32.totalorder %s9133_s30, %s8482_s23  ;;  %p8489_p12 = scmp.lt.u32.totalorder %s8482_s23, %s9133_s30 }
  0x7f   : > { %p8485_p10 = pnand %p8483_p9, %p9285_p7 }
  0x81   : > { %p8486_p11 = pneg %p8485_p10 }
  0x83   : > { %p8491_p2 = pnand %p8489_p12, %p8486_p11 }
  0x85   : > { %8494 = shalt.err (!%p8491_p2)
}
  0x86   : > { %s8495_s10 = scalar_lea.vmem %s9277_s11, 512  ;;  %p8503_p4 = scmp.lt.s32.totalorder %s9277_s11, %s9277_s11 }
  0x87   : > { %p8496_p13 = scmp.ne.s32.totalorder %s9277_s11, %s8495_s10  ;;  %p8504_p6 = scmp.lt.s32.totalorder %s8495_s10, %s8495_s10 }
  0x89   : > { %p8498_p0 = pnand %p8496_p13, %p9285_p7  ;;  %p8505_p8 = por %p8504_p6, %p8503_p4 }
  0x8b   : > { %p8499_p1 = pneg %p8498_p0 }
  0x8d   : > { %p8506_p3 = pnand %p8505_p8, %p8499_p1 }
  0x8f   : > { %8509 = shalt.err (!%p8506_p3)
}
  0x90   : > { %s10164_s2 = smov 128   ;;  %s9046_s15 = smov 8  }
  0x91   : > { %8281 = dma.hbm_to_vmem [thread:$0]  (!%p9273_p5), %s9133_s30, 512, %s9277_s11, [#allocation12], %s10164_s2, %s10164_s2, %s9046_s15  }
  0x92   : > { %s8510_s18 = scalar_lea.hbm %s9143_s12, 512 }
  0x93   : > { %p8511_p9 = scmp.ne.s32.totalorder %s9143_s12, %s8510_s18  ;;  %p8517_p11 = scmp.lt.u32.totalorder %s8510_s18, %s9143_s12 }
  0x95   : > { %p8513_p3 = pnand %p8511_p9, %p9285_p7 }
  0x97   : > { %p8514_p10 = pneg %p8513_p3 }
  0x99   : > { %p8519_p12 = pnand %p8517_p11, %p8514_p10 }
  0x9b   : > { %8522 = shalt.err (!%p8519_p12)
}
  0x9c   : > { %s8523_s1 = scalar_lea.vmem %s992_s16, 512  ;;  %p8531_p1 = scmp.lt.s32.totalorder %s992_s16, %s992_s16 }
  0x9d   : > { %p8524_p2 = scmp.ne.s32.totalorder %s992_s16, %s8523_s1  ;;  %p8532_p4 = scmp.lt.s32.totalorder %s8523_s1, %s8523_s1 }
  0x9f   : > { %p8526_p13 = pnand %p8524_p2, %p9285_p7  ;;  %p8533_p6 = por %p8532_p4, %p8531_p1 }
  0xa1   : > { %p8527_p0 = pneg %p8526_p13 }
  0xa3   : > { %p8534_p8 = pnand %p8533_p6, %p8527_p0 }
  0xa5   : > { %8537 = shalt.err (!%p8534_p8)
}
  0xa6   : > { %8287 = dma.hbm_to_vmem [thread:$0]  (!%p9273_p5), %s9143_s12, 512, %s992_s16, [#allocation15], %s10164_s2, %s10164_s2, %s9046_s15  }
  0xa7   : > { %s9047_s11 = smov [#allocation17]   ;;  %s9048_s10 = smov [#allocation20]  }
  0xa8   : > { %s1033_s23 = sshll.u32 %s9047_s11, 4  ;;  %s1056_s18 = sshll.u32 %s9048_s10, 4  ;;  %s1034_s23 = int_to_ptr.vmem [resolvable:$true] %s1033_s23  ;;  %s1057_s18 = int_to_ptr.vmem [resolvable:$true] %s1056_s18 }
  0xa9   : > { %s8538_s1 = scalar_lea.hbm %s10194_s4, 16 }
  0xaa   : > { %p8539_p9 = scmp.ne.s32.totalorder %s10194_s4, %s8538_s1  ;;  %p8545_p11 = scmp.lt.u32.totalorder %s8538_s1, %s10194_s4 }
  0xac   : > { %p8541_p3 = pnand %p8539_p9, %p9285_p7 }
  0xae   : > { %p8542_p10 = pneg %p8541_p3 }
  0xb0   : > { %p8547_p12 = pnand %p8545_p11, %p8542_p10 }
  0xb2   : > { %8550 = shalt.err (!%p8547_p12)
}
  0xb3   : > { %s8551_s19 = scalar_lea.vmem %s1034_s23, 16  ;;  %s8558_s16 = scalar_lea.vmem %s1034_s23, 32 }
  0xb4   : > { %p8552_p2 = scmp.ne.s32.totalorder %s1034_s23, %s8551_s19  ;;  %p8559_p1 = scmp.lt.s32.totalorder %s1034_s23, %s1034_s23 }
  0xb5   : > { %p8560_p4 = scmp.lt.s32.totalorder %s8558_s16, %s8551_s19 }
  0xb6   : > { %p8554_p13 = pnand %p8552_p2, %p9285_p7 }
  0xb7   : > { %p8561_p6 = por %p8560_p4, %p8559_p1 }
  0xb8   : > { %p8555_p0 = pneg %p8554_p13 }
  0xba   : > { %p8562_p8 = pnand %p8561_p6, %p8555_p0 }
  0xbc   : > { %8565 = shalt.err (!%p8562_p8)
}
  0xbd   : > { %8293 = dma.hbm_to_vmem [thread:$0]  (!%p9273_p5), %s10194_s4, 16, %s1034_s23, [#allocation18]  }
  0xbe   : > { %s8566_s11 = scalar_lea.hbm %s9188_s20, 512 }
  0xbf   : > { %p8567_p9 = scmp.ne.s32.totalorder %s9188_s20, %s8566_s11  ;;  %p8573_p11 = scmp.lt.u32.totalorder %s8566_s11, %s9188_s20 }
  0xc1   : > { %p8569_p3 = pnand %p8567_p9, %p9285_p7 }
  0xc3   : > { %p8570_p10 = pneg %p8569_p3 }
  0xc5   : > { %p8575_p12 = pnand %p8573_p11, %p8570_p10 }
  0xc7   : > { %8578 = shalt.err (!%p8575_p12)
}
  0xc8   : > { %s8579_s19 = scalar_lea.vmem %s1057_s18, 512  ;;  %p8587_p1 = scmp.lt.s32.totalorder %s1057_s18, %s1057_s18 }
  0xc9   : > { %p8580_p2 = scmp.ne.s32.totalorder %s1057_s18, %s8579_s19  ;;  %p8588_p4 = scmp.lt.s32.totalorder %s8579_s19, %s8579_s19 }
  0xcb   : > { %p8582_p13 = pnand %p8580_p2, %p9285_p7  ;;  %p8589_p6 = por %p8588_p4, %p8587_p1 }
  0xcd   : > { %p8583_p0 = pneg %p8582_p13 }
  0xcf   : > { %p8590_p8 = pnand %p8589_p6, %p8583_p0 }
  0xd1   : > { %8593 = shalt.err (!%p8590_p8)
}
  0xd2   : > { %8299 = dma.hbm_to_vmem [thread:$0]  (!%p9273_p5), %s9188_s20, 512, %s1057_s18, [#allocation21], %s10164_s2, %s10164_s2, %s9046_s15  }
  0xd3   : > { %s9049_s23 = smov [#allocation23]   ;;  %s9050_s1 = smov [#allocation26]  }
  0xd4   : > { %s1082_s10 = sshll.u32 %s9049_s23, 4  ;;  %s1109_s16 = sshll.u32 %s9050_s1, 4  ;;  %s1083_s10 = int_to_ptr.vmem [resolvable:$true] %s1082_s10  ;;  %s1110_s16 = int_to_ptr.vmem [resolvable:$true] %s1109_s16 }
  0xd5   : > { %s8594_s11 = scalar_lea.hbm %s9198_s25, 512 }
  0xd6   : > { %p8595_p9 = scmp.ne.s32.totalorder %s9198_s25, %s8594_s11  ;;  %p8601_p11 = scmp.lt.u32.totalorder %s8594_s11, %s9198_s25 }
  0xd8   : > { %p8597_p3 = pnand %p8595_p9, %p9285_p7 }
  0xda   : > { %p8598_p10 = pneg %p8597_p3 }
  0xdc   : > { %p8603_p12 = pnand %p8601_p11, %p8598_p10 }
  0xde   : > { %8606 = shalt.err (!%p8603_p12)
}
  0xdf   : > { %s8607_s19 = scalar_lea.vmem %s1083_s10, 512  ;;  %p8615_p1 = scmp.lt.s32.totalorder %s1083_s10, %s1083_s10 }
  0xe0   : > { %p8608_p2 = scmp.ne.s32.totalorder %s1083_s10, %s8607_s19  ;;  %p8616_p4 = scmp.lt.s32.totalorder %s8607_s19, %s8607_s19 }
  0xe2   : > { %p8610_p13 = pnand %p8608_p2, %p9285_p7  ;;  %p8617_p6 = por %p8616_p4, %p8615_p1 }
  0xe4   : > { %p8611_p0 = pneg %p8610_p13 }
  0xe6   : > { %p8618_p8 = pnand %p8617_p6, %p8611_p0 }
  0xe8   : > { %8621 = shalt.err (!%p8618_p8)
}
  0xe9   : > { %8305 = dma.hbm_to_vmem [thread:$0]  (!%p9273_p5), %s9198_s25, 512, %s1083_s10, [#allocation24], %s10164_s2, %s10164_s2, %s9046_s15  }
  0xea   : > { %s8622_s18 = scalar_lea.hbm %s9208_s17, 16 }
  0xeb   : > { %p8623_p9 = scmp.ne.s32.totalorder %s9208_s17, %s8622_s18  ;;  %p8629_p11 = scmp.lt.u32.totalorder %s8622_s18, %s9208_s17 }
  0xed   : > { %p8625_p3 = pnand %p8623_p9, %p9285_p7 }
  0xef   : > { %p8626_p10 = pneg %p8625_p3 }
  0xf1   : > { %p8631_p12 = pnand %p8629_p11, %p8626_p10 }
  0xf3   : > { %8634 = shalt.err (!%p8631_p12)
}
  0xf4   : > { %s8635_s23 = scalar_lea.vmem %s1110_s16, 16  ;;  %s8642_s1 = scalar_lea.vmem %s1110_s16, 32 }
  0xf5   : > { %p8636_p2 = scmp.ne.s32.totalorder %s1110_s16, %s8635_s23  ;;  %p8643_p1 = scmp.lt.s32.totalorder %s1110_s16, %s1110_s16 }
  0xf6   : > { %p8644_p4 = scmp.lt.s32.totalorder %s8642_s1, %s8635_s23 }
  0xf7   : > { %p8638_p13 = pnand %p8636_p2, %p9285_p7 }
  0xf8   : > { %p8645_p6 = por %p8644_p4, %p8643_p1 }
  0xf9   : > { %p8639_p0 = pneg %p8638_p13 }
  0xfb   : > { %p8646_p8 = pnand %p8645_p6, %p8639_p0 }
  0xfd   : > { %8649 = shalt.err (!%p8646_p8)
}
  0xfe   : > { %8311 = dma.hbm_to_vmem [thread:$0]  (!%p9273_p5), %s9208_s17, 16, %s1110_s16, [#allocation27]  }
  0xff   : > { %s9051_s10 = smov [#allocation29]   ;;  %s9052_s19 = smov [#allocation3]  }
 0x100   : > { %s1133_s11 = sshll.u32 %s9051_s10, 4  ;;  %s900_s18 = sshll.u32 %s9052_s19, 4  ;;  %s1134_s11 = int_to_ptr.vmem [resolvable:$true] %s1133_s11  ;;  %s901_s18 = int_to_ptr.vmem [resolvable:$true] %s900_s18 }
 0x101   : > { %s8650_s2 = scalar_lea.hbm %s10193_s5, 16 }
 0x102   : > { %p8651_p9 = scmp.ne.s32.totalorder %s10193_s5, %s8650_s2  ;;  %p8657_p11 = scmp.lt.u32.totalorder %s8650_s2, %s10193_s5 }
 0x104   : > { %p8653_p3 = pnand %p8651_p9, %p9285_p7 }
 0x106   : > { %p8654_p10 = pneg %p8653_p3 }
 0x108   : > { %p8659_p12 = pnand %p8657_p11, %p8654_p10 }
 0x10a   : > { %8662 = shalt.err (!%p8659_p12)
}
 0x10b   : > { %s8663_s23 = scalar_lea.vmem %s1134_s11, 16  ;;  %s8670_s16 = scalar_lea.vmem %s1134_s11, 32 }
 0x10c   : > { %p8664_p2 = scmp.ne.s32.totalorder %s1134_s11, %s8663_s23  ;;  %p8671_p1 = scmp.lt.s32.totalorder %s1134_s11, %s1134_s11 }
 0x10d   : > { %p8672_p4 = scmp.lt.s32.totalorder %s8670_s16, %s8663_s23 }
 0x10e   : > { %p8666_p13 = pnand %p8664_p2, %p9285_p7 }
 0x10f   : > { %p8673_p6 = por %p8672_p4, %p8671_p1 }
 0x110   : > { %p8667_p0 = pneg %p8666_p13 }
 0x112   : > { %p8674_p8 = pnand %p8673_p6, %p8667_p0 }
 0x114   : > { %8677 = shalt.err (!%p8674_p8)
}
 0x115   : > { %8317 = dma.hbm_to_vmem [thread:$0]  (!%p9273_p5), %s10193_s5, 16, %s1134_s11, [#allocation30]  }
 0x116   : > { %s8678_s2 = scalar_lea.hbm %s9093_s21, 16 }
 0x117   : > { %p8679_p9 = scmp.ne.s32.totalorder %s9093_s21, %s8678_s2  ;;  %p8685_p11 = scmp.lt.u32.totalorder %s8678_s2, %s9093_s21 }
 0x119   : > { %p8681_p3 = pnand %p8679_p9, %p9285_p7 }
 0x11b   : > { %p8682_p10 = pneg %p8681_p3 }
 0x11d   : > { %p8687_p12 = pnand %p8685_p11, %p8682_p10 }
 0x11f   : > { %8690 = shalt.err (!%p8687_p12)
}
 0x120   : > { %s8691_s1 = scalar_lea.vmem %s901_s18, 16  ;;  %s8698_s10 = scalar_lea.vmem %s901_s18, 32 }
 0x121   : > { %p8692_p2 = scmp.ne.s32.totalorder %s901_s18, %s8691_s1  ;;  %p8699_p1 = scmp.lt.s32.totalorder %s901_s18, %s901_s18 }
 0x122   : > { %p8700_p4 = scmp.lt.s32.totalorder %s8698_s10, %s8691_s1 }
 0x123   : > { %p8694_p13 = pnand %p8692_p2, %p9285_p7 }
 0x124   : > { %p8701_p6 = por %p8700_p4, %p8699_p1 }
 0x125   : > { %p8695_p0 = pneg %p8694_p13 }
 0x127   : > { %p8702_p8 = pnand %p8701_p6, %p8695_p0 }
 0x129   : > { %8705 = shalt.err (!%p8702_p8)
}
 0x12a   : > { %8266 = dma.hbm_to_vmem [thread:$0]  (!%p9273_p5), %s9093_s21, 16, %s901_s18, [#allocation4]  }
 0x12b   : > { %s9053_s11 = smov [#allocation7]   ;;  %s9054_s23 = smov [#allocation10]  }
 0x12c   : > { %s928_s19 = sshll.u32 %s9053_s11, 4  ;;  %s952_s16 = sshll.u32 %s9054_s23, 4  ;;  %s929_s19 = int_to_ptr.vmem [resolvable:$true] %s928_s19  ;;  %s953_s16 = int_to_ptr.vmem [resolvable:$true] %s952_s16 }
 0x12d   : > { %s8706_s2 = scalar_lea.hbm %s9113_s8, 16 }
 0x12e   : > { %p8707_p9 = scmp.ne.s32.totalorder %s9113_s8, %s8706_s2  ;;  %p8713_p11 = scmp.lt.u32.totalorder %s8706_s2, %s9113_s8 }
 0x130   : > { %p8709_p3 = pnand %p8707_p9, %p9285_p7 }
 0x132   : > { %p8710_p10 = pneg %p8709_p3 }
 0x134   : > { %p8715_p12 = pnand %p8713_p11, %p8710_p10 }
 0x136   : > { %8718 = shalt.err (!%p8715_p12)
}
 0x137   : > { %s8719_s1 = scalar_lea.vmem %s929_s19, 16  ;;  %s8726_s18 = scalar_lea.vmem %s929_s19, 32 }
 0x138   : > { %p8720_p2 = scmp.ne.s32.totalorder %s929_s19, %s8719_s1  ;;  %p8727_p1 = scmp.lt.s32.totalorder %s929_s19, %s929_s19 }
 0x139   : > { %p8728_p4 = scmp.lt.s32.totalorder %s8726_s18, %s8719_s1 }
 0x13a   : > { %p8722_p13 = pnand %p8720_p2, %p9285_p7 }
 0x13b   : > { %p8729_p6 = por %p8728_p4, %p8727_p1 }
 0x13c   : > { %p8723_p0 = pneg %p8722_p13 }
 0x13e   : > { %p8730_p8 = pnand %p8729_p6, %p8723_p0 }
 0x140   : > { %8733 = shalt.err (!%p8730_p8)
}
 0x141   : > { %8272 = dma.hbm_to_vmem [thread:$0]  (!%p9273_p5), %s9113_s8, 16, %s929_s19, [#allocation6]  }
 0x142   : > { %s8734_s10 = scalar_lea.hbm %s9128_s24, 1536 }
 0x143   : > { %p8735_p9 = scmp.ne.s32.totalorder %s9128_s24, %s8734_s10  ;;  %p8741_p11 = scmp.lt.u32.totalorder %s8734_s10, %s9128_s24 }
 0x145   : > { %p8737_p3 = pnand %p8735_p9, %p9285_p7 }
 0x147   : > { %p8738_p10 = pneg %p8737_p3 }
 0x149   : > { %p8743_p12 = pnand %p8741_p11, %p8738_p10 }
 0x14b   : > { %8746 = shalt.err (!%p8743_p12)
}
 0x14c   : > { %s8747_s11 = scalar_lea.vmem %s953_s16, 1536  ;;  %p8755_p1 = scmp.lt.s32.totalorder %s953_s16, %s953_s16 }
 0x14d   : > { %p8748_p2 = scmp.ne.s32.totalorder %s953_s16, %s8747_s11  ;;  %p8756_p4 = scmp.lt.s32.totalorder %s8747_s11, %s8747_s11 }
 0x14f   : > { %p8750_p13 = pnand %p8748_p2, %p9285_p7  ;;  %p8757_p6 = por %p8756_p4, %p8755_p1 }
 0x151   : > { %p8751_p0 = pneg %p8750_p13 }
 0x153   : > { %p8758_p8 = pnand %p8757_p6, %p8751_p0 }
 0x155   : > { %8761 = shalt.err (!%p8758_p8)
}
 0x156   : > { %s10199_s19 = smov 128   ;;  %s9055_s23 = smov [#allocation13]  }
 0x157   : > { %8278 = dma.hbm_to_vmem [thread:$0]  (!%p9273_p5), %s9128_s24, 1536, %s953_s16, [#allocation9], %s10199_s19, %s10199_s19, %s9046_s15  }
 0x158   : > { %s978_s2 = sshll.u32 %s9055_s23, 4  ;;  %s9056_s1 = smov [#allocation16]   ;;  %s979_s2 = int_to_ptr.vmem [resolvable:$true] %s978_s2 }
 0x159   : > { %s1019_s18 = sshll.u32 %s9056_s1, 4  ;;  %s8762_s10 = scalar_lea.hbm %s10192_s6, 1536  ;;  %s1020_s18 = int_to_ptr.vmem [resolvable:$true] %s1019_s18 }
 0x15a   : > { %p8763_p9 = scmp.ne.s32.totalorder %s10192_s6, %s8762_s10  ;;  %p8769_p11 = scmp.lt.u32.totalorder %s8762_s10, %s10192_s6 }
 0x15c   : > { %p8765_p3 = pnand %p8763_p9, %p9285_p7 }
 0x15e   : > { %p8766_p10 = pneg %p8765_p3 }
 0x160   : > { %p8771_p12 = pnand %p8769_p11, %p8766_p10 }
 0x162   : > { %8774 = shalt.err (!%p8771_p12)
}
 0x163   : > { %s8775_s11 = scalar_lea.vmem %s979_s2, 1536  ;;  %p8783_p1 = scmp.lt.s32.totalorder %s979_s2, %s979_s2 }
 0x164   : > { %p8776_p2 = scmp.ne.s32.totalorder %s979_s2, %s8775_s11  ;;  %p8784_p4 = scmp.lt.s32.totalorder %s8775_s11, %s8775_s11 }
 0x166   : > { %p8778_p13 = pnand %p8776_p2, %p9285_p7  ;;  %p8785_p6 = por %p8784_p4, %p8783_p1 }
 0x168   : > { %p8779_p0 = pneg %p8778_p13 }
 0x16a   : > { %p8786_p8 = pnand %p8785_p6, %p8779_p0 }
 0x16c   : > { %8789 = shalt.err (!%p8786_p8)
}
 0x16d   : > { %8284 = dma.hbm_to_vmem [thread:$0]  (!%p9273_p5), %s10192_s6, 1536, %s979_s2, [#allocation12], %s10199_s19, %s10199_s19, %s9046_s15  }
 0x16e   : > { %s8790_s16 = scalar_lea.hbm %s9173_s27, 768 }
 0x16f   : > { %p8791_p9 = scmp.ne.s32.totalorder %s9173_s27, %s8790_s16  ;;  %p8797_p11 = scmp.lt.u32.totalorder %s8790_s16, %s9173_s27 }
 0x171   : > { %p8793_p3 = pnand %p8791_p9, %p9285_p7 }
 0x173   : > { %p8794_p10 = pneg %p8793_p3 }
 0x175   : > { %p8799_p12 = pnand %p8797_p11, %p8794_p10 }
 0x177   : > { %8802 = shalt.err (!%p8799_p12)
}
 0x178   : > { %s8803_s23 = scalar_lea.vmem %s1020_s18, 768  ;;  %p8811_p1 = scmp.lt.s32.totalorder %s1020_s18, %s1020_s18 }
 0x179   : > { %p8804_p2 = scmp.ne.s32.totalorder %s1020_s18, %s8803_s23  ;;  %p8812_p4 = scmp.lt.s32.totalorder %s8803_s23, %s8803_s23 }
 0x17b   : > { %p8806_p13 = pnand %p8804_p2, %p9285_p7  ;;  %p8813_p6 = por %p8812_p4, %p8811_p1 }
 0x17d   : > { %p8807_p0 = pneg %p8806_p13 }
 0x17f   : > { %p8814_p8 = pnand %p8813_p6, %p8807_p0 }
 0x181   : > { %8817 = shalt.err (!%p8814_p8)
}
 0x182   : > { %s10200_s2 = sld [smem:[#allocation57_spill]]  ;;  %s9057_s1 = smov [#allocation19]  }
 0x183   : > { %8290 = dma.hbm_to_vmem [thread:$0]  (!%p9273_p5), %s9173_s27, 768, %s1020_s18, [#allocation15], %s10199_s19, %s10199_s19, %s9046_s15  }
 0x184   : > { %s1043_s10 = sshll.u32 %s9057_s1, 4  ;;  %s9058_s11 = smov [#allocation22]   ;;  %s1044_s10 = int_to_ptr.vmem [resolvable:$true] %s1043_s10 }
 0x185   : > { %s1069_s16 = sshll.u32 %s9058_s11, 4  ;;  %s1070_s16 = int_to_ptr.vmem [resolvable:$true] %s1069_s16 }
 0x188   : > { %s8818_s23 = scalar_lea.hbm %s10200_s2, 1536 }
 0x189   : > { %p8819_p9 = scmp.ne.s32.totalorder %s10200_s2, %s8818_s23  ;;  %p8825_p11 = scmp.lt.u32.totalorder %s8818_s23, %s10200_s2 }
 0x18b   : > { %p8821_p3 = pnand %p8819_p9, %p9285_p7 }
 0x18d   : > { %p8822_p10 = pneg %p8821_p3 }
 0x18f   : > { %p8827_p12 = pnand %p8825_p11, %p8822_p10 }
 0x191   : > { %8830 = shalt.err (!%p8827_p12)
}
 0x192   : > { %s8831_s4 = scalar_lea.vmem %s1044_s10, 1536  ;;  %p8839_p1 = scmp.lt.s32.totalorder %s1044_s10, %s1044_s10 }
 0x193   : > { %p8832_p2 = scmp.ne.s32.totalorder %s1044_s10, %s8831_s4  ;;  %p8840_p4 = scmp.lt.s32.totalorder %s8831_s4, %s8831_s4 }
 0x195   : > { %p8834_p13 = pnand %p8832_p2, %p9285_p7  ;;  %p8841_p6 = por %p8840_p4, %p8839_p1 }
 0x197   : > { %p8835_p0 = pneg %p8834_p13 }
 0x199   : > { %p8842_p8 = pnand %p8841_p6, %p8835_p0 }
 0x19b   : > { %8845 = shalt.err (!%p8842_p8)
}
 0x19c   : > { %s10201_s18 = sld [smem:[#allocation58_spill]] }
 0x19d   : > { %8296 = dma.hbm_to_vmem [thread:$0]  (!%p9273_p5), %s10200_s2, 1536, %s1044_s10, [#allocation18], %s10199_s19, %s10199_s19, %s9046_s15  }
 0x1a2   : > { %s8846_s1 = scalar_lea.hbm %s10201_s18, 1536 }
 0x1a3   : > { %p8847_p9 = scmp.ne.s32.totalorder %s10201_s18, %s8846_s1  ;;  %p8853_p11 = scmp.lt.u32.totalorder %s8846_s1, %s10201_s18 }
 0x1a5   : > { %p8849_p3 = pnand %p8847_p9, %p9285_p7 }
 0x1a7   : > { %p8850_p10 = pneg %p8849_p3 }
 0x1a9   : > { %p8855_p12 = pnand %p8853_p11, %p8850_p10 }
 0x1ab   : > { %8858 = shalt.err (!%p8855_p12)
}
 0x1ac   : > { %s8859_s4 = scalar_lea.vmem %s1070_s16, 1536  ;;  %p8867_p1 = scmp.lt.s32.totalorder %s1070_s16, %s1070_s16 }
 0x1ad   : > { %p8860_p2 = scmp.ne.s32.totalorder %s1070_s16, %s8859_s4  ;;  %p8868_p4 = scmp.lt.s32.totalorder %s8859_s4, %s8859_s4 }
 0x1af   : > { %p8862_p13 = pnand %p8860_p2, %p9285_p7  ;;  %p8869_p6 = por %p8868_p4, %p8867_p1 }
 0x1b1   : > { %p8863_p0 = pneg %p8862_p13 }
 0x1b3   : > { %p8870_p8 = pnand %p8869_p6, %p8863_p0 }
 0x1b5   : > { %8873 = shalt.err (!%p8870_p8)
}
 0x1b6   : > { %s10202_s10 = sld [smem:[#allocation59_spill]]  ;;  %s9059_s11 = smov [#allocation25]  }
 0x1b7   : > { %8302 = dma.hbm_to_vmem [thread:$0]  (!%p9273_p5), %s10201_s18, 1536, %s1070_s16, [#allocation21], %s10199_s19, %s10199_s19, %s9046_s15  }
 0x1b8   : > { %s1095_s23 = sshll.u32 %s9059_s11, 4  ;;  %s9060_s1 = smov [#allocation28]   ;;  %s1096_s23 = int_to_ptr.vmem [resolvable:$true] %s1095_s23 }
 0x1b9   : > { %s1119_s2 = sshll.u32 %s9060_s1, 4  ;;  %s1120_s2 = int_to_ptr.vmem [resolvable:$true] %s1119_s2 }
 0x1bc   : > { %s8874_s4 = scalar_lea.hbm %s10202_s10, 1536 }
 0x1bd   : > { %p8875_p9 = scmp.ne.s32.totalorder %s10202_s10, %s8874_s4  ;;  %p8881_p11 = scmp.lt.u32.totalorder %s8874_s4, %s10202_s10 }
 0x1bf   : > { %p8877_p3 = pnand %p8875_p9, %p9285_p7 }
 0x1c1   : > { %p8878_p10 = pneg %p8877_p3 }
 0x1c3   : > { %p8883_p12 = pnand %p8881_p11, %p8878_p10 }
 0x1c5   : > { %8886 = shalt.err (!%p8883_p12)
}
 0x1c6   : > { %s8887_s5 = scalar_lea.vmem %s1096_s23, 1536  ;;  %p8895_p1 = scmp.lt.s32.totalorder %s1096_s23, %s1096_s23 }
 0x1c7   : > { %p8888_p2 = scmp.ne.s32.totalorder %s1096_s23, %s8887_s5  ;;  %p8896_p4 = scmp.lt.s32.totalorder %s8887_s5, %s8887_s5 }
 0x1c9   : > { %p8890_p13 = pnand %p8888_p2, %p9285_p7  ;;  %p8897_p6 = por %p8896_p4, %p8895_p1 }
 0x1cb   : > { %p8891_p0 = pneg %p8890_p13 }
 0x1cd   : > { %p8898_p8 = pnand %p8897_p6, %p8891_p0 }
 0x1cf   : > { %8901 = shalt.err (!%p8898_p8)
}
 0x1d0   : > { %s10203_s16 = sld [smem:[#allocation60_spill]] }
 0x1d1   : > { %8308 = dma.hbm_to_vmem [thread:$0]  (!%p9273_p5), %s10202_s10, 1536, %s1096_s23, [#allocation24], %s10199_s19, %s10199_s19, %s9046_s15  }
 0x1d6   : > { %s8902_s11 = scalar_lea.hbm %s10203_s16, 1536 }
 0x1d7   : > { %p8903_p9 = scmp.ne.s32.totalorder %s10203_s16, %s8902_s11  ;;  %p8909_p11 = scmp.lt.u32.totalorder %s8902_s11, %s10203_s16 }
 0x1d9   : > { %p8905_p3 = pnand %p8903_p9, %p9285_p7 }
 0x1db   : > { %p8906_p10 = pneg %p8905_p3 }
 0x1dd   : > { %p8911_p12 = pnand %p8909_p11, %p8906_p10 }
 0x1df   : > { %8914 = shalt.err (!%p8911_p12)
}
 0x1e0   : > { %s8915_s5 = scalar_lea.vmem %s1120_s2, 1536  ;;  %p8923_p1 = scmp.lt.s32.totalorder %s1120_s2, %s1120_s2 }
 0x1e1   : > { %p8916_p2 = scmp.ne.s32.totalorder %s1120_s2, %s8915_s5  ;;  %p8924_p4 = scmp.lt.s32.totalorder %s8915_s5, %s8915_s5 }
 0x1e3   : > { %p8918_p13 = pnand %p8916_p2, %p9285_p7  ;;  %p8925_p6 = por %p8924_p4, %p8923_p1 }
 0x1e5   : > { %p8919_p0 = pneg %p8918_p13 }
 0x1e7   : > { %p8926_p8 = pnand %p8925_p6, %p8919_p0 }
 0x1e9   : > { %8929 = shalt.err (!%p8926_p8)
}
 0x1ea   : > { %s10204_s23 = sld [smem:[#allocation63_spill]]  ;;  %s9061_s1 = smov [#allocation31]  }
 0x1eb   : > { %8314 = dma.hbm_to_vmem [thread:$0]  (!%p9273_p5), %s10203_s16, 1536, %s1120_s2, [#allocation27], %s10199_s19, %s10199_s19, %s9046_s15  }
 0x1ec   : > { %s1147_s4 = sshll.u32 %s9061_s1, 4  ;;  %s1148_s4 = int_to_ptr.vmem [resolvable:$true] %s1147_s4 }
 0x1f0   : > { %s8930_s11 = scalar_lea.hbm %s10204_s23, 16 }
 0x1f1   : > { %p8931_p9 = scmp.ne.s32.totalorder %s10204_s23, %s8930_s11  ;;  %p8937_p11 = scmp.lt.u32.totalorder %s8930_s11, %s10204_s23 }
 0x1f3   : > { %p8933_p3 = pnand %p8931_p9, %p9285_p7 }
 0x1f5   : > { %p8934_p10 = pneg %p8933_p3 }
 0x1f7   : > { %p8939_p12 = pnand %p8937_p11, %p8934_p10 }
 0x1f9   : > { %8942 = shalt.err (!%p8939_p12)
}
 0x1fa   : > { %s8943_s5 = scalar_lea.vmem %s1148_s4, 16  ;;  %s8950_s6 = scalar_lea.vmem %s1148_s4, 32 }
 0x1fb   : > { %p8944_p2 = scmp.ne.s32.totalorder %s1148_s4, %s8943_s5  ;;  %p8951_p1 = scmp.lt.s32.totalorder %s1148_s4, %s1148_s4 }
 0x1fc   : > { %p8952_p4 = scmp.lt.s32.totalorder %s8950_s6, %s8943_s5 }
 0x1fd   : > { %p8946_p13 = pnand %p8944_p2, %p9285_p7 }
 0x1fe   : > { %p8953_p6 = por %p8952_p4, %p8951_p1 }
 0x1ff   : > { %p8947_p0 = pneg %p8946_p13 }
 0x201   : > { %p8954_p8 = pnand %p8953_p6, %p8947_p0 }
 0x203   : > { %8957 = shalt.err (!%p8954_p8)
}
 0x204   : > { %8320 = dma.hbm_to_vmem [thread:$0]  (!%p9273_p5), %s10204_s23, 16, %s1148_s4, [#allocation30]  }
 0x205   : > { %p10205_p9 = scmp.ne.s32.totalorder %s10196_s28, 0 }
 0x206   : > { %p10206_p3 = scmp.eq.s32.totalorder (!%p10205_p9), %s9256_s26, 0 }
 0x207   : > { %1168 = sbr.rel (%p10205_p9) target bundleno = 6157 (0x180d), region = 148 }
 0x20e   : > { %8963 = dma.done.wait (%p10206_p3), [#allocation4], 16   ;;  %p10207_p10 = pmov %p10206_p3 }
 0x20f   : > { %p10208_p7 = pmov %p10206_p3 }
 0x210   : > { %8965 = vsyncadd (%p10207_p10), [#allocation4], 4294967280 }
 0x211   : > { %8967 = dma.done.wait (%p10208_p7), [#allocation6], 32   ;;  %p10209_p11 = pmov %p10206_p3 }
 0x212   : > { %p10210_p12 = pmov %p10206_p3 }
 0x213   : > { %8969 = vsyncadd (%p10209_p11), [#allocation6], 4294967264 }
 0x214   : > { %8971 = dma.done.wait (%p10210_p12), [#allocation9], 1552   ;;  %p10211_p5 = pmov %p10206_p3 }
 0x215   : > { %p10212_p2 = pmov %p10206_p3 }
 0x216   : > { %8973 = vsyncadd (%p10211_p5), [#allocation9], 4294965744 }
 0x217   : > { %8975 = dma.done.wait (%p10212_p2), [#allocation12], 2048   ;;  %p10213_p13 = pmov %p10212_p2 }
 0x218   : > { %p10214_p0 = pmov %p10212_p2 }
 0x219   : > { %8977 = vsyncadd (%p10213_p13), [#allocation12], 4294965248 }
 0x21a   : > { %8979 = dma.done.wait (%p10214_p0), [#allocation15], 1280   ;;  %p10215_p1 = pmov %p10214_p0 }
 0x21b   : > { %p10216_p4 = pmov %p10214_p0 }
 0x21c   : > { %8981 = vsyncadd (%p10215_p1), [#allocation15], 4294966016 }
 0x21d   : > { %8983 = dma.done.wait (%p10216_p4), [#allocation18], 1552   ;;  %p10217_p6 = pmov %p10214_p0 }
 0x21e   : > { %p10218_p8 = pmov %p10214_p0 }
 0x21f   : > { %8985 = vsyncadd (%p10217_p6), [#allocation18], 4294965744 }
 0x220   : > { %8987 = dma.done.wait (%p10218_p8), [#allocation21], 2048   ;;  %p10219_p9 = pmov %p10214_p0 }
 0x221   : > { %p10220_p3 = pmov %p10214_p0 }
 0x222   : > { %8989 = vsyncadd (%p10219_p9), [#allocation21], 4294965248 }
 0x223   : > { %8991 = dma.done.wait (%p10220_p3), [#allocation24], 2048   ;;  %p10221_p10 = pmov %p10214_p0 }
 0x224   : > { %p10222_p7 = pmov %p10214_p0 }
 0x225   : > { %8993 = vsyncadd (%p10221_p10), [#allocation24], 4294965248 }
 0x226   : > { %8995 = dma.done.wait (%p10222_p7), [#allocation27], 1552   ;;  %p10223_p11 = pmov %p10214_p0 }
 0x227   : > { %p10224_p12 = pmov %p10214_p0 }
 0x228   : > { %8997 = vsyncadd (%p10223_p11), [#allocation27], 4294965744 }
 0x229   : > { %8999 = dma.done.wait (%p10224_p12), [#allocation30], 32   ;;  %p10225_p5 = pmov %p10214_p0 }
 0x22a   : > { %s10226_s6 = sld [smem:[#allocation42_spill]]  ;;  %s10227_s28 = sld [smem:[#allocation43_spill]]  ;;  %vm1370_vm0 = vcmask 57344   ;;  %v9062_v0 = vmov 0.0   ;;  %vm1373_vm1 = vcmask 64512   ;;  %vm1643_vm2 = vcmask 253952  }
 0x22b   : > { %9001 = vsyncadd (%p10225_p5), [#allocation30], 4294967264  ;;  %p1343_p2 = scmp.lt.s32.totalorder %s9256_s26, 1  ;;  %1371 = vst.msk [vmem:[#allocation2] sm:$0x1] %vm1370_vm0, %v9062_v0  ;;  %s10228_s15 = sld [smem:[#allocation45_spill]] }
 0x22c   : > { %1372 = vst.msk [vmem:[#allocation2 + $0x11] sm:$0x1] %vm1370_vm0, %v9062_v0  ;;  %s10229_s19 = sld [smem:[#allocation44_spill]]  ;;  %vm1927_vm3 = vcmask 254976   ;;  %vm1646_vm4 = vcmask 261120   ;;  %s10230_s2 = sld [smem:[#allocation46_spill]] }
 0x22d   : > { %s10240_s26 = smov (!%p1343_p2, %s9256_s26), 1  ;;  %1929 = vst.msk [vmem:[#allocation2 + $0x12] sm:$0x3] %vm1927_vm3, %v9062_v0  ;;  %v9063_v50 = vmov 0.0|0.0   ;;  %vm9064_vm5 = vmmov 0   ;;  %vm2338_vm6 = vcmask 260096  }
 0x22e   : > { %s9577_s7 = sshll.u32 %s10240_s26, 4  ;;  %v6708_v56 = vld [vmem:[#allocation3] ss:$0 sm:$0xff]  ;;  %vm2356_vm7 = vcmask 195584   ;;  %s10231_s1 = sld [smem:[#allocation47_spill]]  ;;  %vm4233_vm10 = vcmask 122880  }
 0x22f   : > { %s10232_s4 = sld [smem:[#allocation48_spill]]  ;;  %s10233_s11 = sld [smem:[#allocation51_spill]]  ;;  %vm4008_vm11 = vcmask 130048  }
 0x230   : > { %s1347_s0 = scalar_lea.vmem %s10226_s6, %s9577_s7  ;;  %v6685_v1 = vld [vmem:[%s10227_s28 + $0x8] sm:$0xff]  ;;  %v1378_v4 = vld [vmem:[%s10227_s28] sm:$0xff]  ;;  %v6690_v8 = vld [vmem:[%s10227_s28 + $0x10] sm:$0xff]  ;;  %s10234_s5 = sld [smem:[#allocation54_spill]] }
 0x231   : > { %v1368_v2 = vld [vmem:[%s1347_s0] sm:$0xff]  ;;  %v1369_v3 = vld [vmem:[%s1347_s0 + $0x8] sm:$0xff]  ;;  %7181 = vmatprep.subr.mxu0 %v6685_v1  ;;  %v6696_v15 = vld [vmem:[%s10228_s15 + $0x30] sm:$0xff]  ;;  %s10235_s6 = sld [smem:[#allocation52_spill]]  ;;  %s10236_s0 = sld [smem:[#allocation55_spill]] }
 0x232   : > { %1374 = vst.msk [vmem:[#allocation2 + $0x1] sm:$0xff] %vm1373_vm1, %v1368_v2  ;;  %1375 = vst.msk [vmem:[#allocation2 + $0x9] sm:$0xff] %vm1373_vm1, %v1369_v3  ;;  %7182 = vmatpush3.msra.mxu0 %v6685_v1  ;;  %v6694_v12 = vld [vmem:[%s10228_s15 + $0x20] sm:$0xff]  ;;  %v6695_v13 = vld [vmem:[%s10228_s15 + $0x28] sm:$0xff] }
 0x233   : > { %7186 = vmatprep.subr.mxu0 %v1378_v4  ;;  %v7817_v14 = vpack.c.bf16 %v6695_v13, %v6694_v12  ;;  %v6697_v16 = vld [vmem:[%s10228_s15 + $0x38] sm:$0xff]  ;;  %v1651_v18 = vld [vmem:[%s10228_s15] sm:$0xff]  ;;  %v1652_v19 = vld [vmem:[%s10228_s15 + $0x8] sm:$0xff] }
 0x234   : > { %v7821_v17 = vpack.c.bf16 %v6697_v16, %v6696_v15  ;;  %v7825_v20 = vpack.c.bf16 %v1652_v19, %v1651_v18  ;;  %v6693_v21 = vld [vmem:[%s10229_s19] ss:$0 sm:$0xff]  ;;  %v1653_v28 = vld [vmem:[%s10228_s15 + $0x10] sm:$0xff]  ;;  %v1654_v29 = vld [vmem:[%s10228_s15 + $0x18] sm:$0xff]  ;;  %s1357_s19 = scalar_lea.vmem %s9238_s14, %s9577_s7 }
 0x235   : > { %7818 = vmatprep.subr.bf16.mxu1 %v7817_v14  ;;  %v7829_v32 = vpack.c.bf16 %v1654_v29, %v1653_v28  ;;  %v6702_v34 = vld [vmem:[%s10228_s15 + $0x40] sm:$0xff]  ;;  %v6703_v35 = vld [vmem:[%s10228_s15 + $0x48] sm:$0xff]  ;;  %v6704_v37 = vld [vmem:[%s10228_s15 + $0x50] sm:$0xff] }
 0x236   : > { %7820 = vmatpush3.bf16.msra.mxu1 %v7817_v14  ;;  %v7833_v36 = vpack.c.bf16 %v6703_v35, %v6702_v34  ;;  %v6705_v38 = vld [vmem:[%s10228_s15 + $0x58] sm:$0xff]  ;;  %v6709_v43 = vld [vmem:[%s10230_s2 + $0x20] sm:$0xff]  ;;  %v6710_v44 = vld [vmem:[%s10230_s2 + $0x28] sm:$0xff] }
 0x237   : > { %7822 = vmatprep.subr.bf16.mxu1 %v7821_v17  ;;  %v7837_v39 = vpack.c.bf16 %v6705_v38, %v6704_v37  ;;  %v6719_v45 = vld [vmem:[%s10230_s2 + $0x40] sm:$0xff]  ;;  %v7842_v46 = vpack.c.bf16 %v6710_v44, %v6709_v43  ;;  %v6720_v47 = vld [vmem:[%s10230_s2 + $0x48] sm:$0xff]  ;;  %v6711_v48 = vld [vmem:[%s10230_s2 + $0x30] sm:$0xff] }
 0x238   : > { %v6712_v49 = vld [vmem:[%s10230_s2 + $0x38] sm:$0xff]  ;;  %v7854_v51 = vpack.c.bf16 %v6720_v47, %v6719_v45  ;;  %v6721_v52 = vld [vmem:[%s10230_s2 + $0x50] sm:$0xff]  ;;  %v1935_v2 = vld [vmem:[%s10230_s2] sm:$0xff] }
 0x239   : > { %v1379_v5 = vld [vmem:[#allocation2 + $0x1] sm:$0xff]  ;;  %v1380_v6 = vld [vmem:[#allocation2 + $0x9] sm:$0xff]  ;;  %v6722_v53 = vld [vmem:[%s10230_s2 + $0x58] sm:$0xff]  ;;  %v7845_v54 = vpack.c.bf16 %v6712_v49, %v6711_v48 }
 0x23a   : > { %v1376_v7 = vld [vmem:[#allocation2] sm:$0xff]  ;;  %7183 = vmatprep.mubr.msk.f32.mxu0 %vm1373_vm1, %v1379_v5  ;;  %v1546_v9 = vld [vmem:[#allocation2 + $0xa] sm:$0xff]  ;;  %7824 = vmatpush3.bf16.msra.mxu1 %v7821_v17  ;;  %v7857_v55 = vpack.c.bf16 %v6722_v53, %v6721_v52 }
 0x23b   : > { %1644 = vst.msk [vmem:[#allocation2] sm:$0x1] %vm1643_vm2, %v9062_v0  ;;  %7184 = vmatmul.mubr.msk.f32.vlgmr.msra.gmra.mrb[0].mxu0 %vm1373_vm1, %v1380_v6  ;;  %1645 = vst.msk [vmem:[#allocation2 + $0x11] sm:$0x1] %vm1643_vm2, %v9062_v0  ;;  %v1377_v10 = vld [vmem:[#allocation2 + $0x8] sm:$0xff]  ;;  %7826 = vmatprep.subr.bf16.mxu1 %v7825_v20  ;;  %v1937_v5 = vld [vmem:[%s10230_s2 + $0x10] sm:$0xff] }
 0x23c   : > { %7187 = vmatpush3.msra.mxu0 %v1378_v4  ;;  %7188 = vmatprep.mubr.msk.f32.mxu0 %vm1373_vm1, %v1376_v7  ;;  %v1545_v11 = vld [vmem:[#allocation2 + $0x2] sm:$0xff]  ;;  %v6728_v19 = vld [vmem:[%s10230_s2 + $0x70] sm:$0xff] }
 0x23d   : > { %7191 = vmatprep.subr.mxu0 %v6690_v8  ;;  %v1936_v3 = vld [vmem:[%s10230_s2 + $0x8] sm:$0xff]  ;;  %v6726_v16 = vld [vmem:[%s10230_s2 + $0x60] sm:$0xff] }
 0x23e   : > { %v7848_v4 = vpack.c.bf16 %v1936_v3, %v1935_v2  ;;  %v6727_v17 = vld [vmem:[%s10230_s2 + $0x68] sm:$0xff] }
 0x23f   : > { %v7860_v18 = vpack.c.bf16 %v6727_v17, %v6726_v16  ;;  %v6741_v17 = vld [vmem:[%s10231_s1 + $0x38] sm:$0xff] }
 0x243   : > { %7189 = vmatmul.mubr.msk.f32.vlgmr.msra.gmra.mrb[0].mxu0 %vm1373_vm1, %v1377_v10  ;;  %v2227_v10 = vld [vmem:[#allocation2 + $0x13] sm:$0x1] }
 0x244   : > { %7192 = vmatpush3.msra.mxu0 %v6690_v8  ;;  %7193 = vmatprep.mubr.msk.f32.mxu0 %vm1373_vm1, %v1545_v11  ;;  %v1938_v8 = vld [vmem:[%s10230_s2 + $0x18] sm:$0xff] }
 0x245   : > { %7841 = vmatprep.subr.bf16.mxu0 %v9063_v50  ;;  %v7851_v14 = vpack.c.bf16 %v1938_v8, %v1937_v5 }
 0x24b   : > { %7194 = vmatmul.mubr.msk.f32.vlgmr.msra.gmra.mrb[0].mxu0 %vm1373_vm1, %v1546_v9  ;;  %v2127_v9 = vld [vmem:[#allocation2 + $0x12] sm:$0x1] }
 0x24c   : > { %7843 = vmatpush3.bf16.msra.mxu0 %v7842_v46  ;;  %7237 = vmatprep.mubr.msk.f32.mxu0 %vm9064_vm5, %v9062_v0 }
 0x24d   : > { %7844 = vmatprep.subr.bf16.mxu0 %v9063_v50 }
 0x250   : > { %7846 = vmatpush3.bf16.msra.mxu0 %v7845_v54 }
 0x251   : > { %7847 = vmatprep.subr.bf16.mxu0 %v9063_v50 }
 0x31e   : > { %v7195_v22 = vpop.f32.mrb[0].mxu0 }
 0x31f   : > { %v9605_v23 = vadd.f32 %v7195_v22, %v6693_v21  ;;  %v1621_v24 = vpop.f32.mrb[1].mxu0 }
 0x320   : > { %v9607_v25 = vadd.f32 %v6693_v21, %v1621_v24 }
 0x321   : > { %v1642_v26 = vmax.f32 %v9605_v23, 0.0 }
 0x322   : > { %v1641_v27 = vmax.f32 %v9607_v25, 0.0 }
 0x323   : > { %1648 = vst.msk [vmem:[#allocation2 + $0x9] sm:$0xff] %vm1646_vm4, %v1642_v26 }
 0x324   : > { %1647 = vst.msk [vmem:[#allocation2 + $0x1] sm:$0xff] %vm1646_vm4, %v1641_v27 }
 0x32a   : > { %v1656_v33 = vld [vmem:[#allocation2 + $0x9] sm:$0xff] }
 0x32b   : > { %v1655_v30 = vld [vmem:[#allocation2 + $0x1] sm:$0xff]  ;;  %v1825_v42 = vld [vmem:[#allocation2 + $0xa] sm:$0xff] }
 0x32c   : > { %v1649_v31 = vld [vmem:[#allocation2] sm:$0xff]  ;;  %7204 = vmatprep.mubr.msk.f32.mxu1 %vm1646_vm4, %v1655_v30  ;;  %v1650_v40 = vld [vmem:[#allocation2 + $0x8] sm:$0xff] }
 0x32d   : > { %1928 = vst.msk [vmem:[#allocation2] sm:$0x3] %vm1927_vm3, %v9062_v0  ;;  %7205 = vmatmul.mubr.msk.f32.vlgmr.msra.gmra.mrb[0].mxu1 %vm1646_vm4, %v1656_v33  ;;  %v1824_v41 = vld [vmem:[#allocation2 + $0x2] sm:$0xff] }
 0x32e   : > { %7828 = vmatpush3.bf16.msra.mxu1 %v7825_v20  ;;  %7215 = vmatprep.mubr.msk.f32.mxu1 %vm1646_vm4, %v1649_v31  ;;  %v6729_v20 = vld [vmem:[%s10230_s2 + $0x78] sm:$0xff] }
 0x32f   : > { %7830 = vmatprep.subr.bf16.mxu1 %v7829_v32  ;;  %v7863_v22 = vpack.c.bf16 %v6729_v20, %v6728_v19  ;;  %v2446_v19 = vld [vmem:[%s10231_s1] sm:$0xff]  ;;  %v2447_v20 = vld [vmem:[%s10231_s1 + $0x8] sm:$0xff] }
 0x332   : > { %7832 = vmatpush3.bf16.msra.mxu1 %v7829_v32 }
 0x333   : > { %7834 = vmatprep.subr.bf16.mxu1 %v7833_v36 }
 0x335   : > { %7216 = vmatmul.mubr.msk.f32.vlgmr.msra.gmra.mrb[0].mxu1 %vm1646_vm4, %v1650_v40 }
 0x336   : > { %7836 = vmatpush3.bf16.msra.mxu1 %v7833_v36  ;;  %7226 = vmatprep.mubr.msk.f32.mxu1 %vm1646_vm4, %v1824_v41 }
 0x337   : > { %7838 = vmatprep.subr.bf16.mxu1 %v7837_v39 }
 0x33a   : > { %7840 = vmatpush3.bf16.msra.mxu1 %v7837_v39 }
 0x33b   : > { %7853 = vmatprep.subr.bf16.mxu1 %v9063_v50 }
 0x33d   : > { %7227 = vmatmul.mubr.msk.f32.vlgmr.msra.gmra.mrb[0].mxu1 %vm1646_vm4, %v1825_v42 }
 0x33e   : > { %7855 = vmatpush3.bf16.msra.mxu1 %v7854_v51  ;;  %7271 = vmatprep.mubr.msk.f32.mxu1 %vm9064_vm5, %v9062_v0 }
 0x33f   : > { %7856 = vmatprep.subr.bf16.mxu1 %v9063_v50 }
 0x342   : > { %7858 = vmatpush3.bf16.msra.mxu1 %v7857_v55 }
 0x410   : > { %v7228_v57 = vpop.f32.mrb[0].mxu1 }
 0x411   : > { %v1922_v58 = vadd.f32 %v7228_v57, %v6708_v56  ;;  %v1903_v59 = vpop.f32.mrb[1].mxu1  ;;  %v6733_v57 = vld [vmem:[#allocation5] ss:$0 sm:$0xff] }
 0x412   : > { %v1921_v60 = vadd.f32 %v6708_v56, %v1903_v59 }
 0x413   : > { %v1924_v61 = vmax.f32 %v1922_v58, 0.0 }
 0x414   : > { %v1923_v62 = vmax.f32 %v1921_v60, 0.0 }
 0x415   : > { %v1926_v63 = vadd.f32 %v1924_v61, %v1642_v26  ;;  %v2343_v26 = vlaneseq }
 0x416   : > { %v1925_v1 = vadd.f32 %v1923_v62, %v1641_v27 }
 0x417   : > { %1931 = vst.msk [vmem:[#allocation2 + $0xa] sm:$0xff] %vm1646_vm4, %v1926_v63  ;;  %v9699_v27 = vshrl.u32 %v2343_v26, 7  ;;  %v9701_v28 = vand.u32 127, %v2343_v26 }
 0x418   : > { %1930 = vst.msk [vmem:[#allocation2 + $0x2] sm:$0xff] %vm1646_vm4, %v1925_v1 }
 0x419   : > { %v2348_v29 = vmul.u32 2, %v9699_v27 }
 0x41b   : > { %vm2350_vm8 = vcmp.eq.s32.totalorder %v9701_v28, %v2348_v29  ;;  %v2448_v29 = vld [vmem:[%s10231_s1 + $0x10] sm:$0xff] }
 0x41c   : > { %v6734_v30 = vsel %vm2350_vm8, 1.0, %v9062_v0 }
 0x41e   : > { %v2126_v11 = vld [vmem:[#allocation2 + $0xa] sm:$0xff] }
 0x41f   : > { %v1939_v6 = vld [vmem:[#allocation2 + $0x1] sm:$0xff]  ;;  %v1941_v12 = vld [vmem:[#allocation2 + $0x11] sm:$0x1]  ;;  %v1940_v15 = vld [vmem:[#allocation2 + $0x9] sm:$0xff] }
 0x420   : > { %v2125_v7 = vld [vmem:[#allocation2 + $0x2] sm:$0xff]  ;;  %7238 = vmatmul.mubr.msk.f32.vlgmr.msra.gmra.mrb[2].mxu0 %vm1646_vm4, %v1939_v6  ;;  %v2226_v13 = vld [vmem:[#allocation2 + $0xb] sm:$0xff]  ;;  %v9710_v6 = vadd.s32 8, %v9699_v27 }
 0x421   : > { %7272 = vmatmul.mubr.msk.f32.vlgmr.msra.gmra.mrb[2].mxu1 %vm1646_vm4, %v2125_v7  ;;  %7240 = vmatprep.mubr.msk.f32.mxu0 %vm9064_vm5, %v9062_v0  ;;  %2339 = vst.msk [vmem:[#allocation2 + $0x11] sm:$0x7f] %vm2338_vm6, %v9062_v0  ;;  %v1932_v21 = vld [vmem:[#allocation2] sm:$0xff]  ;;  %v1933_v23 = vld [vmem:[#allocation2 + $0x8] sm:$0xff]  ;;  %v1934_v24 = vld [vmem:[#allocation2 + $0x10] sm:$0x1] }
 0x422   : > { %7274 = vmatprep.mubr.msk.f32.mxu1 %vm9064_vm5, %v9062_v0  ;;  %7849 = vmatpush3.bf16.msra.mxu0 %v7848_v4  ;;  %v2225_v25 = vld [vmem:[#allocation2 + $0x3] sm:$0xff]  ;;  %v2349_v8 = vmul.u32 2, %v9710_v6 }
 0x423   : > { %7850 = vmatprep.subr.bf16.mxu0 %v9063_v50 }
 0x424   : > { %7241 = vmatmul.mubr.msk.f32.gmra.mrb[4].mxu0 %vm1646_vm4, %v1940_v15  ;;  %vm2351_vm9 = vcmp.eq.s32.totalorder %v9701_v28, %v2349_v8  ;;  %v6740_v15 = vld [vmem:[%s10231_s1 + $0x30] sm:$0xff]  ;;  %v6762_v8 = vld [vmem:[%s10232_s4 + $0x48] sm:$0xff] }
 0x425   : > { %7275 = vmatmul.mubr.msk.f32.gmra.mrb[4].mxu1 %vm1646_vm4, %v2126_v11  ;;  %7243 = vmatprep.mubr.msk.f32.mxu0 %vm9064_vm5, %v9062_v0 }
 0x426   : > { %7277 = vmatprep.mubr.msk.f32.mxu1 %vm9064_vm5, %v9062_v0  ;;  %7852 = vmatpush3.bf16.msra.mxu0 %v7851_v14  ;;  %v6739_v14 = vld [vmem:[%s10231_s1 + $0x28] sm:$0xff] }
 0x427   : > { %7859 = vmatprep.subr.bf16.mxu0 %v9063_v50 }
 0x428   : > { %7244 = vmatmul.mubr.msk.f32.gmra.mrb[6].mxu0 %vm1646_vm4, %v1941_v12  ;;  %v6735_v12 = vsel %vm2351_vm9, 1.0, %v9062_v0 }
 0x429   : > { %7278 = vmatmul.mubr.msk.f32.gmra.mrb[6].mxu1 %vm1646_vm4, %v2127_v9  ;;  %7254 = vmatprep.mubr.msk.f32.mxu0 %vm9064_vm5, %v9062_v0 }
 0x42a   : > { %7303 = vmatprep.mubr.msk.f32.mxu1 %vm2356_vm7, %v6734_v30  ;;  %v2449_v30 = vld [vmem:[%s10231_s1 + $0x18] sm:$0xff] }
 0x42c   : > { %7255 = vmatmul.mubr.msk.f32.vlgmr.msra.gmra.mrb[8].mxu0 %vm1646_vm4, %v1932_v21  ;;  %v7877_v21 = vpack.c.bf16 %v2447_v20, %v2446_v19  ;;  %v3022_v19 = vld [vmem:[#allocation10 + $0x38] sm:$0xff] }
 0x42d   : > { %7257 = vmatprep.mubr.msk.f32.mxu0 %vm9064_vm5, %v9062_v0  ;;  %7861 = vmatpush3.bf16.msra.mxu0 %v7860_v18  ;;  %v7873_v18 = vpack.c.bf16 %v6741_v17, %v6740_v15  ;;  %v3019_v15 = vld [vmem:[#allocation10 + $0x20] sm:$0xff]  ;;  %v3021_v17 = vld [vmem:[#allocation10 + $0x30] sm:$0xff] }
 0x42e   : > { %7862 = vmatprep.subr.bf16.mxu0 %v9063_v50  ;;  %v7921_v20 = vpack.c.bf16 %v3022_v19, %v3021_v17 }
 0x430   : > { %7258 = vmatmul.mubr.msk.f32.gmra.mrb[10].mxu0 %vm1646_vm4, %v1933_v23 }
 0x431   : > { %7260 = vmatprep.mubr.msk.f32.mxu0 %vm9064_vm5, %v9062_v0  ;;  %7864 = vmatpush3.bf16.msra.mxu0 %v7863_v22 }
 0x434   : > { %7261 = vmatmul.mubr.msk.f32.gmra.mrb[12].mxu0 %vm1646_vm4, %v1934_v24 }
 0x435   : > { %7288 = vmatprep.mubr.msk.f32.mxu0 %vm9064_vm5, %v9062_v0 }
 0x438   : > { %7289 = vmatmul.mubr.msk.f32.vlgmr.msra.gmra.mrb[14].mxu0 %vm1646_vm4, %v2225_v25 }
 0x439   : > { %7291 = vmatprep.mubr.msk.f32.mxu0 %vm9064_vm5, %v9062_v0 }
 0x43c   : > { %7292 = vmatmul.mubr.msk.f32.gmra.mrb[16].mxu0 %vm1646_vm4, %v2226_v13  ;;  %v6738_v13 = vld [vmem:[%s10231_s1 + $0x20] sm:$0xff] }
 0x43d   : > { %7294 = vmatprep.mubr.msk.f32.mxu0 %vm9064_vm5, %v9062_v0  ;;  %v7869_v16 = vpack.c.bf16 %v6739_v14, %v6738_v13 }
 0x440   : > { %7295 = vmatmul.mubr.msk.f32.gmra.mrb[18].mxu0 %vm1646_vm4, %v2227_v10 }
 0x4f3   : > { %v2022_v31 = vpop.f32.mrb[2].mxu0 }
 0x4f4   : > { %v2208_v32 = vpop.f32.mrb[2].mxu1  ;;  %v7239_v33 = vpop.f32.mrb[3].mxu0 }
 0x4f5   : > { %v7273_v34 = vpop.f32.mrb[3].mxu1 }
 0x4f7   : > { %v2027_v35 = vpop.f32.mrb[4].mxu0 }
 0x4f8   : > { %v2213_v36 = vpop.f32.mrb[4].mxu1  ;;  %v7242_v37 = vpop.f32.mrb[5].mxu0 }
 0x4f9   : > { %v7276_v38 = vpop.f32.mrb[5].mxu1 }
 0x4fa   : > { %v6748_v38 = vld [vmem:[%s10231_s1 + $0x50] sm:$0xff] }
 0x4fb   : > { %v2032_v39 = vpop.f32.mrb[6].mxu0 }
 0x4fc   : > { %v2218_v40 = vpop.f32.mrb[6].mxu1  ;;  %v7245_v41 = vpop.f32.mrb[7].mxu0 }
 0x4fd   : > { %v7279_v42 = vpop.f32.mrb[7].mxu1 }
 0x4ff   : > { %v2111_v43 = vpop.f32.mrb[8].mxu0 }
 0x500   : > { %v2112_v44 = vadd.f32 %v2111_v43, %v2022_v31  ;;  %v7256_v45 = vpop.f32.mrb[9].mxu0  ;;  %v6753_v43 = vld [vmem:[%s10232_s4 + $0x20] sm:$0xff] }
 0x501   : > { %v6755_v45 = vld [vmem:[%s10232_s4 + $0x30] sm:$0xff] }
 0x502   : > { %v2222_v46 = vadd.f32 %v2208_v32, %v2112_v44  ;;  %v7881_v32 = vpack.c.bf16 %v2449_v30, %v2448_v29  ;;  %v6754_v44 = vld [vmem:[%s10232_s4 + $0x28] sm:$0xff]  ;;  %v6767_v30 = vld [vmem:[#allocation8] ss:$0 sm:$0xff] }
 0x503   : > { %v2116_v47 = vpop.f32.mrb[10].mxu0 }
 0x504   : > { %v2117_v48 = vadd.f32 %v2116_v47, %v2027_v35  ;;  %v7259_v49 = vpop.f32.mrb[11].mxu0  ;;  %v6746_v35 = vld [vmem:[%s10231_s1 + $0x40] sm:$0xff]  ;;  %v6756_v47 = vld [vmem:[%s10232_s4 + $0x38] sm:$0xff] }
 0x505   : > { %v2728_v49 = vld [vmem:[%s10232_s4] sm:$0xff] }
 0x506   : > { %v2223_v51 = vadd.f32 %v2213_v36, %v2117_v48  ;;  %v6747_v36 = vld [vmem:[%s10231_s1 + $0x48] sm:$0xff]  ;;  %v7897_v48 = vpack.c.bf16 %v6756_v47, %v6755_v45  ;;  %v3188_v47 = vld [vmem:[#allocation10 + $0x40] sm:$0xff] }
 0x507   : > { %v2121_v52 = vpop.f32.mrb[12].mxu0  ;;  %v7885_v37 = vpack.c.bf16 %v6747_v36, %v6746_v35 }
 0x508   : > { %v2122_v53 = vadd.f32 %v2121_v52, %v2032_v39  ;;  %v7262_v54 = vpop.f32.mrb[13].mxu0  ;;  %v6749_v39 = vld [vmem:[%s10231_s1 + $0x58] sm:$0xff] }
 0x509   : > { %v6752_v54 = vld [vmem:[#allocation7] ss:$0 sm:$0xff] }
 0x50a   : > { %v2224_v55 = vadd.f32 %v2218_v40, %v2122_v53  ;;  %v7889_v40 = vpack.c.bf16 %v6749_v39, %v6748_v38 }
 0x50b   : > { %v2308_v56 = vpop.f32.mrb[14].mxu0 }
 0x50c   : > { %v2322_v58 = vadd.f32 %v2308_v56, %v2222_v46  ;;  %v7290_v59 = vpop.f32.mrb[15].mxu0  ;;  %v7893_v46 = vpack.c.bf16 %v6754_v44, %v6753_v43 }
 0x50e   : > { %v2332_v60 = vadd.f32 %v6733_v57, %v2322_v58  ;;  %7894 = vmatprep.subr.bf16.mxu0 %v7893_v46 }
 0x50f   : > { %v2313_v61 = vpop.f32.mrb[16].mxu0  ;;  %7896 = vmatpush3.bf16.msra.mxu0 %v7893_v46 }
 0x510   : > { %2335 = vst.msk [vmem:[#allocation2] sm:$0xff] %vm1646_vm4, %v2332_v60  ;;  %v2323_v62 = vadd.f32 %v2313_v61, %v2223_v51  ;;  %v7293_v63 = vpop.f32.mrb[17].mxu0  ;;  %7898 = vmatprep.subr.bf16.mxu0 %v7897_v48  ;;  %v2729_v51 = vld [vmem:[%s10232_s4 + $0x8] sm:$0xff] }
 0x511   : > { %v7901_v52 = vpack.c.bf16 %v2729_v51, %v2728_v49  ;;  %v2730_v63 = vld [vmem:[%s10232_s4 + $0x10] sm:$0xff] }
 0x512   : > { %v2333_v1 = vadd.f32 %v6733_v57, %v2323_v62  ;;  %v3190_v51 = vld [vmem:[#allocation10 + $0x50] sm:$0xff] }
 0x513   : > { %v2318_v2 = vpop.f32.mrb[18].mxu0  ;;  %7900 = vmatpush3.bf16.msra.mxu0 %v7897_v48  ;;  %v3189_v48 = vld [vmem:[#allocation10 + $0x48] sm:$0xff] }
 0x514   : > { %2336 = vst.msk [vmem:[#allocation2 + $0x8] sm:$0xff] %vm1646_vm4, %v2333_v1  ;;  %v2324_v3 = vadd.f32 %v2318_v2, %v2224_v55  ;;  %v7296_v4 = vpop.f32.mrb[19].mxu0  ;;  %7902 = vmatprep.subr.bf16.mxu0 %v7901_v52  ;;  %v2731_v1 = vld [vmem:[%s10232_s4 + $0x18] sm:$0xff]  ;;  %v7933_v49 = vpack.c.bf16 %v3189_v48, %v3188_v47  ;;  %v6786_v47 = vld [vmem:[%s10233_s11 + $0x30] sm:$0xff] }
 0x515   : > { %v7905_v4 = vpack.c.bf16 %v2731_v1, %v2730_v63  ;;  %v3379_v63 = vld [vmem:[#allocation13 + $0x20] sm:$0xff]  ;;  %v3380_v1 = vld [vmem:[#allocation13 + $0x28] sm:$0xff] }
 0x516   : > { %v2334_v5 = vadd.f32 %v6733_v57, %v2324_v3 }
 0x517   : > { %v2340_v7 = vld [vmem:[#allocation2] sm:$0xff] }
 0x518   : > { %2337 = vst.msk [vmem:[#allocation2 + $0x10] sm:$0x1] %vm1643_vm2, %v2334_v5  ;;  %2440 = vst.msk [vmem:[#allocation2] sm:$0x1] %vm1643_vm2, %v9062_v0 }
 0x51b   : > { %v2341_v9 = vld [vmem:[#allocation2 + $0x8] sm:$0xff] }
 0x51c   : > { %2441 = vst.msk [vmem:[#allocation2 + $0xa] sm:$0x1] %vm1643_vm2, %v9062_v0  ;;  %v7865_v10 = vpack.c.bf16 %v2341_v9, %v2340_v7  ;;  %v6761_v7 = vld [vmem:[%s10232_s4 + $0x40] sm:$0xff] }
 0x51d   : > { %v7909_v9 = vpack.c.bf16 %v6762_v8, %v6761_v7  ;;  %v3372_v7 = vld [vmem:[#allocation13] sm:$0xff]  ;;  %v3373_v8 = vld [vmem:[#allocation13 + $0x8] sm:$0xff] }
 0x51e   : > { %7866 = vmatprep.subr.bf16.mxu1 %v7865_v10 }
 0x51f   : > { %7868 = vmatpush3.bf16.msra.mxu1 %v7865_v10  ;;  %v2342_v11 = vld [vmem:[#allocation2 + $0x10] sm:$0xff] }
 0x520   : > { %7301 = vmatprep.subr.mxu1 %v2342_v11  ;;  %4627 = vst.msk [vmem:[#allocation2 + $0x13] sm:$0x1] %vm1643_vm2, %v9062_v0  ;;  %v6763_v10 = vld [vmem:[%s10232_s4 + $0x50] sm:$0xff] }
 0x521   : > { %5738 = vst.msk [vmem:[#allocation2 + $0x14] sm:$0x3] %vm1927_vm3, %v9062_v0 }
 0x523   : > { %7302 = vmatpush3.msra.mxu1 %v2342_v11  ;;  %v2620_v22 = vld [vmem:[#allocation2 + $0xa] sm:$0x1]  ;;  %v6764_v11 = vld [vmem:[%s10232_s4 + $0x58] sm:$0xff] }
 0x524   : > { %7304 = vmatmul.mubr.msk.f32.vlgmr.msra.gmra.mrb[8].mxu1 %vm2356_vm7, %v6735_v12  ;;  %7870 = vmatprep.subr.bf16.mxu1 %v7869_v16  ;;  %2723 = vst.msk [vmem:[#allocation2 + $0xa] sm:$0x1] %vm1643_vm2, %v9062_v0  ;;  %v7913_v12 = vpack.c.bf16 %v6764_v11, %v6763_v10  ;;  %v3637_v11 = vld [vmem:[#allocation14] sm:$0xff] }
 0x525   : > { %7872 = vmatpush3.bf16.msra.mxu1 %v7869_v16  ;;  %v3020_v16 = vld [vmem:[#allocation10 + $0x28] sm:$0xff] }
 0x526   : > { %7874 = vmatprep.subr.bf16.mxu1 %v7873_v18 }
 0x529   : > { %7876 = vmatpush3.bf16.msra.mxu1 %v7873_v18  ;;  %v7917_v18 = vpack.c.bf16 %v3020_v16, %v3019_v15 }
 0x52a   : > { %7878 = vmatprep.subr.bf16.mxu1 %v7877_v21 }
 0x52b   : > { %v2902_v53 = vld [vmem:[#allocation2 + $0xa] sm:$0x1] }
 0x52c   : > { %3007 = vst.msk [vmem:[#allocation2 + $0xa] sm:$0x1] %vm1643_vm2, %v9062_v0 }
 0x5f7   : > { %v7305_v23 = vpop.f32.mrb[8].mxu1 }
 0x5f8   : > { %v2439_v24 = vmax.f32 %v7305_v23, 0.0  ;;  %v2429_v25 = vpop.f32.mrb[9].mxu1 }
 0x5f9   : > { %v2438_v26 = vmax.f32 %v2429_v25, 0.0  ;;  %v3277_v25 = vld [vmem:[#allocation11] sm:$0xff] }
 0x5fa   : > { %2443 = vst.msk [vmem:[#allocation2 + $0x9] sm:$0x1] %vm1643_vm2, %v2439_v24 }
 0x5fb   : > { %2442 = vst.msk [vmem:[#allocation2 + $0x1] sm:$0xff] %vm1646_vm4, %v2438_v26 }
 0x601   : > { %v2451_v34 = vld [vmem:[#allocation2 + $0x9] sm:$0x1] }
 0x602   : > { %v2450_v31 = vld [vmem:[#allocation2 + $0x1] sm:$0xff] }
 0x603   : > { %v2444_v33 = vld [vmem:[#allocation2] sm:$0xff]  ;;  %7314 = vmatprep.mubr.msk.f32.mxu1 %vm1646_vm4, %v2450_v31  ;;  %v2445_v41 = vld [vmem:[#allocation2 + $0x8] sm:$0x1] }
 0x604   : > { %2722 = vst.msk [vmem:[#allocation2] sm:$0x1] %vm1643_vm2, %v9062_v0  ;;  %7315 = vmatmul.mubr.msk.f32.vlgmr.msra.gmra.mrb[10].mxu1 %vm1646_vm4, %v2451_v34  ;;  %v2619_v42 = vld [vmem:[#allocation2 + $0x2] sm:$0xff] }
 0x605   : > { %7880 = vmatpush3.bf16.msra.mxu1 %v7877_v21  ;;  %7325 = vmatprep.mubr.msk.f32.mxu1 %vm1646_vm4, %v2444_v33  ;;  %v3012_v21 = vld [vmem:[#allocation10] sm:$0xff] }
 0x606   : > { %7882 = vmatprep.subr.bf16.mxu1 %v7881_v32 }
 0x609   : > { %7884 = vmatpush3.bf16.msra.mxu1 %v7881_v32 }
 0x60a   : > { %7886 = vmatprep.subr.bf16.mxu1 %v7885_v37 }
 0x60c   : > { %7326 = vmatmul.mubr.msk.f32.vlgmr.msra.gmra.mrb[10].mxu1 %vm1646_vm4, %v2445_v41  ;;  %v3014_v41 = vld [vmem:[#allocation10 + $0x10] sm:$0xff] }
 0x60d   : > { %7888 = vmatpush3.bf16.msra.mxu1 %v7885_v37  ;;  %7336 = vmatprep.mubr.msk.f32.mxu1 %vm1646_vm4, %v2619_v42  ;;  %v3015_v42 = vld [vmem:[#allocation10 + $0x18] sm:$0xff] }
 0x60e   : > { %7890 = vmatprep.subr.bf16.mxu1 %v7889_v40  ;;  %v7929_v45 = vpack.c.bf16 %v3015_v42, %v3014_v41 }
 0x611   : > { %7892 = vmatpush3.bf16.msra.mxu1 %v7889_v40 }
 0x612   : > { %7918 = vmatprep.subr.bf16.mxu1 %v7917_v18 }
 0x614   : > { %7337 = vmatmul.mubr.msk.f32.vlgmr.msra.gmra.mrb[10].mxu1 %vm1646_vm4, %v2620_v22  ;;  %v3013_v22 = vld [vmem:[#allocation10 + $0x8] sm:$0xff] }
 0x615   : > { %7920 = vmatpush3.bf16.msra.mxu1 %v7917_v18  ;;  %v7925_v23 = vpack.c.bf16 %v3013_v22, %v3012_v21  ;;  %v3375_v21 = vld [vmem:[#allocation13 + $0x18] sm:$0xff] }
 0x616   : > { %7922 = vmatprep.subr.bf16.mxu1 %v7921_v20 }
 0x619   : > { %7924 = vmatpush3.bf16.msra.mxu1 %v7921_v20  ;;  %v3374_v20 = vld [vmem:[#allocation13 + $0x10] sm:$0xff] }
 0x61a   : > { %7926 = vmatprep.subr.bf16.mxu1 %v7925_v23 }
 0x6e7   : > { %v7338_v55 = vpop.f32.mrb[10].mxu1 }
 0x6e8   : > { %v2717_v56 = vadd.f32 %v7338_v55, %v6752_v54  ;;  %v2698_v57 = vpop.f32.mrb[11].mxu1 }
 0x6e9   : > { %v2716_v58 = vadd.f32 %v6752_v54, %v2698_v57  ;;  %v3280_v57 = vld [vmem:[#allocation11 + $0x18] sm:$0xff] }
 0x6ea   : > { %v2719_v59 = vmax.f32 %v2717_v56, 0.0  ;;  %v3279_v56 = vld [vmem:[#allocation11 + $0x10] sm:$0xff] }
 0x6eb   : > { %v2718_v60 = vmax.f32 %v2716_v58, 0.0  ;;  %v7945_v58 = vpack.c.bf16 %v3280_v57, %v3279_v56 }
 0x6ec   : > { %v2721_v61 = vadd.f32 %v2719_v59, %v2439_v24  ;;  %v3186_v24 = vld [vmem:[#allocation2 + $0xa] sm:$0x1] }
 0x6ed   : > { %v2720_v62 = vadd.f32 %v2718_v60, %v2438_v26  ;;  %3367 = vst.msk [vmem:[#allocation2 + $0xa] sm:$0x1] %vm1643_vm2, %v9062_v0  ;;  %v3278_v26 = vld [vmem:[#allocation11 + $0x8] sm:$0xff] }
 0x6ee   : > { %2725 = vst.msk [vmem:[#allocation2 + $0x9] sm:$0x1] %vm1643_vm2, %v2721_v61  ;;  %v7941_v29 = vpack.c.bf16 %v3278_v26, %v3277_v25  ;;  %v3548_v26 = vld [vmem:[#allocation13 + $0x40] sm:$0xff] }
 0x6ef   : > { %2724 = vst.msk [vmem:[#allocation2 + $0x1] sm:$0xff] %vm1646_vm4, %v2720_v62 }
 0x6f4   : > { %v3546_v10 = vld [vmem:[#allocation2 + $0xa] sm:$0x1] }
 0x6f5   : > { %v2733_v5 = vld [vmem:[#allocation2 + $0x9] sm:$0x1]  ;;  %3729 = vst.msk [vmem:[#allocation2 + $0xa] sm:$0x1] %vm1643_vm2, %v9062_v0 }
 0x6f6   : > { %v2732_v2 = vld [vmem:[#allocation2 + $0x1] sm:$0xff] }
 0x6f7   : > { %v2726_v3 = vld [vmem:[#allocation2] sm:$0xff]  ;;  %7347 = vmatprep.mubr.msk.f32.mxu0 %vm1646_vm4, %v2732_v2  ;;  %v2727_v13 = vld [vmem:[#allocation2 + $0x8] sm:$0x1]  ;;  %v3381_v2 = vld [vmem:[#allocation13 + $0x30] sm:$0xff] }
 0x6f8   : > { %3006 = vst.msk [vmem:[#allocation2] sm:$0x1] %vm1643_vm2, %v9062_v0  ;;  %7348 = vmatmul.mubr.msk.f32.vlgmr.msra.gmra.mrb[20].mxu0 %vm1646_vm4, %v2733_v5  ;;  %v2901_v14 = vld [vmem:[#allocation2 + $0x2] sm:$0xff] }
 0x6f9   : > { %7904 = vmatpush3.bf16.msra.mxu0 %v7901_v52  ;;  %7358 = vmatprep.mubr.msk.f32.mxu0 %vm1646_vm4, %v2726_v3  ;;  %v3191_v52 = vld [vmem:[#allocation10 + $0x58] sm:$0xff]  ;;  %v7949_v3 = vpack.c.bf16 %v3380_v1, %v3379_v63  ;;  %v3736_v63 = vld [vmem:[%s10233_s11 + $0x10] sm:$0xff] }
 0x6fa   : > { %7906 = vmatprep.subr.bf16.mxu0 %v7905_v4  ;;  %v3737_v1 = vld [vmem:[%s10233_s11 + $0x18] sm:$0xff] }
 0x6fd   : > { %7908 = vmatpush3.bf16.msra.mxu0 %v7905_v4  ;;  %v3382_v4 = vld [vmem:[#allocation13 + $0x38] sm:$0xff] }
 0x6fe   : > { %7910 = vmatprep.subr.bf16.mxu0 %v7909_v9  ;;  %v7953_v5 = vpack.c.bf16 %v3382_v4, %v3381_v2 }
 0x700   : > { %7359 = vmatmul.mubr.msk.f32.vlgmr.msra.gmra.mrb[20].mxu0 %vm1646_vm4, %v2727_v13 }
 0x701   : > { %7912 = vmatpush3.bf16.msra.mxu0 %v7909_v9  ;;  %7369 = vmatprep.mubr.msk.f32.mxu0 %vm1646_vm4, %v2901_v14  ;;  %v7957_v9 = vpack.c.bf16 %v3373_v8, %v3372_v7  ;;  %v6793_v7 = vld [vmem:[%s10233_s11 + $0x48] sm:$0xff]  ;;  %v6794_v8 = vld [vmem:[%s10233_s11 + $0x50] sm:$0xff] }
 0x702   : > { %7914 = vmatprep.subr.bf16.mxu0 %v7913_v12 }
 0x705   : > { %7916 = vmatpush3.bf16.msra.mxu0 %v7913_v12  ;;  %v3638_v12 = vld [vmem:[#allocation14 + $0x8] sm:$0xff] }
 0x706   : > { %7942 = vmatprep.subr.bf16.mxu0 %v7941_v29  ;;  %v7973_v13 = vpack.c.bf16 %v3638_v12, %v3637_v11 }
 0x708   : > { %7370 = vmatmul.mubr.msk.f32.vlgmr.msra.gmra.mrb[20].mxu0 %vm1646_vm4, %v2902_v53  ;;  %v7937_v53 = vpack.c.bf16 %v3191_v52, %v3190_v51  ;;  %v3734_v52 = vld [vmem:[%s10233_s11] sm:$0xff] }
 0x709   : > { %7944 = vmatpush3.bf16.msra.mxu0 %v7941_v29  ;;  %v3549_v29 = vld [vmem:[#allocation13 + $0x48] sm:$0xff] }
 0x70a   : > { %7946 = vmatprep.subr.bf16.mxu0 %v7945_v58 }
 0x70d   : > { %7948 = vmatpush3.bf16.msra.mxu0 %v7945_v58 }
 0x70e   : > { %7950 = vmatprep.subr.bf16.mxu0 %v7949_v3 }
 0x7db   : > { %v7371_v31 = vpop.f32.mrb[20].mxu0 }
 0x7dc   : > { %v2999_v32 = vadd.f32 %v7371_v31, %v6767_v30  ;;  %v2980_v33 = vpop.f32.mrb[21].mxu0  ;;  %v3550_v31 = vld [vmem:[#allocation13 + $0x50] sm:$0xff] }
 0x7dd   : > { %v2998_v34 = vadd.f32 %v6767_v30, %v2980_v33  ;;  %v7965_v30 = vpack.c.bf16 %v3549_v29, %v3548_v26 }
 0x7de   : > { %v3001_v35 = vmax.f32 %v2999_v32, 0.0  ;;  %v3551_v32 = vld [vmem:[#allocation13 + $0x58] sm:$0xff] }
 0x7df   : > { %v3000_v36 = vmax.f32 %v2998_v34, 0.0  ;;  %v7969_v33 = vpack.c.bf16 %v3551_v32, %v3550_v31 }
 0x7e0   : > { %v9775_v37 = vadd.f32 %v3001_v35, %v2721_v61 }
 0x7e1   : > { %v9777_v38 = vadd.f32 %v3000_v36, %v2720_v62  ;;  %v3639_v36 = vld [vmem:[#allocation14 + $0x10] sm:$0xff] }
 0x7e2   : > { %v3005_v39 = vmax.f32 %v9775_v37, 0.0 }
 0x7e3   : > { %v3004_v40 = vmax.f32 %v9777_v38, 0.0 }
 0x7e4   : > { %3009 = vst.msk [vmem:[#allocation2 + $0x9] sm:$0x1] %vm1643_vm2, %v3005_v39  ;;  %v3640_v39 = vld [vmem:[#allocation14 + $0x18] sm:$0xff] }
 0x7e5   : > { %3008 = vst.msk [vmem:[#allocation2 + $0x1] sm:$0xff] %vm1646_vm4, %v3004_v40  ;;  %v7977_v40 = vpack.c.bf16 %v3640_v39, %v3639_v36 }
 0x7eb   : > { %v3017_v46 = vld [vmem:[#allocation2 + $0x9] sm:$0x1] }
 0x7ec   : > { %v3016_v43 = vld [vmem:[#allocation2 + $0x1] sm:$0xff] }
 0x7ed   : > { %v3010_v44 = vld [vmem:[#allocation2] sm:$0xff]  ;;  %7380 = vmatprep.mubr.msk.f32.mxu1 %vm1646_vm4, %v3016_v43  ;;  %v3011_v54 = vld [vmem:[#allocation2 + $0x8] sm:$0x1] }
 0x7ee   : > { %3366 = vst.msk [vmem:[#allocation2] sm:$0x1] %vm1643_vm2, %v9062_v0  ;;  %7381 = vmatmul.mubr.msk.f32.vlgmr.msra.gmra.mrb[12].mxu1 %vm1646_vm4, %v3017_v46  ;;  %v3185_v55 = vld [vmem:[#allocation2 + $0x2] sm:$0xff] }
 0x7ef   : > { %7928 = vmatpush3.bf16.msra.mxu1 %v7925_v23  ;;  %7391 = vmatprep.mubr.msk.f32.mxu1 %vm1646_vm4, %v3010_v44  ;;  %v6785_v46 = vld [vmem:[%s10233_s11 + $0x28] sm:$0xff] }
 0x7f0   : > { %7930 = vmatprep.subr.bf16.mxu1 %v7929_v45 }
 0x7f3   : > { %7932 = vmatpush3.bf16.msra.mxu1 %v7929_v45  ;;  %v6784_v45 = vld [vmem:[%s10233_s11 + $0x20] sm:$0xff] }
 0x7f4   : > { %7934 = vmatprep.subr.bf16.mxu1 %v7933_v49  ;;  %v7981_v48 = vpack.c.bf16 %v6785_v46, %v6784_v45 }
 0x7f6   : > { %7392 = vmatmul.mubr.msk.f32.vlgmr.msra.gmra.mrb[12].mxu1 %vm1646_vm4, %v3011_v54 }
 0x7f7   : > { %7936 = vmatpush3.bf16.msra.mxu1 %v7933_v49  ;;  %7402 = vmatprep.mubr.msk.f32.mxu1 %vm1646_vm4, %v3185_v55  ;;  %v6787_v49 = vld [vmem:[%s10233_s11 + $0x38] sm:$0xff] }
 0x7f8   : > { %7938 = vmatprep.subr.bf16.mxu1 %v7937_v53  ;;  %v7985_v51 = vpack.c.bf16 %v6787_v49, %v6786_v47 }
 0x7fb   : > { %7940 = vmatpush3.bf16.msra.mxu1 %v7937_v53  ;;  %v3735_v53 = vld [vmem:[%s10233_s11 + $0x8] sm:$0xff] }
 0x7fc   : > { %7974 = vmatprep.subr.bf16.mxu1 %v7973_v13  ;;  %v7989_v54 = vpack.c.bf16 %v3735_v53, %v3734_v52 }
 0x7fe   : > { %7403 = vmatmul.mubr.msk.f32.vlgmr.msra.gmra.mrb[12].mxu1 %vm1646_vm4, %v3186_v24  ;;  %v7961_v24 = vpack.c.bf16 %v3375_v21, %v3374_v20 }
 0x7ff   : > { %7976 = vmatpush3.bf16.msra.mxu1 %v7973_v13  ;;  %v3908_v13 = vld [vmem:[#allocation2 + $0xa] sm:$0x1] }
 0x800   : > { %7978 = vmatprep.subr.bf16.mxu1 %v7977_v40  ;;  %4240 = vst.msk [vmem:[#allocation2 + $0xa] sm:$0x1] %vm4233_vm10, %v9062_v0 }
 0x803   : > { %7980 = vmatpush3.bf16.msra.mxu1 %v7977_v40 }
 0x804   : > { %7982 = vmatprep.subr.bf16.mxu1 %v7981_v48 }
 0x8d1   : > { %v7404_v59 = vpop.f32.mrb[12].mxu1 }
 0x8d2   : > { %v3264_v60 = vpop.f32.mrb[13].mxu1  ;;  %v3276_v62 = vmax.f32 %v7404_v59, 0.0 }
 0x8d3   : > { %v3275_v61 = vmax.f32 %v3264_v60, 0.0 }
 0x8d5   : > { %7413 = vmatprep.mubr.msk.f32.mxu0 %vm1646_vm4, %v3275_v61 }
 0x8d6   : > { %7414 = vmatmul.mubr.msk.f32.vlgmr.msra.gmra.mrb[22].mxu0 %vm1646_vm4, %v3276_v62 }
 0x8d7   : > { %7952 = vmatpush3.bf16.msra.mxu0 %v7949_v3  ;;  %v7993_v3 = vpack.c.bf16 %v3737_v1, %v3736_v63 }
 0x8d8   : > { %7954 = vmatprep.subr.bf16.mxu0 %v7953_v5 }
 0x8db   : > { %7956 = vmatpush3.bf16.msra.mxu0 %v7953_v5  ;;  %v6792_v5 = vld [vmem:[%s10233_s11 + $0x40] sm:$0xff] }
 0x8dc   : > { %7958 = vmatprep.subr.bf16.mxu0 %v7957_v9 }
 0x9a9   : > { %v7415_v14 = vpop.f32.mrb[22].mxu0 }
 0x9aa   : > { %v3363_v15 = vadd.f32 %v7415_v14, %v9775_v37  ;;  %v3353_v16 = vpop.f32.mrb[23].mxu0  ;;  %v4006_v14 = vld [vmem:[%s10234_s5] sm:$0xff] }
 0x9ab   : > { %v3362_v17 = vadd.f32 %v3353_v16, %v9777_v38 }
 0x9ac   : > { %v3365_v18 = vmax.f32 %v3363_v15, 0.0 }
 0x9ad   : > { %v3364_v19 = vmax.f32 %v3362_v17, 0.0 }
 0x9ae   : > { %3369 = vst.msk [vmem:[#allocation2 + $0x9] sm:$0x1] %vm1643_vm2, %v3365_v18 }
 0x9af   : > { %3368 = vst.msk [vmem:[#allocation2 + $0x1] sm:$0xff] %vm1646_vm4, %v3364_v19 }
 0x9b5   : > { %v3377_v25 = vld [vmem:[#allocation2 + $0x9] sm:$0x1] }
 0x9b6   : > { %v3376_v22 = vld [vmem:[#allocation2 + $0x1] sm:$0xff] }
 0x9b7   : > { %v3370_v23 = vld [vmem:[#allocation2] sm:$0xff]  ;;  %7424 = vmatprep.mubr.msk.f32.mxu0 %vm1646_vm4, %v3376_v22  ;;  %v3371_v34 = vld [vmem:[#allocation2 + $0x8] sm:$0x1] }
 0x9b8   : > { %3728 = vst.msk [vmem:[#allocation2] sm:$0x1] %vm1643_vm2, %v9062_v0  ;;  %7425 = vmatmul.mubr.msk.f32.vlgmr.msra.gmra.mrb[24].mxu0 %vm1646_vm4, %v3377_v25  ;;  %v3545_v35 = vld [vmem:[#allocation2 + $0x2] sm:$0xff] }
 0x9b9   : > { %7960 = vmatpush3.bf16.msra.mxu0 %v7957_v9  ;;  %7435 = vmatprep.mubr.msk.f32.mxu0 %vm1646_vm4, %v3370_v23  ;;  %v6795_v9 = vld [vmem:[%s10233_s11 + $0x58] sm:$0xff] }
 0x9ba   : > { %7962 = vmatprep.subr.bf16.mxu0 %v7961_v24 }
 0x9bd   : > { %7964 = vmatpush3.bf16.msra.mxu0 %v7961_v24  ;;  %v6801_v24 = vld [vmem:[%s10236_s0] ss:$0 sm:$0xff]  ;;  %s1367_s0 = scalar_lea.vmem %s9248_s3, %s9577_s7 }
 0x9be   : > { %7966 = vmatprep.subr.bf16.mxu0 %v7965_v30 }
 0x9c0   : > { %7436 = vmatmul.mubr.msk.f32.vlgmr.msra.gmra.mrb[24].mxu0 %vm1646_vm4, %v3371_v34 }
 0x9c1   : > { %7968 = vmatpush3.bf16.msra.mxu0 %v7965_v30  ;;  %7446 = vmatprep.mubr.msk.f32.mxu0 %vm1646_vm4, %v3545_v35 }
 0x9c2   : > { %7970 = vmatprep.subr.bf16.mxu0 %v7969_v33 }
 0x9c5   : > { %7972 = vmatpush3.bf16.msra.mxu0 %v7969_v33 }
 0x9c8   : > { %7447 = vmatmul.mubr.msk.f32.vlgmr.msra.gmra.mrb[24].mxu0 %vm1646_vm4, %v3546_v10  ;;  %v8001_v10 = vpack.c.bf16 %v6795_v9, %v6794_v8  ;;  %v4250_v8 = vld [vmem:[#allocation16 + $0x10] sm:$0xff]  ;;  %v4251_v9 = vld [vmem:[#allocation16 + $0x18] sm:$0xff] }
 0xa9b   : > { %v7448_v41 = vpop.f32.mrb[24].mxu0 }
 0xa9c   : > { %v3624_v42 = vpop.f32.mrb[25].mxu0  ;;  %v3636_v44 = vmax.f32 %v7448_v41, 0.0 }
 0xa9d   : > { %v3635_v43 = vmax.f32 %v3624_v42, 0.0 }
 0xa9f   : > { %7457 = vmatprep.mubr.msk.f32.mxu1 %vm1646_vm4, %v3635_v43 }
 0xaa0   : > { %7458 = vmatmul.mubr.msk.f32.vlgmr.msra.gmra.mrb[14].mxu1 %vm1646_vm4, %v3636_v44 }
 0xaa1   : > { %7984 = vmatpush3.bf16.msra.mxu1 %v7981_v48 }
 0xaa2   : > { %7986 = vmatprep.subr.bf16.mxu1 %v7985_v51 }
 0xaa5   : > { %7988 = vmatpush3.bf16.msra.mxu1 %v7985_v51 }
 0xaa6   : > { %7990 = vmatprep.subr.bf16.mxu1 %v7989_v54 }
 0xb73   : > { %v7459_v55 = vpop.f32.mrb[14].mxu1 }
 0xb74   : > { %v3723_v56 = vadd.f32 %v7459_v55, %v3363_v15  ;;  %v3713_v57 = vpop.f32.mrb[15].mxu1  ;;  %v4007_v15 = vld [vmem:[%s10234_s5 + $0x8] sm:$0xff] }
 0xb75   : > { %v3722_v58 = vadd.f32 %v3713_v57, %v3362_v17  ;;  %v8005_v16 = vpack.c.bf16 %v4007_v15, %v4006_v14  ;;  %v6798_v17 = vld [vmem:[%s10235_s6] ss:$0 sm:$0xff]  ;;  %s10237_s6 = sld [smem:[#allocation53_spill]] }
 0xb76   : > { %v3725_v59 = vmax.f32 %v3723_v56, 0.0 }
 0xb77   : > { %v3724_v60 = vmax.f32 %v3722_v58, 0.0  ;;  %8006 = vmatprep.subr.bf16.mxu0 %v8005_v16 }
 0xb78   : > { %v3727_v61 = vadd.f32 %v3725_v59, %v9775_v37  ;;  %8008 = vmatpush3.bf16.msra.mxu0 %v8005_v16  ;;  %v4417_v16 = vld [vmem:[#allocation16 + $0x20] sm:$0xff] }
 0xb79   : > { %v3726_v62 = vadd.f32 %v3724_v60, %v9777_v38  ;;  %v7997_v38 = vpack.c.bf16 %v6793_v7, %v6792_v5 }
 0xb7a   : > { %3731 = vst.msk [vmem:[#allocation2 + $0x9] sm:$0x1] %vm1643_vm2, %v3727_v61 }
 0xb7b   : > { %3730 = vst.msk [vmem:[#allocation2 + $0x1] sm:$0xff] %vm1646_vm4, %v3726_v62  ;;  %v4148_v55 = vld [vmem:[%s10237_s6 + $0x8] sm:$0xff]  ;;  %v4149_v57 = vld [vmem:[%s10237_s6 + $0x10] sm:$0xff]  ;;  %v4150_v58 = vld [vmem:[%s10237_s6 + $0x18] sm:$0xff] }
 0xb7c   : > { %v8013_v59 = vpack.c.bf16 %v4150_v58, %v4149_v57 }
 0xb81   : > { %v3739_v4 = vld [vmem:[#allocation2 + $0x9] sm:$0x1] }
 0xb82   : > { %v3738_v2 = vld [vmem:[#allocation2 + $0x1] sm:$0xff] }
 0xb83   : > { %7468 = vmatprep.mubr.msk.f32.mxu1 %vm1646_vm4, %v3738_v2  ;;  %v3732_v37 = vld [vmem:[#allocation2] sm:$0xff]  ;;  %v3733_v11 = vld [vmem:[#allocation2 + $0x8] sm:$0x1] }
 0xb84   : > { %7469 = vmatmul.mubr.msk.f32.vlgmr.msra.gmra.mrb[16].mxu1 %vm1646_vm4, %v3739_v4  ;;  %v3907_v12 = vld [vmem:[#allocation2 + $0x2] sm:$0xff]  ;;  %4239 = vst.msk [vmem:[#allocation2] sm:$0x1] %vm4233_vm10, %v9062_v0 }
 0xb85   : > { %7992 = vmatpush3.bf16.msra.mxu1 %v7989_v54  ;;  %7479 = vmatprep.mubr.msk.f32.mxu1 %vm1646_vm4, %v3732_v37  ;;  %v4147_v54 = vld [vmem:[%s10237_s6] sm:$0xff] }
 0xb86   : > { %7994 = vmatprep.subr.bf16.mxu1 %v7993_v3  ;;  %v8009_v56 = vpack.c.bf16 %v4148_v55, %v4147_v54 }
 0xb88   : > { %8010 = vmatprep.subr.bf16.mxu0 %v8009_v56 }
 0xb89   : > { %7996 = vmatpush3.bf16.msra.mxu1 %v7993_v3 }
 0xb8a   : > { %7998 = vmatprep.subr.bf16.mxu1 %v7997_v38 }
 0xb8c   : > { %7480 = vmatmul.mubr.msk.f32.vlgmr.msra.gmra.mrb[16].mxu1 %vm1646_vm4, %v3733_v11  ;;  %v4245_v11 = vld [vmem:[#allocation16] sm:$0xff] }
 0xb8d   : > { %8000 = vmatpush3.bf16.msra.mxu1 %v7997_v38  ;;  %7490 = vmatprep.mubr.msk.f32.mxu1 %vm1646_vm4, %v3907_v12  ;;  %v4246_v12 = vld [vmem:[#allocation16 + $0x8] sm:$0xff] }
 0xb8e   : > { %8002 = vmatprep.subr.bf16.mxu1 %v8001_v10 }
 0xb91   : > { %8004 = vmatpush3.bf16.msra.mxu1 %v8001_v10  ;;  %v8017_v10 = vpack.c.bf16 %v4251_v9, %v4250_v8  ;;  %v4830_v9 = vld [vmem:[#allocation19 + $0x50] sm:$0xff] }
 0xb92   : > { %8128 = vmatprep.subr.bf16.mxu1 %v9063_v50 }
 0xb94   : > { %7491 = vmatmul.mubr.msk.f32.vlgmr.msra.gmra.mrb[16].mxu1 %vm1646_vm4, %v3908_v13  ;;  %v8021_v13 = vpack.c.bf16 %v4246_v12, %v4245_v11 }
 0xb95   : > { %7539 = vmatprep.mubr.msk.f32.mxu1 %vm9064_vm5, %v9062_v0 }
 0xc67   : > { %v7492_v18 = vpop.f32.mrb[16].mxu1 }
 0xc68   : > { %v4005_v19 = vadd.f32 %v7492_v18, %v6798_v17  ;;  %v3986_v20 = vpop.f32.mrb[17].mxu1 }
 0xc69   : > { %v4004_v21 = vadd.f32 %v6798_v17, %v3986_v20  ;;  %v4418_v17 = vld [vmem:[#allocation16 + $0x28] sm:$0xff] }
 0xc6a   : > { %4234 = vst.msk [vmem:[%s1357_s19 + $0x8] sm:$0x1] %vm4233_vm10, %v4005_v19 }
 0xc6b   : > { %4232 = vst.msk [vmem:[%s1357_s19] sm:$0xff] %vm4008_vm11, %v4004_v21  ;;  %7497 = vmatprep.mubr.msk.f32.mxu0 %vm4008_vm11, %v4004_v21  ;;  %s1362_s19 = scalar_lea.vmem %s9243_s13, %s9577_s7  ;;  %s10238_s7 = sld [smem:[#allocation62_spill]] }
 0xc6c   : > { %7498 = vmatmul.mubr.msk.f32.vlgmr.msra.gmra.mrb[26].mxu0 %vm4008_vm11, %v4005_v19  ;;  %v8025_v19 = vpack.c.bf16 %v4418_v17, %v4417_v16  ;;  %v4929_v16 = vld [vmem:[#allocation20 + $0x10] sm:$0xff]  ;;  %v4930_v17 = vld [vmem:[#allocation20 + $0x18] sm:$0xff] }
 0xc6d   : > { %8012 = vmatpush3.bf16.msra.mxu0 %v8009_v56 }
 0xc6e   : > { %8014 = vmatprep.subr.bf16.mxu0 %v8013_v59 }
 0xc71   : > { %8016 = vmatpush3.bf16.msra.mxu0 %v8013_v59  ;;  %v4634_v59 = vld [vmem:[#allocation19] sm:$0xff] }
 0xc72   : > { %8018 = vmatprep.subr.bf16.mxu0 %v8017_v10 }
 0xd3f   : > { %v7499_v22 = vpop.f32.mrb[26].mxu0 }
 0xd40   : > { %v4081_v23 = vpop.f32.mrb[27].mxu0  ;;  %v4092_v25 = vmul.f32 2.0, %v7499_v22  ;;  %v4415_v22 = vld [vmem:[#allocation2 + $0xa] sm:$0x1] }
 0xd41   : > { %v4091_v26 = vmul.f32 2.0, %v4081_v23 }
 0xd42   : > { %v4100_v31 = vsub.f32 %v6801_v24, %v4092_v25  ;;  %v6812_v25 = vld [vmem:[#allocation17] ss:$0 sm:$0xff] }
 0xd43   : > { %v4099_v29 = vsub.f32 %v6801_v24, %v4091_v26  ;;  %v4517_v26 = vmul.u32 2, %v9701_v28 }
 0xd44   : > { %v4104_v32 = vsel %vm1643_vm2, %v4100_v31, inf }
 0xd45   : > { %v4101_v30 = vsel %vm1646_vm4, %v4099_v29, inf  ;;  %vm4519_vm9 = vcmp.eq.s32.totalorder %v9710_v6, %v4517_v26 }
 0xd46   : > { %4102 = vmin.xlane.f32.xlu0 %v4101_v30 }
 0xd4a   : > { %4105 = vmin.xlane.f32.xlu0 %v4104_v32 }
 0xdd3   : > { %v4103_v33 = vpop.xlane.xlu0 %4102 }
 0xdd4   : > { %vm4107_vm12 = vcmp.le.f32.partialorder %v4099_v29, %v4103_v33  ;;  %v4521_v33 = vadd.s32 1, %v4517_v26 }
 0xdd5   : > { %v4109_v34 = vsel %vm4107_vm12, %v9701_v28, 32 }
 0xdd6   : > { %v4111_v35 = vsel %vm1646_vm4, %v4109_v34, 2147483647  ;;  %vm4522_vm8 = vcmp.eq.s32.totalorder %v9699_v27, %v4521_v33  ;;  %v4516_v34 = vadd.s32 16, %v9699_v27 }
 0xdd7   : > { %v4106_v36 = vpop.xlane.xlu0 %4105  ;;  %v4113_v39 = vshra.s32 %v4111_v35, 16  ;;  %v4112_v45 = vand.u32 65535, %v4111_v35 }
 0xdd8   : > { %vm4108_vm13 = vcmp.le.f32.partialorder %v4100_v31, %v4106_v36 }
 0xdd9   : > { %v4110_v40 = vsel %vm4108_vm13, %v9701_v28, 32  ;;  %v4115_v41 = vcvt.s32.f32 %v4113_v39  ;;  %v4114_v47 = vcvt.s32.f32 %v4112_v45 }
 0xdda   : > { %v4126_v42 = vsel %vm1643_vm2, %v4110_v40, 2147483647 }
 0xddb   : > { %4116 = vmin.xlane.f32.xlu1 %v4115_v41  ;;  %v4128_v43 = vshra.s32 %v4126_v42, 16  ;;  %v4127_v48 = vand.u32 65535, %v4126_v42 }
 0xddd   : > { %v4130_v44 = vcvt.s32.f32 %v4128_v43  ;;  %v4129_v52 = vcvt.s32.f32 %v4127_v48  ;;  %v4644_v43 = vld [vmem:[#allocation19 + $0x30] sm:$0xff] }
 0xddf   : > { %4131 = vmin.xlane.f32.xlu1 %v4130_v44 }
 0xe68   : > { %v4117_v46 = vpop.xlane.xlu1 %4116 }
 0xe69   : > { %vm4118_vm14 = vcmp.eq.f32.partialorder %v4115_v41, %v4117_v46  ;;  %v4123_v60 = vcvt.f32.s32 %v4117_v46  ;;  %v4643_v41 = vld [vmem:[#allocation19 + $0x28] sm:$0xff]  ;;  %v4927_v46 = vld [vmem:[#allocation20] sm:$0xff] }
 0xe6a   : > { %v4119_v49 = vsel %vm4118_vm14, %v4114_v47, inf  ;;  %vm4520_vm14 = vcmp.eq.s32.totalorder %v4516_v34, %v4517_v26  ;;  %v4928_v47 = vld [vmem:[#allocation20 + $0x8] sm:$0xff] }
 0xe6b   : > { %4120 = vmin.xlane.f32.xlu0 %v4119_v49  ;;  %v4124_v62 = vshll.u32 %v4123_v60, 16  ;;  %v8051_v48 = vpack.c.bf16 %v4928_v47, %v4927_v46  ;;  %v4635_v60 = vld [vmem:[#allocation19 + $0x8] sm:$0xff]  ;;  %v5034_v46 = vld [vmem:[#allocation22] sm:$0xff] }
 0xe6c   : > { %v4132_v51 = vpop.xlane.xlu1 %4131  ;;  %v5035_v47 = vld [vmem:[#allocation22 + $0x8] sm:$0xff] }
 0xe6d   : > { %vm4133_vm15 = vcmp.eq.f32.partialorder %v4130_v44, %v4132_v51  ;;  %v4138_v63 = vcvt.f32.s32 %v4132_v51  ;;  %v4645_v44 = vld [vmem:[#allocation19 + $0x38] sm:$0xff] }
 0xe6e   : > { %v4134_v53 = vsel %vm4133_vm15, %v4129_v52, inf  ;;  %vm4524_vm15 = vcmp.eq.s32.totalorder %v4516_v34, %v4521_v33  ;;  %v8036_v45 = vpack.c.bf16 %v4645_v44, %v4644_v43  ;;  %v5045_v34 = vld [vmem:[#allocation22 + $0x38] sm:$0xff] }
 0xe6f   : > { %4135 = vmin.xlane.f32.xlu1 %v4134_v53  ;;  %v4139_v4 = vshll.u32 %v4138_v63, 16  ;;  %v4637_v63 = vld [vmem:[#allocation19 + $0x18] sm:$0xff] }
 0xef8   : > { %v4121_v61 = vpop.xlane.xlu0 %4120 }
 0xef9   : > { %v4122_v1 = vcvt.f32.s32 %v4121_v61  ;;  %v8039_v61 = vpack.c.bf16 %v4635_v60, %v4634_v59  ;;  %v5228_v60 = vld [vmem:[#allocation22 + $0x40] sm:$0xff] }
 0xefb   : > { %v4125_v2 = vadd.s32 %v4124_v62, %v4122_v1  ;;  %v4636_v62 = vld [vmem:[#allocation19 + $0x10] sm:$0xff] }
 0xefc   : > { %v4136_v3 = vpop.xlane.xlu1 %4135 }
 0xefd   : > { %vm4141_vm0 = vcmp.eq.s32.totalorder %v9701_v28, %v4125_v2  ;;  %v4137_v5 = vcvt.f32.s32 %v4136_v3 }
 0xefe   : > { %v6802_v7 = vsel %vm4141_vm0, 1.0, %v9062_v0  ;;  %vm4527_vm0 = vmor %vm4520_vm14, %vm4524_vm15 }
 0xeff   : > { %v4140_v37 = vadd.s32 %v4139_v4, %v4137_v5  ;;  %7508 = vmatprep.mubr.msk.f32.mxu0 %vm1646_vm4, %v6802_v7  ;;  %4237 = vst.msk [vmem:[%s1367_s0] sm:$0xff] %vm1646_vm4, %v6802_v7  ;;  %v8042_v4 = vpack.c.bf16 %v4637_v63, %v4636_v62 }
 0xf01   : > { %vm4142_vm7 = vcmp.eq.s32.totalorder %v9701_v28, %v4140_v37  ;;  %v4828_v37 = vld [vmem:[#allocation19 + $0x40] sm:$0xff] }
 0xf02   : > { %v6803_v38 = vsel %vm4142_vm7, 1.0, %v9062_v0 }
 0xf03   : > { %4238 = vst.msk [vmem:[%s1367_s0 + $0x8] sm:$0x1] %vm1643_vm2, %v6803_v38  ;;  %7509 = vmatmul.mubr.msk.f32.vlgmr.msra.gmra.mrb[28].mxu0 %vm1646_vm4, %v6803_v38  ;;  %v4829_v38 = vld [vmem:[#allocation19 + $0x48] sm:$0xff]  ;;  %s8186_s0 = smul.u32 24, %s10240_s26 }
 0xf04   : > { %8020 = vmatpush3.bf16.msra.mxu0 %v8017_v10  ;;  %v8045_v8 = vpack.c.bf16 %v4829_v38, %v4828_v37  ;;  %v4831_v10 = vld [vmem:[#allocation19 + $0x58] sm:$0xff] }
 0xf05   : > { %8022 = vmatprep.subr.bf16.mxu0 %v8021_v13  ;;  %v8048_v11 = vpack.c.bf16 %v4831_v10, %v4830_v9  ;;  %v5330_v9 = vld [vmem:[#allocation23 + $0x18] sm:$0xff] }
 0xfd6   : > { %v7510_v14 = vpop.f32.mrb[28].mxu0 }
 0xfd7   : > { %4236 = vst.msk [vmem:[%s1362_s19 + $0x8] sm:$0x1] %vm4233_vm10, %v7510_v14  ;;  %4242 = vst.msk [vmem:[#allocation2 + $0x9] sm:$0x1] %vm4233_vm10, %v7510_v14  ;;  %v4223_v15 = vpop.f32.mrb[29].mxu0  ;;  %vm4523_vm10 = vcmp.eq.s32.totalorder %v9710_v6, %v4521_v33  ;;  %v4642_v6 = vld [vmem:[#allocation19 + $0x20] sm:$0xff] }
 0xfd8   : > { %4235 = vst.msk [vmem:[%s1362_s19] sm:$0xff] %vm4008_vm11, %v4223_v15  ;;  %4241 = vst.msk [vmem:[#allocation2 + $0x1] sm:$0xff] %vm4008_vm11, %v4223_v15  ;;  %v8033_v42 = vpack.c.bf16 %v4643_v41, %v4642_v6  ;;  %v5044_v33 = vld [vmem:[#allocation22 + $0x30] sm:$0xff]  ;;  %s1352_s19 = scalar_lea.vmem %s9233_s9, %s8186_s0 }
 0xfd9   : > { %vm4526_vm13 = vmor %vm4519_vm9, %vm4523_vm10 }
 0xfda   : > { %v6814_v40 = vsel %vm4526_vm13, 1.0, %v9062_v0 }
 0xfde   : > { %v4248_v20 = vld [vmem:[#allocation2 + $0x9] sm:$0x1] }
 0xfdf   : > { %v4247_v18 = vld [vmem:[#allocation2 + $0x1] sm:$0xff] }
 0xfe0   : > { %7515 = vmatprep.mubr.msk.f32.mxu0 %vm4008_vm11, %v4247_v18  ;;  %v4414_v21 = vld [vmem:[#allocation2 + $0x2] sm:$0xff]  ;;  %v8054_v18 = vpack.c.bf16 %v4930_v17, %v4929_v16 }
 0xfe1   : > { %7516 = vmatmul.mubr.msk.f32.vlgmr.msra.gmra.mrb[30].mxu0 %vm4008_vm11, %v4248_v20  ;;  %v4243_v23 = vld [vmem:[#allocation2] sm:$0xff]  ;;  %4513 = vst.msk [vmem:[#allocation2 + $0x9] sm:$0x7f] %vm2338_vm6, %v9062_v0  ;;  %v4244_v24 = vld [vmem:[#allocation2 + $0x8] sm:$0x1]  ;;  %vm4518_vm6 = vcmp.eq.s32.totalorder %v9699_v27, %v4517_v26  ;;  %v6815_v27 = vsel %vm4527_vm0, 1.0, %v9062_v0 }
 0xfe2   : > { %7522 = vmatprep.mubr.msk.f32.mxu0 %vm4008_vm11, %v4243_v23  ;;  %8024 = vmatpush3.bf16.msra.mxu0 %v8021_v13  ;;  %vm4525_vm12 = vmor %vm4518_vm6, %vm4522_vm8 }
 0xfe3   : > { %8026 = vmatprep.subr.bf16.mxu0 %v8025_v19  ;;  %v6813_v39 = vsel %vm4525_vm12, 1.0, %v9062_v0 }
 0xfe9   : > { %7523 = vmatmul.mubr.msk.f32.vlgmr.msra.gmra.mrb[30].mxu0 %vm4008_vm11, %v4244_v24 }
 0xfea   : > { %7529 = vmatprep.mubr.msk.f32.mxu0 %vm4008_vm11, %v4414_v21  ;;  %8028 = vmatpush3.bf16.msra.mxu0 %v8025_v19 }
 0xfeb   : > { %8029 = vmatprep.subr.bf16.mxu0 %v9063_v50 }
 0xff1   : > { %7530 = vmatmul.mubr.msk.f32.vlgmr.msra.gmra.mrb[30].mxu0 %vm4008_vm11, %v4415_v22 }
 0xff2   : > { %7536 = vmatprep.mubr.msk.f32.mxu0 %vm9064_vm5, %v9062_v0 }
0x10c4   : > { %v7531_v29 = vpop.f32.mrb[30].mxu0 }
0x10c5   : > { %v4510_v30 = vadd.f32 %v7531_v29, %v6812_v25  ;;  %v4491_v31 = vpop.f32.mrb[31].mxu0 }
0x10c6   : > { %v4509_v32 = vadd.f32 %v6812_v25, %v4491_v31  ;;  %v5043_v31 = vld [vmem:[#allocation22 + $0x28] sm:$0xff] }
0x10c7   : > { %4512 = vst.msk [vmem:[#allocation2 + $0x8] sm:$0x1] %vm1643_vm2, %v4510_v30  ;;  %v5042_v30 = vld [vmem:[#allocation22 + $0x20] sm:$0xff] }
0x10c8   : > { %4511 = vst.msk [vmem:[#allocation2] sm:$0xff] %vm1646_vm4, %v4509_v32  ;;  %v8057_v32 = vpack.c.bf16 %v5043_v31, %v5042_v30  ;;  %v5436_v30 = vld [vmem:[#allocation25 + $0x10] sm:$0xff] }
0x10ce   : > { %v4515_v28 = vld [vmem:[#allocation2 + $0x8] sm:$0xff] }
0x10cf   : > { %v4514_v35 = vld [vmem:[#allocation2] sm:$0xff] }
0x10d0   : > { %v8030_v36 = vpack.c.bf16 %v4515_v28, %v4514_v35  ;;  %4626 = vst.msk [vmem:[#allocation2] sm:$0x1] %vm1643_vm2, %v9062_v0  ;;  %v8060_v28 = vpack.c.bf16 %v5045_v34, %v5044_v33  ;;  %v5327_v35 = vld [vmem:[#allocation23] sm:$0xff] }
0x10d2   : > { %8031 = vmatpush3.bf16.msra.mxu0 %v8030_v36  ;;  %8129 = vmatpush3.bf16.msra.mxu1 %v8030_v36  ;;  %v5328_v36 = vld [vmem:[#allocation23 + $0x8] sm:$0xff] }
0x10d3   : > { %8032 = vmatprep.subr.bf16.mxu0 %v9063_v50  ;;  %8050 = vmatprep.subr.bf16.mxu1 %v9063_v50 }
0x10d5   : > { %7537 = vmatmul.mubr.msk.f32.vlgmr.msra.gmra.mrb[32].mxu0 %vm4008_vm11, %v6813_v39  ;;  %7540 = vmatmul.mubr.msk.f32.vlgmr.msra.gmra.mrb[18].mxu1 %vm4008_vm11, %v6814_v40  ;;  %v8075_v39 = vpack.c.bf16 %v5328_v36, %v5327_v35 }
0x10d6   : > { %7542 = vmatprep.mubr.msk.f32.mxu1 %vm9064_vm5, %v9062_v0  ;;  %7553 = vmatprep.mubr.msk.f32.mxu0 %vm9064_vm5, %v9062_v0 }
0x10d7   : > { %8034 = vmatpush3.bf16.msra.mxu0 %v8033_v42  ;;  %8052 = vmatpush3.bf16.msra.mxu1 %v8051_v48 }
0x10d8   : > { %8035 = vmatprep.subr.bf16.mxu0 %v9063_v50  ;;  %8053 = vmatprep.subr.bf16.mxu1 %v9063_v50 }
0x10d9   : > { %7543 = vmatmul.mubr.msk.f32.gmra.mrb[20].mxu1 %vm4008_vm11, %v6815_v27 }
0x10da   : > { %7604 = vmatprep.mubr.msk.f32.mxu1 %vm9064_vm5, %v9062_v0 }
0x10db   : > { %8037 = vmatpush3.bf16.msra.mxu0 %v8036_v45  ;;  %8055 = vmatpush3.bf16.msra.mxu1 %v8054_v18 }
0x10dc   : > { %8038 = vmatprep.subr.bf16.mxu0 %v9063_v50  ;;  %8056 = vmatprep.subr.bf16.mxu1 %v9063_v50 }
0x11a8   : > { %v9912_v49 = vpop.f32.mrb[32].mxu0  ;;  %v9914_v51 = vpop.f32.mrb[18].mxu1 }
0x11a9   : > { %v4623_v52 = vmax.f32 %v9912_v49, 0.0  ;;  %v4624_v53 = vmax.f32 %v9914_v51, 0.0  ;;  %v7538_v54 = vpop.f32.mrb[33].mxu0  ;;  %v7541_v55 = vpop.f32.mrb[19].mxu1 }
0x11aa   : > { %v5036_v55 = vld [vmem:[#allocation22 + $0x10] sm:$0xff] }
0x11ab   : > { %4628 = vst.msk [vmem:[#allocation2 + $0x1] sm:$0xff] %vm1646_vm4, %v4623_v52  ;;  %4629 = vst.msk [vmem:[#allocation2 + $0x9] sm:$0xff] %vm1646_vm4, %v4624_v53  ;;  %v8063_v53 = vpack.c.bf16 %v5035_v47, %v5034_v46 }
0x11ac   : > { %v9920_v56 = vpop.f32.mrb[20].mxu1 }
0x11ad   : > { %v4625_v57 = vmax.f32 %v9920_v56, 0.0  ;;  %v7544_v58 = vpop.f32.mrb[21].mxu1 }
0x11af   : > { %4630 = vst.msk [vmem:[#allocation2 + $0x11] sm:$0x3] %vm1927_vm3, %v4625_v57  ;;  %v5037_v57 = vld [vmem:[#allocation22 + $0x18] sm:$0xff] }
0x11b2   : > { %v4638_v1 = vld [vmem:[#allocation2 + $0x1] sm:$0xff]  ;;  %v4639_v3 = vld [vmem:[#allocation2 + $0x9] sm:$0xff] }
0x11b3   : > { %v4631_v2 = vld [vmem:[#allocation2] sm:$0xff]  ;;  %7554 = vmatmul.mubr.msk.f32.vlgmr.msra.gmra.mrb[34].mxu0 %vm1646_vm4, %v4638_v1  ;;  %v4632_v12 = vld [vmem:[#allocation2 + $0x8] sm:$0xff] }
0x11b4   : > { %5026 = vst.msk [vmem:[#allocation2] sm:$0x1] %vm1643_vm2, %v9062_v0  ;;  %7556 = vmatprep.mubr.msk.f32.mxu0 %vm9064_vm5, %v9062_v0  ;;  %8040 = vmatpush3.bf16.msra.mxu0 %v8039_v61  ;;  %v4824_v14 = vld [vmem:[#allocation2 + $0x2] sm:$0xff]  ;;  %v5229_v61 = vld [vmem:[#allocation22 + $0x48] sm:$0xff] }
0x11b5   : > { %8041 = vmatprep.subr.bf16.mxu0 %v9063_v50  ;;  %v8069_v1 = vpack.c.bf16 %v5229_v61, %v5228_v60  ;;  %v5753_v61 = vld [vmem:[#allocation28 + $0x20] sm:$0xff] }
0x11b6   : > { %v4826_v5 = vld [vmem:[#allocation2 + $0x12] sm:$0x3]  ;;  %v4633_v13 = vld [vmem:[#allocation2 + $0x10] sm:$0x3] }
0x11b7   : > { %7557 = vmatmul.mubr.msk.f32.gmra.mrb[36].mxu0 %vm1646_vm4, %v4639_v3  ;;  %v4640_v7 = vld [vmem:[#allocation2 + $0x11] sm:$0x3]  ;;  %5027 = vst.msk [vmem:[#allocation2 + $0x13] sm:$0x1] %vm1643_vm2, %v9062_v0 }
0x11b8   : > { %7559 = vmatprep.mubr.msk.f32.mxu0 %vm9064_vm5, %v9062_v0  ;;  %8043 = vmatpush3.bf16.msra.mxu0 %v8042_v4  ;;  %v4825_v15 = vld [vmem:[#allocation2 + $0xa] sm:$0xff] }
0x11b9   : > { %8044 = vmatprep.subr.bf16.mxu0 %v9063_v50  ;;  %v5231_v3 = vld [vmem:[#allocation22 + $0x58] sm:$0xff] }
0x11bb   : > { %7560 = vmatmul.mubr.msk.f32.gmra.mrb[38].mxu0 %vm1646_vm4, %v4640_v7 }
0x11bc   : > { %7570 = vmatprep.mubr.msk.f32.mxu0 %vm9064_vm5, %v9062_v0 }
0x11bf   : > { %7571 = vmatmul.mubr.msk.f32.vlgmr.msra.gmra.mrb[34].mxu0 %vm1646_vm4, %v4631_v2  ;;  %v5230_v2 = vld [vmem:[#allocation22 + $0x50] sm:$0xff] }
0x11c0   : > { %7573 = vmatprep.mubr.msk.f32.mxu0 %vm9064_vm5, %v9062_v0  ;;  %8046 = vmatpush3.bf16.msra.mxu0 %v8045_v8  ;;  %v8072_v4 = vpack.c.bf16 %v5231_v3, %v5230_v2  ;;  %v5329_v8 = vld [vmem:[#allocation23 + $0x10] sm:$0xff] }
0x11c1   : > { %8047 = vmatprep.subr.bf16.mxu0 %v9063_v50  ;;  %v8078_v10 = vpack.c.bf16 %v5330_v9, %v5329_v8  ;;  %v5746_v2 = vld [vmem:[#allocation28 + $0x8] sm:$0xff] }
0x11c3   : > { %7574 = vmatmul.mubr.msk.f32.gmra.mrb[36].mxu0 %vm1646_vm4, %v4632_v12 }
0x11c4   : > { %7576 = vmatprep.mubr.msk.f32.mxu0 %vm9064_vm5, %v9062_v0  ;;  %8049 = vmatpush3.bf16.msra.mxu0 %v8048_v11 }
0x11c5   : > { %8074 = vmatprep.subr.bf16.mxu0 %v9063_v50 }
0x11c7   : > { %7577 = vmatmul.mubr.msk.f32.gmra.mrb[38].mxu0 %vm1646_vm4, %v4633_v13 }
0x11c8   : > { %7587 = vmatprep.mubr.msk.f32.mxu0 %vm9064_vm5, %v9062_v0 }
0x11cb   : > { %7588 = vmatmul.mubr.msk.f32.vlgmr.msra.gmra.mrb[34].mxu0 %vm1646_vm4, %v4824_v14 }
0x11cc   : > { %7590 = vmatprep.mubr.msk.f32.mxu0 %vm9064_vm5, %v9062_v0  ;;  %8076 = vmatpush3.bf16.msra.mxu0 %v8075_v39 }
0x11cd   : > { %8077 = vmatprep.subr.bf16.mxu0 %v9063_v50 }
0x11cf   : > { %7591 = vmatmul.mubr.msk.f32.gmra.mrb[36].mxu0 %vm1646_vm4, %v4825_v15 }
0x11d0   : > { %7593 = vmatprep.mubr.msk.f32.mxu0 %vm9064_vm5, %v9062_v0  ;;  %8079 = vmatpush3.bf16.msra.mxu0 %v8078_v10 }
0x11d1   : > { %8080 = vmatprep.subr.bf16.mxu0 %v9063_v50 }
0x11d3   : > { %7594 = vmatmul.mubr.msk.f32.gmra.mrb[38].mxu0 %vm1646_vm4, %v4826_v5 }
0x11d4   : > { %7672 = vmatprep.mubr.msk.f32.mxu0 %vm9064_vm5, %v9062_v0 }
0x129e   : > { %v4907_v19 = vpop.f32.mrb[34].mxu0 }
0x129f   : > { %v4924_v20 = vmax.f32 %v4907_v19, 0.0  ;;  %v7589_v21 = vpop.f32.mrb[35].mxu0 }
0x12a0   : > { %v5443_v21 = vld [vmem:[#allocation25 + $0x28] sm:$0xff] }
0x12a1   : > { %7605 = vmatmul.mubr.msk.f32.vlgmr.msra.gmra.mrb[22].mxu1 %vm1646_vm4, %v4924_v20  ;;  %v5442_v20 = vld [vmem:[#allocation25 + $0x20] sm:$0xff] }
0x12a2   : > { %v4912_v22 = vpop.f32.mrb[36].mxu0  ;;  %7607 = vmatprep.mubr.msk.f32.mxu1 %vm9064_vm5, %v9062_v0  ;;  %8058 = vmatpush3.bf16.msra.mxu1 %v8057_v32  ;;  %v5437_v32 = vld [vmem:[#allocation25 + $0x18] sm:$0xff] }
0x12a3   : > { %v4925_v23 = vmax.f32 %v4912_v22, 0.0  ;;  %v7592_v24 = vpop.f32.mrb[37].mxu0  ;;  %8059 = vmatprep.subr.bf16.mxu1 %v9063_v50  ;;  %v5434_v22 = vld [vmem:[#allocation25] sm:$0xff]  ;;  %v8090_v33 = vpack.c.bf16 %v5437_v32, %v5436_v30 }
0x12a4   : > { %v5435_v24 = vld [vmem:[#allocation25 + $0x8] sm:$0xff] }
0x12a5   : > { %7608 = vmatmul.mubr.msk.f32.gmra.mrb[24].mxu1 %vm1646_vm4, %v4925_v23  ;;  %v8081_v23 = vpack.c.bf16 %v5443_v21, %v5442_v20 }
0x12a6   : > { %v4917_v25 = vpop.f32.mrb[38].mxu0  ;;  %7610 = vmatprep.mubr.msk.f32.mxu1 %vm9064_vm5, %v9062_v0  ;;  %8061 = vmatpush3.bf16.msra.mxu1 %v8060_v28 }
0x12a7   : > { %v4926_v26 = vmax.f32 %v4917_v25, 0.0  ;;  %v7595_v29 = vpop.f32.mrb[39].mxu0  ;;  %8062 = vmatprep.subr.bf16.mxu1 %v9063_v50  ;;  %v8087_v25 = vpack.c.bf16 %v5435_v24, %v5434_v22 }
0x12a8   : > { %v5445_v29 = vld [vmem:[#allocation25 + $0x38] sm:$0xff] }
0x12a9   : > { %7611 = vmatmul.mubr.msk.f32.gmra.mrb[26].mxu1 %vm1646_vm4, %v4926_v26  ;;  %v5444_v26 = vld [vmem:[#allocation25 + $0x30] sm:$0xff] }
0x12aa   : > { %7621 = vmatprep.mubr.msk.f32.mxu1 %vm9064_vm5, %v9062_v0  ;;  %v8084_v31 = vpack.c.bf16 %v5445_v29, %v5444_v26 }
0x1374   : > { %v5006_v40 = vpop.f32.mrb[22].mxu1 }
0x1375   : > { %v9973_v27 = vadd.f32 %v5006_v40, %v9912_v49  ;;  %v7606_v6 = vpop.f32.mrb[23].mxu1 }
0x1377   : > { %v5023_v41 = vmax.f32 %v9973_v27, 0.0 }
0x1378   : > { %v5011_v42 = vpop.f32.mrb[24].mxu1 }
0x1379   : > { %5028 = vst.msk [vmem:[#allocation2 + $0x1] sm:$0xff] %vm1646_vm4, %v5023_v41  ;;  %v9978_v43 = vadd.f32 %v5011_v42, %v9914_v51  ;;  %v7609_v44 = vpop.f32.mrb[25].mxu1 }
0x137a   : > { %v5628_v44 = vld [vmem:[#allocation25 + $0x40] sm:$0xff] }
0x137b   : > { %v5024_v45 = vmax.f32 %v9978_v43, 0.0 }
0x137c   : > { %v5016_v48 = vpop.f32.mrb[26].mxu1 }
0x137d   : > { %5029 = vst.msk [vmem:[#allocation2 + $0x9] sm:$0xff] %vm1646_vm4, %v5024_v45  ;;  %v9983_v49 = vadd.f32 %v5016_v48, %v9920_v56  ;;  %v7612_v52 = vpop.f32.mrb[27].mxu1  ;;  %v8066_v56 = vpack.c.bf16 %v5037_v57, %v5036_v55  ;;  %v5629_v45 = vld [vmem:[#allocation25 + $0x48] sm:$0xff]  ;;  %v5631_v55 = vld [vmem:[#allocation25 + $0x58] sm:$0xff] }
0x137e   : > { %v8093_v52 = vpack.c.bf16 %v5629_v45, %v5628_v44 }
0x137f   : > { %v5025_v54 = vmax.f32 %v9983_v49, 0.0 }
0x1380   : > { %v5038_v58 = vld [vmem:[#allocation2 + $0x1] sm:$0xff] }
0x1381   : > { %v5031_v51 = vld [vmem:[#allocation2] sm:$0xff]  ;;  %5030 = vst.msk [vmem:[#allocation2 + $0x11] sm:$0x3] %vm1927_vm3, %v5025_v54  ;;  %7622 = vmatmul.mubr.msk.f32.vlgmr.msra.gmra.mrb[28].mxu1 %vm1646_vm4, %v5038_v58 }
0x1382   : > { %5426 = vst.msk [vmem:[#allocation2] sm:$0x1] %vm1643_vm2, %v9062_v0  ;;  %7624 = vmatprep.mubr.msk.f32.mxu1 %vm9064_vm5, %v9062_v0  ;;  %8064 = vmatpush3.bf16.msra.mxu1 %v8063_v53 }
0x1383   : > { %8065 = vmatprep.subr.bf16.mxu1 %v9063_v50 }
0x1384   : > { %v5039_v59 = vld [vmem:[#allocation2 + $0x9] sm:$0xff] }
0x1385   : > { %7625 = vmatmul.mubr.msk.f32.gmra.mrb[30].mxu1 %vm1646_vm4, %v5039_v59  ;;  %v5032_v5 = vld [vmem:[#allocation2 + $0x8] sm:$0xff] }
0x1386   : > { %7627 = vmatprep.mubr.msk.f32.mxu1 %vm9064_vm5, %v9062_v0  ;;  %8067 = vmatpush3.bf16.msra.mxu1 %v8066_v56  ;;  %v5224_v37 = vld [vmem:[#allocation2 + $0x2] sm:$0xff] }
0x1387   : > { %8068 = vmatprep.subr.bf16.mxu1 %v9063_v50 }
0x1388   : > { %v5040_v62 = vld [vmem:[#allocation2 + $0x11] sm:$0x3] }
0x1389   : > { %7628 = vmatmul.mubr.msk.f32.gmra.mrb[32].mxu1 %vm1646_vm4, %v5040_v62  ;;  %v5226_v63 = vld [vmem:[#allocation2 + $0x12] sm:$0x3]  ;;  %v5033_v7 = vld [vmem:[#allocation2 + $0x10] sm:$0x3]  ;;  %v5754_v62 = vld [vmem:[#allocation28 + $0x28] sm:$0xff] }
0x138a   : > { %7638 = vmatprep.mubr.msk.f32.mxu1 %vm9064_vm5, %v9062_v0  ;;  %5427 = vst.msk [vmem:[#allocation2 + $0x13] sm:$0x1] %vm1643_vm2, %v9062_v0  ;;  %v5225_v38 = vld [vmem:[#allocation2 + $0xa] sm:$0xff] }
0x138d   : > { %7639 = vmatmul.mubr.msk.f32.vlgmr.msra.gmra.mrb[28].mxu1 %vm1646_vm4, %v5031_v51 }
0x138e   : > { %7641 = vmatprep.mubr.msk.f32.mxu1 %vm9064_vm5, %v9062_v0  ;;  %8070 = vmatpush3.bf16.msra.mxu1 %v8069_v1  ;;  %v8099_v1 = vpack.c.bf16 %v5754_v62, %v5753_v61  ;;  %v6058_v61 = vld [vmem:[%s10238_s7 + $0x8] sm:$0xff] }
0x138f   : > { %8071 = vmatprep.subr.bf16.mxu1 %v9063_v50 }
0x1391   : > { %7642 = vmatmul.mubr.msk.f32.gmra.mrb[30].mxu1 %vm1646_vm4, %v5032_v5  ;;  %v5756_v5 = vld [vmem:[#allocation28 + $0x38] sm:$0xff] }
0x1392   : > { %7644 = vmatprep.mubr.msk.f32.mxu1 %vm9064_vm5, %v9062_v0  ;;  %8073 = vmatpush3.bf16.msra.mxu1 %v8072_v4  ;;  %v5755_v4 = vld [vmem:[#allocation28 + $0x30] sm:$0xff] }
0x1393   : > { %8086 = vmatprep.subr.bf16.mxu1 %v9063_v50 }
0x1395   : > { %7645 = vmatmul.mubr.msk.f32.gmra.mrb[32].mxu1 %vm1646_vm4, %v5033_v7  ;;  %v5747_v7 = vld [vmem:[#allocation28 + $0x10] sm:$0xff] }
0x1396   : > { %7655 = vmatprep.mubr.msk.f32.mxu1 %vm9064_vm5, %v9062_v0 }
0x1399   : > { %7656 = vmatmul.mubr.msk.f32.vlgmr.msra.gmra.mrb[28].mxu1 %vm1646_vm4, %v5224_v37  ;;  %v8102_v37 = vpack.c.bf16 %v5756_v5, %v5755_v4  ;;  %v6060_v4 = vld [vmem:[%s10238_s7 + $0x18] sm:$0xff] }
0x139a   : > { %7658 = vmatprep.mubr.msk.f32.mxu1 %vm9064_vm5, %v9062_v0  ;;  %8088 = vmatpush3.bf16.msra.mxu1 %v8087_v25  ;;  %v6852_v25 = vld [vmem:[#allocation26] ss:$0 sm:$0xff] }
0x139b   : > { %8089 = vmatprep.subr.bf16.mxu1 %v9063_v50 }
0x139d   : > { %7659 = vmatmul.mubr.msk.f32.gmra.mrb[30].mxu1 %vm1646_vm4, %v5225_v38  ;;  %v5748_v38 = vld [vmem:[#allocation28 + $0x18] sm:$0xff] }
0x139e   : > { %7661 = vmatprep.mubr.msk.f32.mxu1 %vm9064_vm5, %v9062_v0  ;;  %8091 = vmatpush3.bf16.msra.mxu1 %v8090_v33  ;;  %v8108_v8 = vpack.c.bf16 %v5748_v38, %v5747_v7 }
0x139f   : > { %8098 = vmatprep.subr.bf16.mxu1 %v9063_v50 }
0x13a1   : > { %7662 = vmatmul.mubr.msk.f32.gmra.mrb[32].mxu1 %vm1646_vm4, %v5226_v63  ;;  %v5745_v63 = vld [vmem:[#allocation28] sm:$0xff] }
0x13a2   : > { %7706 = vmatprep.mubr.msk.f32.mxu1 %vm9064_vm5, %v9062_v0  ;;  %v8105_v3 = vpack.c.bf16 %v5746_v2, %v5745_v63  ;;  %v6865_v63 = vld [vmem:[%s10238_s7 + $0x30] sm:$0xff] }
0x13a3   : > { %v6059_v2 = vld [vmem:[%s10238_s7 + $0x10] sm:$0xff] }
0x13a4   : > { %v8126_v5 = vpack.c.bf16 %v6060_v4, %v6059_v2 }
0x146c   : > { %v5307_v11 = vpop.f32.mrb[28].mxu1 }
0x146d   : > { %v5324_v12 = vmax.f32 %v5307_v11, 0.0  ;;  %v7657_v13 = vpop.f32.mrb[29].mxu1 }
0x146f   : > { %7673 = vmatmul.mubr.msk.f32.vlgmr.msra.gmra.mrb[40].mxu0 %vm1646_vm4, %v5324_v12 }
0x1470   : > { %v5312_v14 = vpop.f32.mrb[30].mxu1  ;;  %7675 = vmatprep.mubr.msk.f32.mxu0 %vm9064_vm5, %v9062_v0  ;;  %8082 = vmatpush3.bf16.msra.mxu0 %v8081_v23 }
0x1471   : > { %v5325_v15 = vmax.f32 %v5312_v14, 0.0  ;;  %v7660_v16 = vpop.f32.mrb[31].mxu1  ;;  %8083 = vmatprep.subr.bf16.mxu0 %v9063_v50 }
0x1473   : > { %7676 = vmatmul.mubr.msk.f32.gmra.mrb[42].mxu0 %vm1646_vm4, %v5325_v15 }
0x1474   : > { %v5317_v17 = vpop.f32.mrb[32].mxu1  ;;  %7678 = vmatprep.mubr.msk.f32.mxu0 %vm9064_vm5, %v9062_v0  ;;  %8085 = vmatpush3.bf16.msra.mxu0 %v8084_v31 }
0x1475   : > { %v5326_v18 = vmax.f32 %v5317_v17, 0.0  ;;  %v7663_v19 = vpop.f32.mrb[33].mxu1  ;;  %8092 = vmatprep.subr.bf16.mxu0 %v9063_v50 }
0x1477   : > { %7679 = vmatmul.mubr.msk.f32.gmra.mrb[44].mxu0 %vm1646_vm4, %v5326_v18 }
0x1478   : > { %7689 = vmatprep.mubr.msk.f32.mxu0 %vm9064_vm5, %v9062_v0 }
0x1542   : > { %v5406_v34 = vpop.f32.mrb[40].mxu0 }
0x1543   : > { %v5420_v28 = vadd.f32 %v5406_v34, %v9973_v27  ;;  %v7674_v35 = vpop.f32.mrb[41].mxu0  ;;  %v5630_v27 = vld [vmem:[#allocation25 + $0x50] sm:$0xff] }
0x1545   : > { %v5423_v36 = vmax.f32 %v5420_v28, 0.0 }
0x1546   : > { %v5411_v39 = vpop.f32.mrb[42].mxu0 }
0x1547   : > { %5428 = vst.msk [vmem:[#allocation2 + $0x1] sm:$0xff] %vm1646_vm4, %v5423_v36  ;;  %v5421_v40 = vadd.f32 %v5411_v39, %v9978_v43  ;;  %v7677_v6 = vpop.f32.mrb[43].mxu0  ;;  %v8096_v43 = vpack.c.bf16 %v5631_v55, %v5630_v27 }
0x1548   : > { %v5939_v6 = vld [vmem:[#allocation28 + $0x40] sm:$0xff] }
0x1549   : > { %v5424_v41 = vmax.f32 %v5421_v40, 0.0 }
0x154a   : > { %v5416_v42 = vpop.f32.mrb[44].mxu0 }
0x154b   : > { %5429 = vst.msk [vmem:[#allocation2 + $0x9] sm:$0xff] %vm1646_vm4, %v5424_v41  ;;  %v5422_v46 = vadd.f32 %v5416_v42, %v9983_v49  ;;  %v7680_v47 = vpop.f32.mrb[45].mxu0  ;;  %v5940_v41 = vld [vmem:[#allocation28 + $0x48] sm:$0xff] }
0x154c   : > { %v8111_v45 = vpack.c.bf16 %v5940_v41, %v5939_v6 }
0x154d   : > { %v5425_v48 = vmax.f32 %v5422_v46, 0.0  ;;  %v5941_v46 = vld [vmem:[#allocation28 + $0x50] sm:$0xff] }
0x154e   : > { %v5438_v53 = vld [vmem:[#allocation2 + $0x1] sm:$0xff] }
0x154f   : > { %v5431_v54 = vld [vmem:[#allocation2] sm:$0xff]  ;;  %5430 = vst.msk [vmem:[#allocation2 + $0x11] sm:$0x3] %vm1927_vm3, %v5425_v48  ;;  %7690 = vmatmul.mubr.msk.f32.vlgmr.msra.gmra.mrb[46].mxu0 %vm1646_vm4, %v5438_v53 }
0x1550   : > { %7707 = vmatmul.mubr.msk.f32.vlgmr.msra.gmra.mrb[34].mxu1 %vm1646_vm4, %v5431_v54  ;;  %5737 = vst.msk [vmem:[#allocation2] sm:$0x3] %vm1927_vm3, %v9062_v0  ;;  %7692 = vmatprep.mubr.msk.f32.mxu0 %vm9064_vm5, %v9062_v0 }
0x1551   : > { %7709 = vmatprep.mubr.msk.f32.mxu1 %vm9064_vm5, %v9062_v0  ;;  %8094 = vmatpush3.bf16.msra.mxu0 %v8093_v52  ;;  %v5942_v52 = vld [vmem:[#allocation28 + $0x58] sm:$0xff] }
0x1552   : > { %v5439_v49 = vld [vmem:[#allocation2 + $0x9] sm:$0xff]  ;;  %8095 = vmatprep.subr.bf16.mxu0 %v9063_v50  ;;  %8100 = vmatpush3.bf16.msra.mxu1 %v8099_v1  ;;  %v8114_v27 = vpack.c.bf16 %v5942_v52, %v5941_v46  ;;  %v6866_v1 = vld [vmem:[%s10238_s7 + $0x38] sm:$0xff]  ;;  %v6873_v46 = vld [vmem:[#allocation31] ss:$0 sm:$0xff] }
0x1553   : > { %v5432_v57 = vld [vmem:[#allocation2 + $0x8] sm:$0xff]  ;;  %7693 = vmatmul.mubr.msk.f32.gmra.mrb[48].mxu0 %vm1646_vm4, %v5439_v49  ;;  %8101 = vmatprep.subr.bf16.mxu1 %v9063_v50 }
0x1554   : > { %7710 = vmatmul.mubr.msk.f32.gmra.mrb[36].mxu1 %vm1646_vm4, %v5432_v57  ;;  %7695 = vmatprep.mubr.msk.f32.mxu0 %vm9064_vm5, %v9062_v0  ;;  %v5624_v56 = vld [vmem:[#allocation2 + $0x2] sm:$0xff] }
0x1555   : > { %7712 = vmatprep.mubr.msk.f32.mxu1 %vm9064_vm5, %v9062_v0  ;;  %8097 = vmatpush3.bf16.msra.mxu0 %v8096_v43 }
0x1556   : > { %v5440_v58 = vld [vmem:[#allocation2 + $0x11] sm:$0x3]  ;;  %8104 = vmatprep.subr.bf16.mxu0 %v9063_v50  ;;  %8103 = vmatpush3.bf16.msra.mxu1 %v8102_v37 }
0x1557   : > { %v5433_v51 = vld [vmem:[#allocation2 + $0x10] sm:$0x3]  ;;  %7696 = vmatmul.mubr.msk.f32.gmra.mrb[50].mxu0 %vm1646_vm4, %v5440_v58  ;;  %v5626_v60 = vld [vmem:[#allocation2 + $0x12] sm:$0x3]  ;;  %8110 = vmatprep.subr.bf16.mxu1 %v9063_v50 }
0x1558   : > { %7713 = vmatmul.mubr.msk.f32.gmra.mrb[38].mxu1 %vm1646_vm4, %v5433_v51  ;;  %7723 = vmatprep.mubr.msk.f32.mxu0 %vm9064_vm5, %v9062_v0  ;;  %v5625_v59 = vld [vmem:[#allocation2 + $0xa] sm:$0xff]  ;;  %v6863_v51 = vld [vmem:[%s10238_s7 + $0x20] sm:$0xff] }
0x1559   : > { %7740 = vmatprep.mubr.msk.f32.mxu1 %vm9064_vm5, %v9062_v0 }
0x155b   : > { %7724 = vmatmul.mubr.msk.f32.vlgmr.msra.gmra.mrb[52].mxu0 %vm1646_vm4, %v5624_v56  ;;  %v6864_v56 = vld [vmem:[%s10238_s7 + $0x28] sm:$0xff] }
0x155c   : > { %7726 = vmatprep.mubr.msk.f32.mxu0 %vm9064_vm5, %v9062_v0  ;;  %8106 = vmatpush3.bf16.msra.mxu0 %v8105_v3  ;;  %v8120_v3 = vpack.c.bf16 %v6866_v1, %v6865_v63 }
0x155d   : > { %8107 = vmatprep.subr.bf16.mxu0 %v9063_v50 }
0x155f   : > { %7727 = vmatmul.mubr.msk.f32.gmra.mrb[54].mxu0 %vm1646_vm4, %v5625_v59  ;;  %v6057_v59 = vld [vmem:[%s10238_s7] sm:$0xff] }
0x1560   : > { %7729 = vmatprep.mubr.msk.f32.mxu0 %vm9064_vm5, %v9062_v0  ;;  %8109 = vmatpush3.bf16.msra.mxu0 %v8108_v8  ;;  %v8123_v62 = vpack.c.bf16 %v6058_v61, %v6057_v59 }
0x1561   : > { %8116 = vmatprep.subr.bf16.mxu0 %v9063_v50 }
0x1563   : > { %7730 = vmatmul.mubr.msk.f32.gmra.mrb[56].mxu0 %vm1646_vm4, %v5626_v60  ;;  %v8117_v60 = vpack.c.bf16 %v6864_v56, %v6863_v51 }
0x1564   : > { %7757 = vmatprep.mubr.msk.f32.mxu0 %vm9064_vm5, %v9062_v0 }
0x1622   : > { %v5521_v9 = vpop.f32.mrb[46].mxu0 }
0x1623   : > { %v5610_v10 = vpop.f32.mrb[34].mxu1  ;;  %v7691_v12 = vpop.f32.mrb[47].mxu0 }
0x1624   : > { %v5611_v11 = vadd.f32 %v5610_v10, %v5521_v9  ;;  %v7708_v13 = vpop.f32.mrb[35].mxu1 }
0x1626   : > { %v5526_v14 = vpop.f32.mrb[48].mxu0 }
0x1627   : > { %v5615_v15 = vpop.f32.mrb[36].mxu1  ;;  %v7694_v17 = vpop.f32.mrb[49].mxu0 }
0x1628   : > { %v5616_v16 = vadd.f32 %v5615_v15, %v5526_v14  ;;  %v7711_v18 = vpop.f32.mrb[37].mxu1 }
0x162a   : > { %v5531_v19 = vpop.f32.mrb[50].mxu0 }
0x162b   : > { %v5620_v20 = vpop.f32.mrb[38].mxu1  ;;  %v7697_v22 = vpop.f32.mrb[51].mxu0 }
0x162c   : > { %v5621_v21 = vadd.f32 %v5620_v20, %v5531_v19  ;;  %v7714_v23 = vpop.f32.mrb[39].mxu1  ;;  %v6862_v20 = vld [vmem:[#allocation29] ss:$0 sm:$0xff] }
0x162e   : > { %v5707_v24 = vpop.f32.mrb[52].mxu0 }
0x162f   : > { %v5721_v26 = vadd.f32 %v5707_v24, %v5611_v11  ;;  %v7725_v29 = vpop.f32.mrb[53].mxu0 }
0x1631   : > { %v5731_v30 = vadd.f32 %v6852_v25, %v5721_v26 }
0x1632   : > { %v5712_v31 = vpop.f32.mrb[54].mxu0 }
0x1633   : > { %v5734_v32 = vmax.f32 %v5731_v30, 0.0  ;;  %v5722_v33 = vadd.f32 %v5712_v31, %v5616_v16  ;;  %v7728_v34 = vpop.f32.mrb[55].mxu0 }
0x1635   : > { %5739 = vst.msk [vmem:[#allocation2 + $0x2] sm:$0xff] %vm1646_vm4, %v5734_v32  ;;  %v5732_v28 = vadd.f32 %v6852_v25, %v5722_v33 }
0x1636   : > { %v5717_v35 = vpop.f32.mrb[56].mxu0 }
0x1637   : > { %v5735_v36 = vmax.f32 %v5732_v28, 0.0  ;;  %v5723_v39 = vadd.f32 %v5717_v35, %v5621_v21  ;;  %v7731_v40 = vpop.f32.mrb[57].mxu0 }
0x1639   : > { %5740 = vst.msk [vmem:[#allocation2 + $0xa] sm:$0xff] %vm1646_vm4, %v5735_v36  ;;  %v5733_v42 = vadd.f32 %v6852_v25, %v5723_v39 }
0x163b   : > { %v5736_v44 = vmax.f32 %v5733_v42, 0.0 }
0x163c   : > { %v5749_v47 = vld [vmem:[#allocation2 + $0x1] sm:$0xff] }
0x163d   : > { %v5742_v48 = vld [vmem:[#allocation2] sm:$0xff]  ;;  %5741 = vst.msk [vmem:[#allocation2 + $0x12] sm:$0x3] %vm1927_vm3, %v5736_v44  ;;  %7741 = vmatmul.mubr.msk.f32.vlgmr.msra.gmra.mrb[40].mxu1 %vm1646_vm4, %v5749_v47  ;;  %vm6259_vm3 = vcmask 61440  }
0x163e   : > { %7758 = vmatmul.mubr.msk.f32.vlgmr.msra.gmra.mrb[58].mxu0 %vm1646_vm4, %v5742_v48  ;;  %6048 = vst.msk [vmem:[#allocation2] sm:$0x1] %vm1643_vm2, %v9062_v0  ;;  %7743 = vmatprep.mubr.msk.f32.mxu1 %vm9064_vm5, %v9062_v0  ;;  %v5935_v57 = vld [vmem:[#allocation2 + $0x2] sm:$0xff] }
0x163f   : > { %7760 = vmatprep.mubr.msk.f32.mxu0 %vm9064_vm5, %v9062_v0  ;;  %8112 = vmatpush3.bf16.msra.mxu1 %v8111_v45 }
0x1640   : > { %v5750_v53 = vld [vmem:[#allocation2 + $0x9] sm:$0xff]  ;;  %8113 = vmatprep.subr.bf16.mxu1 %v9063_v50  ;;  %8118 = vmatpush3.bf16.msra.mxu0 %v8117_v60 }
0x1641   : > { %v5743_v54 = vld [vmem:[#allocation2 + $0x8] sm:$0xff]  ;;  %7744 = vmatmul.mubr.msk.f32.gmra.mrb[42].mxu1 %vm1646_vm4, %v5750_v53  ;;  %8119 = vmatprep.subr.bf16.mxu0 %v9063_v50 }
0x1642   : > { %7761 = vmatmul.mubr.msk.f32.gmra.mrb[60].mxu0 %vm1646_vm4, %v5743_v54  ;;  %7746 = vmatprep.mubr.msk.f32.mxu1 %vm9064_vm5, %v9062_v0  ;;  %v5936_v58 = vld [vmem:[#allocation2 + $0xa] sm:$0xff] }
0x1643   : > { %7763 = vmatprep.mubr.msk.f32.mxu0 %vm9064_vm5, %v9062_v0  ;;  %8115 = vmatpush3.bf16.msra.mxu1 %v8114_v27 }
0x1644   : > { %v5751_v55 = vld [vmem:[#allocation2 + $0x11] sm:$0xf]  ;;  %8122 = vmatprep.subr.bf16.mxu1 %v9063_v50  ;;  %8121 = vmatpush3.bf16.msra.mxu0 %v8120_v3 }
0x1645   : > { %v5744_v43 = vld [vmem:[#allocation2 + $0x10] sm:$0xf]  ;;  %7747 = vmatmul.mubr.msk.f32.gmra.mrb[44].mxu1 %vm1646_vm4, %v5751_v55 }
0x1646   : > { %v5937_v49 = vld [vmem:[#allocation2 + $0x12] sm:$0xf]  ;;  %7764 = vmatmul.mubr.msk.f32.gmra.mrb[62].mxu0 %vm1646_vm4, %v5744_v43  ;;  %7774 = vmatprep.mubr.msk.f32.mxu1 %vm9064_vm5, %v9062_v0 }
0x1647   : > { %6049 = vst.msk [vmem:[#allocation2 + $0x15] sm:$0x1] %vm1643_vm2, %v9062_v0  ;;  %7791 = vmatprep.mubr.msk.f32.mxu0 %vm9064_vm5, %v9062_v0  ;;  %vm6052_vm2 = vcmask 257024  }
0x1649   : > { %7775 = vmatmul.mubr.msk.f32.vlgmr.msra.gmra.mrb[46].mxu1 %vm1646_vm4, %v5935_v57 }
0x164a   : > { %7777 = vmatprep.mubr.msk.f32.mxu1 %vm9064_vm5, %v9062_v0  ;;  %8124 = vmatpush3.bf16.msra.mxu1 %v8123_v62 }
0x164b   : > { %8125 = vmatprep.subr.bf16.mxu1 %v9063_v50 }
0x164d   : > { %7778 = vmatmul.mubr.msk.f32.gmra.mrb[48].mxu1 %vm1646_vm4, %v5936_v58 }
0x164e   : > { %7780 = vmatprep.mubr.msk.f32.mxu1 %vm9064_vm5, %v9062_v0  ;;  %8127 = vmatpush3.bf16.msra.mxu1 %v8126_v5 }
0x1651   : > { %7781 = vmatmul.mubr.msk.f32.gmra.mrb[50].mxu1 %vm1646_vm4, %v5937_v49 }
0x1652   : > { %7808 = vmatprep.mubr.msk.f32.mxu1 %vm9064_vm5, %v9062_v0 }
0x1710   : > { %v5832_v7 = vpop.f32.mrb[40].mxu1 }
0x1711   : > { %v5921_v37 = vpop.f32.mrb[58].mxu0  ;;  %v7742_v8 = vpop.f32.mrb[41].mxu1 }
0x1712   : > { %v5922_v38 = vadd.f32 %v5921_v37, %v5832_v7  ;;  %v7759_v9 = vpop.f32.mrb[59].mxu0 }
0x1714   : > { %v5837_v10 = vpop.f32.mrb[42].mxu1 }
0x1715   : > { %v5926_v11 = vpop.f32.mrb[60].mxu0  ;;  %v7745_v13 = vpop.f32.mrb[43].mxu1 }
0x1716   : > { %v5927_v12 = vadd.f32 %v5926_v11, %v5837_v10  ;;  %v7762_v14 = vpop.f32.mrb[61].mxu0 }
0x1718   : > { %v5842_v15 = vpop.f32.mrb[44].mxu1 }
0x1719   : > { %v5931_v16 = vpop.f32.mrb[62].mxu0  ;;  %v7748_v18 = vpop.f32.mrb[45].mxu1 }
0x171a   : > { %v5932_v17 = vadd.f32 %v5931_v16, %v5842_v15  ;;  %v7765_v50 = vpop.f32.mrb[63].mxu0 }
0x171c   : > { %v6018_v19 = vpop.f32.mrb[46].mxu1 }
0x171d   : > { %v6032_v21 = vadd.f32 %v6018_v19, %v5922_v38  ;;  %v7776_v22 = vpop.f32.mrb[47].mxu1 }
0x171f   : > { %v6042_v23 = vadd.f32 %v6862_v20, %v6032_v21 }
0x1720   : > { %v6023_v24 = vpop.f32.mrb[48].mxu1 }
0x1721   : > { %v6045_v25 = vmax.f32 %v6042_v23, 0.0  ;;  %v6033_v26 = vadd.f32 %v6023_v24, %v5927_v12  ;;  %v7779_v29 = vpop.f32.mrb[49].mxu1 }
0x1723   : > { %6050 = vst.msk [vmem:[#allocation2 + $0x1] sm:$0xff] %vm1646_vm4, %v6045_v25  ;;  %v6043_v30 = vadd.f32 %v6862_v20, %v6033_v26 }
0x1724   : > { %v6028_v31 = vpop.f32.mrb[50].mxu1 }
0x1725   : > { %v6046_v32 = vmax.f32 %v6043_v30, 0.0  ;;  %v6034_v33 = vadd.f32 %v6028_v31, %v5932_v17  ;;  %v7782_v34 = vpop.f32.mrb[51].mxu1 }
0x1727   : > { %6051 = vst.msk [vmem:[#allocation2 + $0x9] sm:$0xff] %vm1646_vm4, %v6046_v32  ;;  %v6044_v28 = vadd.f32 %v6862_v20, %v6034_v33 }
0x1729   : > { %v6047_v35 = vmax.f32 %v6044_v28, 0.0 }
0x172a   : > { %v6061_v36 = vld [vmem:[#allocation2 + $0x1] sm:$0xff] }
0x172b   : > { %v6054_v39 = vld [vmem:[#allocation2] sm:$0xff]  ;;  %7792 = vmatmul.mubr.msk.f32.vlgmr.msra.gmra.mrb[64].mxu0 %vm1646_vm4, %v6061_v36  ;;  %6053 = vst.msk [vmem:[#allocation2 + $0x11] sm:$0xf] %vm6052_vm2, %v6047_v35 }
0x172c   : > { %7809 = vmatmul.mubr.msk.f32.vlgmr.msra.gmra.mrb[52].mxu1 %vm1646_vm4, %v6054_v39  ;;  %7794 = vmatprep.mubr.msk.f32.mxu0 %vm9064_vm5, %v9062_v0 }
0x172d   : > { %7811 = vmatprep.mubr.msk.f32.mxu1 %vm9064_vm5, %v9062_v0 }
0x172e   : > { %v6062_v40 = vld [vmem:[#allocation2 + $0x9] sm:$0xff] }
0x172f   : > { %v6055_v6 = vld [vmem:[#allocation2 + $0x8] sm:$0xff]  ;;  %7795 = vmatmul.mubr.msk.f32.gmra.mrb[66].mxu0 %vm1646_vm4, %v6062_v40 }
0x1730   : > { %7812 = vmatmul.mubr.msk.f32.gmra.mrb[54].mxu1 %vm1646_vm4, %v6055_v6  ;;  %7797 = vmatprep.mubr.msk.f32.mxu0 %vm9064_vm5, %v9062_v0 }
0x1731   : > { %7814 = vmatprep.mubr.msk.f32.mxu1 %vm9064_vm5, %v9062_v0 }
0x1732   : > { %v6063_v41 = vld [vmem:[#allocation2 + $0x11] sm:$0x1f] }
0x1733   : > { %v6056_v42 = vld [vmem:[#allocation2 + $0x10] sm:$0x1f]  ;;  %7798 = vmatmul.mubr.msk.f32.gmra.mrb[68].mxu0 %vm1646_vm4, %v6063_v41 }
0x1734   : > { %7815 = vmatmul.mubr.msk.f32.gmra.mrb[56].mxu1 %vm1646_vm4, %v6056_v42 }
0x17fe   : > { %v6144_v44 = vpop.f32.mrb[64].mxu0 }
0x17ff   : > { %v6233_v45 = vpop.f32.mrb[52].mxu1  ;;  %v7793_v48 = vpop.f32.mrb[65].mxu0 }
0x1800   : > { %v6234_v47 = vadd.f32 %v6233_v45, %v6144_v44  ;;  %v7810_v52 = vpop.f32.mrb[53].mxu1 }
0x1802   : > { %v6254_v27 = vadd.f32 %v6873_v46, %v6234_v47  ;;  %v6149_v53 = vpop.f32.mrb[66].mxu0 }
0x1803   : > { %v6238_v54 = vpop.f32.mrb[54].mxu1  ;;  %v7796_v55 = vpop.f32.mrb[67].mxu0 }
0x1804   : > { %6257 = vst.msk [vmem:[%s1352_s19] sm:$0xff] %vm1373_vm1, %v6254_v27  ;;  %v6239_v0 = vadd.f32 %v6238_v54, %v6149_v53  ;;  %v7813_v43 = vpop.f32.mrb[55].mxu1 }
0x1806   : > { %v6255_v49 = vadd.f32 %v6873_v46, %v6239_v0  ;;  %v6154_v57 = vpop.f32.mrb[68].mxu0 }
0x1807   : > { %v6243_v58 = vpop.f32.mrb[56].mxu1  ;;  %v7799_v56 = vpop.f32.mrb[69].mxu0 }
0x1808   : > { %6258 = vst.msk [vmem:[%s1352_s19 + $0x8] sm:$0xff] %vm1373_vm1, %v6255_v49  ;;  %v6244_v51 = vadd.f32 %v6243_v58, %v6154_v57  ;;  %v7816_v59 = vpop.f32.mrb[57].mxu1 }
0x180a   : > { %v6256_v60 = vadd.f32 %v6873_v46, %v6244_v51 }
0x180c   : > { %6260 = vst.msk [vmem:[%s1352_s19 + $0x10] sm:$0x1f] %vm6259_vm3, %v6256_v60 }
0x180d PF: > { %s92_s22 = sadd.s32 1, %s9004_s22  }
0x180e   : > { %p89_p13 = scmp.ge.s32.totalorder %s92_s22, 4  }
0x1810   :  { %91 = sbr.rel (!%p89_p13) target bundleno = 70 (0x46), region = 354 }
0x1817   :  { %6330 = vsyncpa [#allocation4], 1 }
0x1818   :  { %6332 = vsyncpa [#allocation4 + $0x1], 1 }
0x1819   :  { %6333 = vsyncpa [#allocation6], 1 }
0x181a   :  { %6334 = vsyncpa [#allocation9], 1 }
0x181b   :  { %6335 = vsyncpa [#allocation12], 1 }
0x181c   :  { %6336 = vsyncpa [#allocation15], 1 }
0x181d   :  { %6337 = vsyncpa [#allocation18], 1 }
0x181e   :  { %6338 = vsyncpa [#allocation21], 1 }
0x181f   :  { %6339 = vsyncpa [#allocation24], 1 }
0x1820   :  { %6340 = vsyncpa [#allocation27], 1 }
0x1821   :  { %6341 = vsyncpa [#allocation30], 1 }

</bundles_post_ra>
